<compile_context>
chip_gen: v7x
topology: tpu7x:2x2x1
jax: 0.10.0
libtpu: 0.0.40
codegen_flags: <defaults>
</compile_context>

<pallas_src>
import jax
import jax.numpy as jnp
from jax.experimental import pallas as pl
from jax.experimental.pallas import tpu as pltpu

IN_PAD = 128     # z features 100 -> 128 (lane multiple)
EMB_PAD = 128    # one-hot width 10 -> 128 (lane multiple)
OUT_PAD = 896    # 784 -> 896 (7 * 128, lane multiple)
OUT_REAL = 784


def _round_up(x, m):
    return (x + m - 1) // m * m


def _generator_mlp_kernel(x_ref, lbl_ref,
                          w1_ref, ew1_ref, b1_ref,
                          w2_ref, b2_ref,
                          w3_ref, b3_ref,
                          w4_ref, b4_ref,
                          out_ref):
    def leaky_relu(v):
        # max(v, 0.2*v) == LeakyReLU(0.2) for finite v; one VALU op.
        return jnp.maximum(v, 0.2 * v)

    x = x_ref[...]                                        # (TB, 128) bf16
    lbl = lbl_ref[...]                                    # (TB, 1) int32

    # In-kernel "embedding lookup": one-hot(label) @ (E @ W1_emb), folded into layer 1.
    tb = lbl.shape[0]
    onehot = (lbl == jax.lax.broadcasted_iota(jnp.int32, (tb, EMB_PAD), 1)
              ).astype(jnp.bfloat16)                      # (TB, 128)

    h = jnp.dot(x, w1_ref[...], preferred_element_type=jnp.float32)
    h = h + jnp.dot(onehot, ew1_ref[...], preferred_element_type=jnp.float32)
    h = leaky_relu(h + b1_ref[...])                       # (TB, 256)

    h = leaky_relu(jnp.dot(h.astype(jnp.bfloat16), w2_ref[...],
                           preferred_element_type=jnp.float32) + b2_ref[...])   # (TB, 512)
    h = leaky_relu(jnp.dot(h.astype(jnp.bfloat16), w3_ref[...],
                           preferred_element_type=jnp.float32) + b3_ref[...])   # (TB, 1024)
    h = jnp.dot(h.astype(jnp.bfloat16), w4_ref[...],
                preferred_element_type=jnp.float32) + b4_ref[...]               # (TB, 896)

    out_ref[...] = jnp.tanh(h).astype(out_ref.dtype)      # bf16 store (half writeback)


def generator_forward(z, labels, prepared):
    """Full Generator.forward using prepared (padded/folded, bf16) params.

    Returns (B, 28, 28) float32.
    """
    B = z.shape[0]
    z = z.reshape(B, 100)

    # Batch tiling.
    if B <= 512:
        # Single tile: avoids duplicating the ~3.2 MiB resident weight DMA
        # across the two v7x TensorCores at small/medium batch.
        TB = _round_up(B, 8)
    else:
        # Adaptive tile <= 256: keeps batch padding under 8 rows per tile.
        nt = pl.cdiv(B, 256)
        TB = min(256, _round_up(pl.cdiv(B, nt), 8))
    Bp = _round_up(B, TB)
    n_tiles = Bp // TB

    # Wrapper glue (tiny): pad+cast z once (bf16), pad labels once.
    zp = jnp.pad(z.astype(jnp.bfloat16), ((0, Bp - B), (0, IN_PAD - 100)))
    lab = jnp.pad(labels.astype(jnp.int32).reshape(B, 1), ((0, Bp - B), (0, 0)))

    w1z, ew1, b1 = prepared["w1z"], prepared["ew1"], prepared["b1"]
    w2, b2 = prepared["w2"], prepared["b2"]
    w3, b3 = prepared["w3"], prepared["b3"]
    w4, b4 = prepared["w4"], prepared["b4"]

    # Weights/biases: constant block index -> VMEM-resident across batch tiles.
    # Single-buffered: they are never re-fetched, no need for a second copy.
    def resident(a):
        return pl.BlockSpec(a.shape, lambda i: (0, 0), pipeline_mode=pl.Buffered(1))

    # Footprint: ~3.3 MiB bf16 weights (single-buffered) + ~0.1 MiB biases
    # + 2x (TB,128) bf16 x + 2x (TB,1) i32 labels + 2x (TB,896) bf16 out
    # + compiler scratch for f32 intermediates.
    vmem_limit = (16 << 20) if TB <= 256 else (32 << 20)

    out = pl.pallas_call(
        _generator_mlp_kernel,
        out_shape=jax.ShapeDtypeStruct((Bp, OUT_PAD), jnp.bfloat16),
        grid=(n_tiles,),
        in_specs=[pl.BlockSpec((TB, IN_PAD), lambda i: (i, 0)),
                  pl.BlockSpec((TB, 1), lambda i: (i, 0)),
                  resident(w1z), resident(ew1), resident(b1),
                  resident(w2), resident(b2),
                  resident(w3), resident(b3),
                  resident(w4), resident(b4)],
        out_specs=pl.BlockSpec((TB, OUT_PAD), lambda i: (i, 0)),
        compiler_params=pltpu.CompilerParams(
            dimension_semantics=("parallel",) if n_tiles > 1 else ("arbitrary",),
            vmem_limit_bytes=vmem_limit,
        ),
    )(zp, lab, w1z, ew1, b1, w2, b2, w3, b3, w4, b4)

    return out[:B, :OUT_REAL].astype(jnp.float32).reshape(B, 28, 28)


def init_params(key):
    """Deterministic synthetic parameters matching the PyTorch module shapes (f32)."""
    ks = jax.random.split(key, 9)

    def dense(kw, kb, fan_in, fan_out):
        # Uniform(-1/sqrt(fan_in), 1/sqrt(fan_in)) like torch.nn.Linear default.
        bound = 1.0 / jnp.sqrt(jnp.float32(fan_in))
        w = jax.random.uniform(kw, (fan_in, fan_out), jnp.float32, -bound, bound)
        b = jax.random.uniform(kb, (1, fan_out), jnp.float32, -bound, bound)
        return w, b

    emb = jax.random.normal(ks[0], (10, 10), jnp.float32)          # nn.Embedding(10, 10)
    w1, b1 = dense(ks[1], ks[2], 110, 256)
    w2, b2 = dense(ks[3], ks[4], 256, 512)
    w3, b3 = dense(ks[5], ks[6], 512, 1024)
    w4, b4 = dense(ks[7], ks[8], 1024, 784)
    return {"label_emb": emb,
            "w1": w1, "b1": b1,
            "w2": w2, "b2": b2,
            "w3": w3, "b3": b3,
            "w4": w4, "b4": b4}


def prepare_params(params):
    """One-time prep: fold embedding into layer 1, pad to lane multiples, cast to bf16.

    Done once at init time so no per-call gather/pad/cast shows up in the hot path.
    """
    w1 = params["w1"]                                   # (110, 256)
    # z part of layer 1, padded 100 -> 128 input rows.
    w1z = jnp.zeros((IN_PAD, 256), jnp.float32).at[:100, :].set(w1[:100, :])
    # Embedding folded into layer 1: EW1 = E @ W1[100:110], padded 10 -> 128 rows.
    ew1 = jnp.zeros((EMB_PAD, 256), jnp.float32).at[:10, :].set(
        params["label_emb"] @ w1[100:110, :])
    # Output layer padded 784 -> 896 columns.
    w4 = jnp.zeros((1024, OUT_PAD), jnp.float32).at[:, :OUT_REAL].set(params["w4"])
    b4 = jnp.zeros((1, OUT_PAD), jnp.float32).at[:, :OUT_REAL].set(params["b4"])
    return {
        "w1z": w1z.astype(jnp.bfloat16),
        "ew1": ew1.astype(jnp.bfloat16),
        "b1": params["b1"].astype(jnp.float32),
        "w2": params["w2"].astype(jnp.bfloat16), "b2": params["b2"].astype(jnp.float32),
        "w3": params["w3"].astype(jnp.bfloat16), "b3": params["b3"].astype(jnp.float32),
        "w4": w4.astype(jnp.bfloat16), "b4": b4,
    }


def _reference_forward(z, labels, params):
    """Pure-JAX reference of the PyTorch forward with bf16 weights / f32 accumulation.

    Uses the *unfolded* embedding-gather path, so it independently checks the
    kernel's folded-embedding formulation.
    """
    B = z.shape[0]
    z = z.reshape(B, 100).astype(jnp.float32)
    c = params["label_emb"][labels]                      # (B, 10)
    x = jnp.concatenate([z, c], axis=1).astype(jnp.bfloat16)

    def leaky_relu(v):
        return jnp.maximum(v, 0.2 * v)

    h = leaky_relu(jnp.dot(x, params["w1"].astype(jnp.bfloat16),
                           preferred_element_type=jnp.float32) + params["b1"])
    h = leaky_relu(jnp.dot(h.astype(jnp.bfloat16), params["w2"].astype(jnp.bfloat16),
                           preferred_element_type=jnp.float32) + params["b2"])
    h = leaky_relu(jnp.dot(h.astype(jnp.bfloat16), params["w3"].astype(jnp.bfloat16),
                           preferred_element_type=jnp.float32) + params["b3"])
    h = jnp.dot(h.astype(jnp.bfloat16), params["w4"].astype(jnp.bfloat16),
                preferred_element_type=jnp.float32) + params["b4"]
    return jnp.tanh(h).reshape(B, 28, 28)


if __name__ == "__main__":
    key = jax.random.PRNGKey(0)
    kp, kz, kl = jax.random.split(key, 3)

    raw_params = init_params(kp)
    prepared = prepare_params(raw_params)

    B = 8
    z = jax.random.normal(kz, (B, 100), jnp.float32)
    labels = jax.random.randint(kl, (B,), 0, 10, jnp.int32)

    fwd = jax.jit(generator_forward)
    out = fwd(z, labels, prepared)
    out = jax.block_until_ready(out)

    assert out.shape == (B, 28, 28), out.shape
    assert out.dtype == jnp.float32, out.dtype
    assert bool(jnp.all(jnp.isfinite(out)))
    # Tanh output range sanity check (bf16 output rounds toward, never past, +/-1).
    assert bool(jnp.all(jnp.abs(out) <= 1.0 + 1e-6))

    # Numerical check against a pure-JAX unfolded reference (bf16 weights, f32 accum).
    ref = _reference_forward(z, labels, raw_params)
    err = float(jnp.max(jnp.abs(out - ref)))
    assert err < 2e-2, err

    print("KERNEL_OK")
</pallas_src>

<mosaic_0001>
module attributes {stable_mosaic.version = 11 : i64} {
  func.func @_generator_mlp_kernel(%arg0: i32, %arg1: memref<8x128xbf16, #tpu.memory_space<vmem>>, %arg2: memref<8x1xi32, #tpu.memory_space<vmem>>, %arg3: memref<128x256xbf16, #tpu.memory_space<vmem>>, %arg4: memref<128x256xbf16, #tpu.memory_space<vmem>>, %arg5: memref<1x256xf32, #tpu.memory_space<vmem>>, %arg6: memref<256x512xbf16, #tpu.memory_space<vmem>>, %arg7: memref<1x512xf32, #tpu.memory_space<vmem>>, %arg8: memref<512x1024xbf16, #tpu.memory_space<vmem>>, %arg9: memref<1x1024xf32, #tpu.memory_space<vmem>>, %arg10: memref<1024x896xbf16, #tpu.memory_space<vmem>>, %arg11: memref<1x896xf32, #tpu.memory_space<vmem>>, %arg12: memref<8x896xbf16, #tpu.memory_space<vmem>>) attributes {dimension_semantics = [#tpu.dimension_semantics<arbitrary>], iteration_bounds = array<i64: 1>, scalar_prefetch = 0 : i64, scratch_operands = 0 : i64, tpu.core_type = #tpu.core_type<tc>, window_params = [{transform_indices = @transform_0, window_bounds = array<i64: 8, 128>}, {transform_indices = @transform_1, window_bounds = array<i64: 8, 1>}, {pipeline_mode = #tpu.pipeline_mode<synchronous>, transform_indices = @transform_2, window_bounds = array<i64: 128, 256>}, {pipeline_mode = #tpu.pipeline_mode<synchronous>, transform_indices = @transform_3, window_bounds = array<i64: 128, 256>}, {pipeline_mode = #tpu.pipeline_mode<synchronous>, transform_indices = @transform_4, window_bounds = array<i64: 1, 256>}, {pipeline_mode = #tpu.pipeline_mode<synchronous>, transform_indices = @transform_5, window_bounds = array<i64: 256, 512>}, {pipeline_mode = #tpu.pipeline_mode<synchronous>, transform_indices = @transform_6, window_bounds = array<i64: 1, 512>}, {pipeline_mode = #tpu.pipeline_mode<synchronous>, transform_indices = @transform_7, window_bounds = array<i64: 512, 1024>}, {pipeline_mode = #tpu.pipeline_mode<synchronous>, transform_indices = @transform_8, window_bounds = array<i64: 1, 1024>}, {pipeline_mode = #tpu.pipeline_mode<synchronous>, transform_indices = @transform_9, window_bounds = array<i64: 1024, 896>}, {pipeline_mode = #tpu.pipeline_mode<synchronous>, transform_indices = @transform_10, window_bounds = array<i64: 1, 896>}, {transform_indices = @transform_11, window_bounds = array<i64: 8, 896>}]} {
    %c0 = arith.constant 0 : index
    %c0_0 = arith.constant 0 : index
    %0 = vector.load %arg1[%c0, %c0_0] : memref<8x128xbf16, #tpu.memory_space<vmem>>, vector<8x128xbf16>
    %c0_1 = arith.constant 0 : index
    %c0_2 = arith.constant 0 : index
    %1 = vector.load %arg2[%c0_1, %c0_2] : memref<8x1xi32, #tpu.memory_space<vmem>>, vector<8x1xi32>
    %2 = tpu.iota {dimensions = array<i32: 1>} : vector<8x128xi32>
    %3 = vector.broadcast %1 : vector<8x1xi32> to vector<8x128xi32>
    %4 = arith.cmpi eq, %3, %2 : vector<8x128xi32>
    %5 = arith.extui %4 : vector<8x128xi1> to vector<8x128xi32>
    %6 = arith.sitofp %5 : vector<8x128xi32> to vector<8x128xf32>
    %7 = arith.truncf %6 : vector<8x128xf32> to vector<8x128xbf16>
    %c0_3 = arith.constant 0 : index
    %c0_4 = arith.constant 0 : index
    %8 = vector.load %arg3[%c0_3, %c0_4] : memref<128x256xbf16, #tpu.memory_space<vmem>>, vector<128x256xbf16>
    %cst = arith.constant dense<0.000000e+00> : vector<8x256xf32>
    %9 = tpu.matmul %0, %8, %cst {dimension_numbers = #tpu.dot_dimension_numbers<[1], [0], [0], [1], [0, 0, 1, 1], [], []>} : vector<8x128xbf16>, vector<128x256xbf16>, vector<8x256xf32> -> vector<8x256xf32>
    %c0_5 = arith.constant 0 : index
    %c0_6 = arith.constant 0 : index
    %10 = vector.load %arg4[%c0_5, %c0_6] : memref<128x256xbf16, #tpu.memory_space<vmem>>, vector<128x256xbf16>
    %cst_7 = arith.constant dense<0.000000e+00> : vector<8x256xf32>
    %11 = tpu.matmul %7, %10, %cst_7 {dimension_numbers = #tpu.dot_dimension_numbers<[1], [0], [0], [1], [0, 0, 1, 1], [], []>} : vector<8x128xbf16>, vector<128x256xbf16>, vector<8x256xf32> -> vector<8x256xf32>
    %12 = arith.addf %9, %11 : vector<8x256xf32>
    %c0_8 = arith.constant 0 : index
    %c0_9 = arith.constant 0 : index
    %13 = vector.load %arg5[%c0_8, %c0_9] : memref<1x256xf32, #tpu.memory_space<vmem>>, vector<1x256xf32>
    %14 = vector.broadcast %13 : vector<1x256xf32> to vector<8x256xf32>
    %15 = arith.addf %12, %14 : vector<8x256xf32>
    %cst_10 = arith.constant 2.000000e-01 : f32
    %16 = vector.broadcast %cst_10 : f32 to vector<8x256xf32>
    %17 = arith.mulf %16, %15 : vector<8x256xf32>
    %18 = arith.maximumf %15, %17 : vector<8x256xf32>
    %19 = arith.truncf %18 : vector<8x256xf32> to vector<8x256xbf16>
    %c0_11 = arith.constant 0 : index
    %c0_12 = arith.constant 0 : index
    %20 = vector.load %arg6[%c0_11, %c0_12] : memref<256x512xbf16, #tpu.memory_space<vmem>>, vector<256x512xbf16>
    %cst_13 = arith.constant dense<0.000000e+00> : vector<8x512xf32>
    %21 = tpu.matmul %19, %20, %cst_13 {dimension_numbers = #tpu.dot_dimension_numbers<[1], [0], [0], [1], [0, 0, 1, 1], [], []>} : vector<8x256xbf16>, vector<256x512xbf16>, vector<8x512xf32> -> vector<8x512xf32>
    %c0_14 = arith.constant 0 : index
    %c0_15 = arith.constant 0 : index
    %22 = vector.load %arg7[%c0_14, %c0_15] : memref<1x512xf32, #tpu.memory_space<vmem>>, vector<1x512xf32>
    %23 = vector.broadcast %22 : vector<1x512xf32> to vector<8x512xf32>
    %24 = arith.addf %21, %23 : vector<8x512xf32>
    %cst_16 = arith.constant 2.000000e-01 : f32
    %25 = vector.broadcast %cst_16 : f32 to vector<8x512xf32>
    %26 = arith.mulf %25, %24 : vector<8x512xf32>
    %27 = arith.maximumf %24, %26 : vector<8x512xf32>
    %28 = arith.truncf %27 : vector<8x512xf32> to vector<8x512xbf16>
    %c0_17 = arith.constant 0 : index
    %c0_18 = arith.constant 0 : index
    %29 = vector.load %arg8[%c0_17, %c0_18] : memref<512x1024xbf16, #tpu.memory_space<vmem>>, vector<512x1024xbf16>
    %cst_19 = arith.constant dense<0.000000e+00> : vector<8x1024xf32>
    %30 = tpu.matmul %28, %29, %cst_19 {dimension_numbers = #tpu.dot_dimension_numbers<[1], [0], [0], [1], [0, 0, 1, 1], [], []>} : vector<8x512xbf16>, vector<512x1024xbf16>, vector<8x1024xf32> -> vector<8x1024xf32>
    %c0_20 = arith.constant 0 : index
    %c0_21 = arith.constant 0 : index
    %31 = vector.load %arg9[%c0_20, %c0_21] : memref<1x1024xf32, #tpu.memory_space<vmem>>, vector<1x1024xf32>
    %32 = vector.broadcast %31 : vector<1x1024xf32> to vector<8x1024xf32>
    %33 = arith.addf %30, %32 : vector<8x1024xf32>
    %cst_22 = arith.constant 2.000000e-01 : f32
    %34 = vector.broadcast %cst_22 : f32 to vector<8x1024xf32>
    %35 = arith.mulf %34, %33 : vector<8x1024xf32>
    %36 = arith.maximumf %33, %35 : vector<8x1024xf32>
    %37 = arith.truncf %36 : vector<8x1024xf32> to vector<8x1024xbf16>
    %c0_23 = arith.constant 0 : index
    %c0_24 = arith.constant 0 : index
    %38 = vector.load %arg10[%c0_23, %c0_24] : memref<1024x896xbf16, #tpu.memory_space<vmem>>, vector<1024x896xbf16>
    %cst_25 = arith.constant dense<0.000000e+00> : vector<8x896xf32>
    %39 = tpu.matmul %37, %38, %cst_25 {dimension_numbers = #tpu.dot_dimension_numbers<[1], [0], [0], [1], [0, 0, 1, 1], [], []>} : vector<8x1024xbf16>, vector<1024x896xbf16>, vector<8x896xf32> -> vector<8x896xf32>
    %c0_26 = arith.constant 0 : index
    %c0_27 = arith.constant 0 : index
    %40 = vector.load %arg11[%c0_26, %c0_27] : memref<1x896xf32, #tpu.memory_space<vmem>>, vector<1x896xf32>
    %41 = vector.broadcast %40 : vector<1x896xf32> to vector<8x896xf32>
    %42 = arith.addf %39, %41 : vector<8x896xf32>
    %43 = math.tanh %42 : vector<8x896xf32>
    %44 = arith.truncf %43 : vector<8x896xf32> to vector<8x896xbf16>
    %c0_28 = arith.constant 0 : index
    %c0_29 = arith.constant 0 : index
    %45 = vector.load %arg12[%c0_28, %c0_29] : memref<8x896xbf16, #tpu.memory_space<vmem>>, vector<8x896xbf16>
    tpu.vector_store %arg12[%c0_28, %c0_29], %44 {strides = array<i32>} : memref<8x896xbf16, #tpu.memory_space<vmem>>, vector<8x896xbf16>,
    return
  }
  func.func @transform_0(%arg0: i32) -> (i32, i32) {
    %c0_i32 = arith.constant 0 : i32
    %c0_i32_0 = arith.constant 0 : i32
    return %arg0, %c0_i32 : i32, i32
  }
  func.func @transform_1(%arg0: i32) -> (i32, i32) {
    %c0_i32 = arith.constant 0 : i32
    %c0_i32_0 = arith.constant 0 : i32
    return %arg0, %c0_i32 : i32, i32
  }
  func.func @transform_2(%arg0: i32) -> (i32, i32) {
    %c0_i32 = arith.constant 0 : i32
    %c0_i32_0 = arith.constant 0 : i32
    %c0_i32_1 = arith.constant 0 : i32
    return %c0_i32, %c0_i32_0 : i32, i32
  }
  func.func @transform_3(%arg0: i32) -> (i32, i32) {
    %c0_i32 = arith.constant 0 : i32
    %c0_i32_0 = arith.constant 0 : i32
    %c0_i32_1 = arith.constant 0 : i32
    return %c0_i32, %c0_i32_0 : i32, i32
  }
  func.func @transform_4(%arg0: i32) -> (i32, i32) {
    %c0_i32 = arith.constant 0 : i32
    %c0_i32_0 = arith.constant 0 : i32
    %c0_i32_1 = arith.constant 0 : i32
    return %c0_i32, %c0_i32_0 : i32, i32
  }
  func.func @transform_5(%arg0: i32) -> (i32, i32) {
    %c0_i32 = arith.constant 0 : i32
    %c0_i32_0 = arith.constant 0 : i32
    %c0_i32_1 = arith.constant 0 : i32
    return %c0_i32, %c0_i32_0 : i32, i32
  }
  func.func @transform_6(%arg0: i32) -> (i32, i32) {
    %c0_i32 = arith.constant 0 : i32
    %c0_i32_0 = arith.constant 0 : i32
    %c0_i32_1 = arith.constant 0 : i32
    return %c0_i32, %c0_i32_0 : i32, i32
  }
  func.func @transform_7(%arg0: i32) -> (i32, i32) {
    %c0_i32 = arith.constant 0 : i32
    %c0_i32_0 = arith.constant 0 : i32
    %c0_i32_1 = arith.constant 0 : i32
    return %c0_i32, %c0_i32_0 : i32, i32
  }
  func.func @transform_8(%arg0: i32) -> (i32, i32) {
    %c0_i32 = arith.constant 0 : i32
    %c0_i32_0 = arith.constant 0 : i32
    %c0_i32_1 = arith.constant 0 : i32
    return %c0_i32, %c0_i32_0 : i32, i32
  }
  func.func @transform_9(%arg0: i32) -> (i32, i32) {
    %c0_i32 = arith.constant 0 : i32
    %c0_i32_0 = arith.constant 0 : i32
    %c0_i32_1 = arith.constant 0 : i32
    return %c0_i32, %c0_i32_0 : i32, i32
  }
  func.func @transform_10(%arg0: i32) -> (i32, i32) {
    %c0_i32 = arith.constant 0 : i32
    %c0_i32_0 = arith.constant 0 : i32
    %c0_i32_1 = arith.constant 0 : i32
    return %c0_i32, %c0_i32_0 : i32, i32
  }
  func.func @transform_11(%arg0: i32) -> (i32, i32) {
    %c0_i32 = arith.constant 0 : i32
    %c0_i32_0 = arith.constant 0 : i32
    return %arg0, %c0_i32 : i32, i32
  }
}

</mosaic_0001>

<bundles_post_ra>
// kernel: generator_forward.1
= control target key start
LH: loop header
LB: loop body
LE: loop exit
PB: predicated region body
PF: predicated region fallthrough
CT: control target
= control target key end

     0   :  { %16 = vsyncpa [#allocation3], 0  ;;  %s8832_s0 = inlined_call_operand.vmem [shape: bf16[8,128], index: 0, kind: input, shape index: {}]   ;;  %s8833_s1 = inlined_call_operand.vmem [shape: s32[8,1], index: 1, kind: input, shape index: {}]   ;;  %s8834_s2 = inlined_call_operand.hbm [shape: bf16[128,256], index: 2, kind: input, shape index: {}]   ;;  %s8835_s3 = inlined_call_operand.hbm [shape: bf16[128,256], index: 3, kind: input, shape index: {}]   ;;  %s8836_s4 = inlined_call_operand.hbm [shape: f32[1,256], index: 4, kind: input, shape index: {}]   ;;  %s8837_s5 = inlined_call_operand.hbm [shape: bf16[256,512], index: 5, kind: input, shape index: {}]   ;;  %s8838_s6 = inlined_call_operand.hbm [shape: f32[1,512], index: 6, kind: input, shape index: {}]   ;;  %s8839_s7 = inlined_call_operand.hbm [shape: bf16[512,1024], index: 7, kind: input, shape index: {}]   ;;  %s8840_s8 = inlined_call_operand.hbm [shape: f32[1,1024], index: 8, kind: input, shape index: {}]   ;;  %s8841_s9 = inlined_call_operand.hbm [shape: bf16[1024,896], index: 9, kind: input, shape index: {}]   ;;  %s8842_s10 = inlined_call_operand.hbm [shape: f32[1,896], index: 10, kind: input, shape index: {}]   ;;  %s8843_s11 = inlined_call_operand.vmem [shape: bf16[8,896], index: 11, kind: output, shape index: {}]  }
   0x1   :  { %17 = vsyncpa [#allocation5], 0 }
   0x2   :  { %18 = vsyncpa [#allocation8], 0 }
   0x3   :  { %19 = vsyncpa [#allocation11], 0 }
   0x4   :  { %20 = vsyncpa [#allocation14], 0  ;;  %s8433_s17 = smov [#allocation4]   ;;  %s8434_s19 = smov [#allocation7]  }
   0x5   :  { %s42_s18 = sshll.u32 %s8433_s17, 4  ;;  %s64_s20 = sshll.u32 %s8434_s19, 4  ;;  %s43_s18 = int_to_ptr.vmem [resolvable:$true] %s42_s18  ;;  %s8512_s20 = int_to_ptr.vmem [resolvable:$true] %s64_s20 }
   0x6   :  { %s8225_s23 = scalar_lea.hbm %s8835_s3, 2048 }
   0x7   :  { %p8226_p0 = scmp.ne.s32.totalorder %s8835_s3, %s8225_s23  ;;  %p8229_p1 = scmp.lt.u32.totalorder %s8225_s23, %s8835_s3 }
   0x9   :  { %p8231_p2 = pnand %p8229_p1, %p8226_p0 }
   0xb   :  { %8234 = shalt.err (!%p8231_p2)
}
   0xc   :  { %s8235_s28 = scalar_lea.vmem %s43_s18, 2048  ;;  %p8240_p4 = scmp.lt.s32.totalorder %s43_s18, %s43_s18 }
   0xd   :  { %p8236_p3 = scmp.ne.s32.totalorder %s43_s18, %s8235_s28  ;;  %p8241_p5 = scmp.lt.s32.totalorder %s8235_s28, %s8235_s28 }
   0xf   :  { %p8242_p6 = por %p8241_p5, %p8240_p4 }
  0x11   :  { %p8243_p7 = pnand %p8242_p6, %p8236_p3 }
  0x13   :  { %8246 = shalt.err (!%p8243_p7)
}
  0x14   :  { %s8435_s29 = smov 128   ;;  %s8436_s30 = smov 8  }
  0x15   :  { %48 = dma.hbm_to_vmem [thread:$0]  %s8835_s3, 2048, %s43_s18, [#allocation5], %s8435_s29, %s8435_s29, %s8436_s30  }
  0x16   :  { %s8247_s16 = scalar_lea.hbm %s8837_s5, 8192 }
  0x17   :  { %p8248_p8 = scmp.ne.s32.totalorder %s8837_s5, %s8247_s16  ;;  %p8251_p9 = scmp.lt.u32.totalorder %s8247_s16, %s8837_s5 }
  0x19   :  { %p8253_p10 = pnand %p8251_p9, %p8248_p8 }
  0x1b   :  { %8256 = shalt.err (!%p8253_p10)
}
  0x1c   :  { %s8257_s23 = scalar_lea.vmem %s8512_s20, 8192  ;;  %p8262_p12 = scmp.lt.s32.totalorder %s8512_s20, %s8512_s20 }
  0x1d   :  { %p8258_p11 = scmp.ne.s32.totalorder %s8512_s20, %s8257_s23  ;;  %p8263_p13 = scmp.lt.s32.totalorder %s8257_s23, %s8257_s23 }
  0x1f   :  { %p8264_p0 = por %p8263_p13, %p8262_p12 }
  0x21   :  { %p8265_p1 = pnand %p8264_p0, %p8258_p11 }
  0x23   :  { %8268 = shalt.err (!%p8265_p1)
}
  0x24   :  { %s8437_s3 = smov 256   ;;  %s8438_s18 = smov 16  }
  0x25   :  { %70 = dma.hbm_to_vmem [thread:$0]  %s8837_s5, 8192, %s8512_s20, [#allocation8], %s8437_s3, %s8437_s3, %s8438_s18  }
  0x26   :  { %s8439_s26 = smov [#allocation10]   ;;  %s8269_s13 = scalar_lea.hbm %s8839_s7, 32768 }
  0x27   :  { %s86_s27 = sshll.u32 %s8439_s26, 4  ;;  %p8270_p2 = scmp.ne.s32.totalorder %s8839_s7, %s8269_s13  ;;  %s87_s27 = int_to_ptr.vmem [resolvable:$true] %s86_s27 }
  0x28   :  { %p8273_p3 = scmp.lt.u32.totalorder %s8269_s13, %s8839_s7 }
  0x2a   :  { %p8275_p4 = pnand %p8273_p3, %p8270_p2 }
  0x2c   :  { %8278 = shalt.err (!%p8275_p4)
}
  0x2d   :  { %s8279_s19 = scalar_lea.vmem %s87_s27, 32768  ;;  %p8284_p6 = scmp.lt.s32.totalorder %s87_s27, %s87_s27 }
  0x2e   :  { %p8280_p5 = scmp.ne.s32.totalorder %s87_s27, %s8279_s19  ;;  %p8285_p7 = scmp.lt.s32.totalorder %s8279_s19, %s8279_s19 }
  0x30   :  { %p8286_p8 = por %p8285_p7, %p8284_p6 }
  0x32   :  { %p8287_p9 = pnand %p8286_p8, %p8280_p5 }
  0x34   :  { %8290 = shalt.err (!%p8287_p9)
}
  0x35   :  { %s8440_s5 = smov 512   ;;  %s8441_s20 = smov 32  }
  0x36   :  { %92 = dma.hbm_to_vmem [thread:$0]  %s8839_s7, 32768, %s87_s27, [#allocation11], %s8440_s5, %s8440_s5, %s8441_s20  }
  0x37   :  { %s8442_s23 = smov [#allocation13]   ;;  %s8291_s25 = scalar_lea.hbm %s8841_s9, 57344 }
  0x38   :  { %s108_s3 = sshll.u32 %s8442_s23, 4  ;;  %p8292_p10 = scmp.ne.s32.totalorder %s8841_s9, %s8291_s25  ;;  %s109_s3 = int_to_ptr.vmem [resolvable:$true] %s108_s3 }
  0x39   :  { %p8295_p11 = scmp.lt.u32.totalorder %s8291_s25, %s8841_s9 }
  0x3b   :  { %p8297_p12 = pnand %p8295_p11, %p8292_p10 }
  0x3d   :  { %8300 = shalt.err (!%p8297_p12)
}
  0x3e   :  { %s8301_s14 = scalar_lea.vmem %s109_s3, 57344  ;;  %p8306_p0 = scmp.lt.s32.totalorder %s109_s3, %s109_s3 }
  0x3f   :  { %p8302_p13 = scmp.ne.s32.totalorder %s109_s3, %s8301_s14  ;;  %p8307_p1 = scmp.lt.s32.totalorder %s8301_s14, %s8301_s14 }
  0x41   :  { %p8308_p2 = por %p8307_p1, %p8306_p0 }
  0x43   :  { %p8309_p3 = pnand %p8308_p2, %p8302_p13 }
  0x45   :  { %8312 = shalt.err (!%p8309_p3)
}
  0x46   :  { %s8443_s7 = smov 448   ;;  %s8444_s27 = smov 28  }
  0x47   :  { %114 = dma.hbm_to_vmem [thread:$0]  %s8841_s9, 57344, %s109_s3, [#allocation14], %s8443_s7, %s8443_s7, %s8444_s27  }
  0x48   :  { %s8445_s17 = smov [#allocation2]   ;;  %s8446_s5 = smov [#allocation6]  }
  0x49   :  { %s30_s19 = sshll.u32 %s8445_s17, 4  ;;  %s55_s20 = sshll.u32 %s8446_s5, 4  ;;  %s31_s19 = int_to_ptr.vmem [resolvable:$true] %s30_s19  ;;  %s56_s20 = int_to_ptr.vmem [resolvable:$true] %s55_s20 }
  0x4a   :  { %s8313_s23 = scalar_lea.hbm %s8834_s2, 2048 }
  0x4b   :  { %p8314_p4 = scmp.ne.s32.totalorder %s8834_s2, %s8313_s23  ;;  %p8317_p5 = scmp.lt.u32.totalorder %s8313_s23, %s8834_s2 }
  0x4d   :  { %p8319_p6 = pnand %p8317_p5, %p8314_p4 }
  0x4f   :  { %8322 = shalt.err (!%p8319_p6)
}
  0x50   :  { %s8323_s9 = scalar_lea.vmem %s31_s19, 2048  ;;  %p8328_p8 = scmp.lt.s32.totalorder %s31_s19, %s31_s19 }
  0x51   :  { %p8324_p7 = scmp.ne.s32.totalorder %s31_s19, %s8323_s9  ;;  %p8329_p9 = scmp.lt.s32.totalorder %s8323_s9, %s8323_s9 }
  0x53   :  { %p8330_p10 = por %p8329_p9, %p8328_p8 }
  0x55   :  { %p8331_p11 = pnand %p8330_p10, %p8324_p7 }
  0x57   :  { %8334 = shalt.err (!%p8331_p11)
}
  0x58   :  { %36 = dma.hbm_to_vmem [thread:$0]  %s8834_s2, 2048, %s31_s19, [#allocation3], %s8435_s29, %s8435_s29, %s8436_s30  }
  0x59   :  { %s8335_s14 = scalar_lea.hbm %s8836_s4, 32 }
  0x5a   :  { %p8336_p12 = scmp.ne.s32.totalorder %s8836_s4, %s8335_s14  ;;  %p8339_p13 = scmp.lt.u32.totalorder %s8335_s14, %s8836_s4 }
  0x5c   :  { %p8341_p0 = pnand %p8339_p13, %p8336_p12 }
  0x5e   :  { %8344 = shalt.err (!%p8341_p0)
}
  0x5f   :  { %s8345_s17 = scalar_lea.vmem %s56_s20, 32  ;;  %p8350_p2 = scmp.lt.s32.totalorder %s56_s20, %s56_s20 }
  0x60   :  { %p8346_p1 = scmp.ne.s32.totalorder %s56_s20, %s8345_s17  ;;  %p8351_p3 = scmp.lt.s32.totalorder %s8345_s17, %s8345_s17 }
  0x62   :  { %p8352_p4 = por %p8351_p3, %p8350_p2 }
  0x64   :  { %p8353_p5 = pnand %p8352_p4, %p8346_p1 }
  0x66   :  { %8356 = shalt.err (!%p8353_p5)
}
  0x67   :  { %58 = dma.hbm_to_vmem [thread:$0]  %s8836_s4, 32, %s56_s20, [#allocation5]  }
  0x68   :  { %s8447_s30 = smov [#allocation9]   ;;  %s8448_s5 = smov [#allocation12]  }
  0x69   :  { %s77_s19 = sshll.u32 %s8447_s30, 4  ;;  %s99_s21 = sshll.u32 %s8448_s5, 4  ;;  %s78_s19 = int_to_ptr.vmem [resolvable:$true] %s77_s19  ;;  %s100_s21 = int_to_ptr.vmem [resolvable:$true] %s99_s21 }
  0x6a   :  { %s8357_s18 = scalar_lea.hbm %s8838_s6, 64 }
  0x6b   :  { %p8358_p6 = scmp.ne.s32.totalorder %s8838_s6, %s8357_s18  ;;  %p8361_p7 = scmp.lt.u32.totalorder %s8357_s18, %s8838_s6 }
  0x6d   :  { %p8363_p8 = pnand %p8361_p7, %p8358_p6 }
  0x6f   :  { %8366 = shalt.err (!%p8363_p8)
}
  0x70   :  { %s8367_s4 = scalar_lea.vmem %s78_s19, 64  ;;  %p8372_p10 = scmp.lt.s32.totalorder %s78_s19, %s78_s19 }
  0x71   :  { %p8368_p9 = scmp.ne.s32.totalorder %s78_s19, %s8367_s4  ;;  %p8373_p11 = scmp.lt.s32.totalorder %s8367_s4, %s8367_s4 }
  0x73   :  { %p8374_p12 = por %p8373_p11, %p8372_p10 }
  0x75   :  { %p8375_p13 = pnand %p8374_p12, %p8368_p9 }
  0x77   :  { %8378 = shalt.err (!%p8375_p13)
}
  0x78   :  { %80 = dma.hbm_to_vmem [thread:$0]  %s8838_s6, 64, %s78_s19, [#allocation8]  }
  0x79   :  { %s8379_s13 = scalar_lea.hbm %s8840_s8, 128 }
  0x7a   :  { %p8380_p0 = scmp.ne.s32.totalorder %s8840_s8, %s8379_s13  ;;  %p8383_p1 = scmp.lt.u32.totalorder %s8379_s13, %s8840_s8 }
  0x7c   :  { %p8385_p2 = pnand %p8383_p1, %p8380_p0 }
  0x7e   :  { %8388 = shalt.err (!%p8385_p2)
}
  0x7f   :  { %s8389_s16 = scalar_lea.vmem %s100_s21, 128  ;;  %p8394_p4 = scmp.lt.s32.totalorder %s100_s21, %s100_s21 }
  0x80   :  { %p8390_p3 = scmp.ne.s32.totalorder %s100_s21, %s8389_s16  ;;  %p8395_p5 = scmp.lt.s32.totalorder %s8389_s16, %s8389_s16 }
  0x82   :  { %p8396_p6 = por %p8395_p5, %p8394_p4 }
  0x84   :  { %p8397_p7 = pnand %p8396_p6, %p8390_p3 }
  0x86   :  { %8400 = shalt.err (!%p8397_p7)
}
  0x87   :  { %102 = dma.hbm_to_vmem [thread:$0]  %s8840_s8, 128, %s100_s21, [#allocation11]  }
  0x88   :  { %s8449_s2 = smov [#allocation15]   ;;  %s8401_s5 = scalar_lea.hbm %s8842_s10, 112 }
  0x89   :  { %s121_s29 = sshll.u32 %s8449_s2, 4  ;;  %p8402_p8 = scmp.ne.s32.totalorder %s8842_s10, %s8401_s5  ;;  %s122_s29 = int_to_ptr.vmem [resolvable:$true] %s121_s29 }
  0x8a   :  { %p8405_p9 = scmp.lt.u32.totalorder %s8401_s5, %s8842_s10 }
  0x8c   :  { %p8407_p10 = pnand %p8405_p9, %p8402_p8 }
  0x8e   :  { %8410 = shalt.err (!%p8407_p10)
}
  0x8f   :  { %s8411_s25 = scalar_lea.vmem %s122_s29, 112  ;;  %s8415_s8 = scalar_lea.vmem %s122_s29, 128 }
  0x90   :  { %p8412_p11 = scmp.ne.s32.totalorder %s122_s29, %s8411_s25  ;;  %p8416_p12 = scmp.lt.s32.totalorder %s122_s29, %s122_s29 }
  0x91   :  { %p8417_p13 = scmp.lt.s32.totalorder %s8415_s8, %s8411_s25 }
  0x93   :  { %p8418_p0 = por %p8417_p13, %p8416_p12 }
  0x95   :  { %p8419_p1 = pnand %p8418_p0, %p8412_p11 }
  0x97   :  { %8422 = shalt.err (!%p8419_p1)
}
  0x98   :  { %124 = dma.hbm_to_vmem [thread:$0]  %s8842_s10, 112, %s122_s29, [#allocation14]  }
  0x99   :  { %8423 = dma.done.wait [#allocation3], 2048  }
  0x9a   :  { %8424 = vsyncadd [#allocation3], 4294965248 }
  0x9b   :  { %8425 = dma.done.wait [#allocation5], 2080  }
  0x9c   :  { %8426 = vsyncadd [#allocation5], 4294965216 }
  0x9d   :  { %8427 = dma.done.wait [#allocation8], 8256  }
  0x9e   :  { %8428 = vsyncadd [#allocation8], 4294959040 }
  0x9f   :  { %8429 = dma.done.wait [#allocation11], 32896  }
  0xa0   :  { %8430 = vsyncadd [#allocation11], 4294934400 }
  0xa1   :  { %8431 = dma.done.wait [#allocation14], 57456  }
  0xa2   :  { %8432 = vsyncadd [#allocation14], 4294909840  ;;  %v8450_v0 = vmov 0   ;;  %v154_v1 = vld [vmem:[%s8833_s1] sm:$0xff]  ;;  %v7433_v6 = vld [vmem:[#allocation2 + $0x14] ss:$8 sps:$4 sm:$0xff]   ;;  %v155_v61 = vlaneseq }
  0xa3   :  { %7426 = vset.pattern.permute.xlu0 %v8450_v0  ;;  %429 = vmatprep.mubr.bf16.mxu1 %v8450_v0  ;;  %v7427_v2 = vld [vmem:[#allocation2 + $0x4] ss:$8 sps:$4 sm:$0xff]   ;;  %v7429_v3 = vld [vmem:[#allocation2] ss:$8 sps:$4 sm:$0xff]   ;;  %v7435_v7 = vld [vmem:[#allocation2 + $0x10] ss:$8 sps:$4 sm:$0xff]  }
  0xa4   :  { %308 = vmatprep.mubr.bf16.mxu0 %v8450_v0  ;;  %158 = vperm.xlu0 %7426, %v154_v1   ;;  %v7430_v4 = vld [vmem:[#allocation4 + $0x4] ss:$8 sps:$4 sm:$0xff]   ;;  %v7432_v5 = vld [vmem:[#allocation4] ss:$8 sps:$4 sm:$0xff]   ;;  %v7436_v8 = vld [vmem:[#allocation4 + $0x14] ss:$8 sps:$4 sm:$0xff]  }
  0xa5   :  { %397 = vmatprep.subr.bf16.mxu1 %v7427_v2  ;;  %276 = vmatprep.subr.bf16.mxu0 %v7430_v4  ;;  %v7438_v9 = vld [vmem:[#allocation4 + $0x10] ss:$8 sps:$4 sm:$0xff]   ;;  %v7439_v10 = vld [vmem:[#allocation2 + $0x24] ss:$8 sps:$4 sm:$0xff]   ;;  %v7441_v12 = vld [vmem:[#allocation2 + $0x20] ss:$8 sps:$4 sm:$0xff]  }
  0xa6   :  { %398 = vmatpush1.bf16.msra.mxu1 %v7429_v3  ;;  %277 = vmatpush1.bf16.msra.mxu0 %v7432_v5  ;;  %v7442_v11 = vld [vmem:[#allocation4 + $0x24] ss:$8 sps:$4 sm:$0xff]   ;;  %v7444_v13 = vld [vmem:[#allocation4 + $0x20] ss:$8 sps:$4 sm:$0xff]   ;;  %v7445_v14 = vld [vmem:[#allocation2 + $0x34] ss:$8 sps:$4 sm:$0xff]  }
  0xa7   :  { %399 = vmatprep.subr.bf16.mxu1 %v7433_v6  ;;  %278 = vmatprep.subr.bf16.mxu0 %v7436_v8  ;;  %v7448_v15 = vld [vmem:[#allocation4 + $0x34] ss:$8 sps:$4 sm:$0xff]   ;;  %v7447_v16 = vld [vmem:[#allocation2 + $0x30] ss:$8 sps:$4 sm:$0xff]   ;;  %v7451_v18 = vld [vmem:[#allocation2 + $0x44] ss:$8 sps:$4 sm:$0xff]  }
  0xa8   :  { %v7450_v17 = vld [vmem:[#allocation4 + $0x30] ss:$8 sps:$4 sm:$0xff]   ;;  %v7454_v19 = vld [vmem:[#allocation4 + $0x44] ss:$8 sps:$4 sm:$0xff]   ;;  %v7453_v20 = vld [vmem:[#allocation2 + $0x40] ss:$8 sps:$4 sm:$0xff]  }
  0xa9   :  { %v7456_v21 = vld [vmem:[#allocation4 + $0x40] ss:$8 sps:$4 sm:$0xff]   ;;  %v7457_v22 = vld [vmem:[#allocation2 + $0x54] ss:$8 sps:$4 sm:$0xff]   ;;  %v7459_v24 = vld [vmem:[#allocation2 + $0x50] ss:$8 sps:$4 sm:$0xff]  }
  0xaa   :  { %400 = vmatpush1.bf16.msra.mxu1 %v7435_v7  ;;  %279 = vmatpush1.bf16.msra.mxu0 %v7438_v9  ;;  %v7460_v23 = vld [vmem:[#allocation4 + $0x54] ss:$8 sps:$4 sm:$0xff]   ;;  %v7462_v25 = vld [vmem:[#allocation4 + $0x50] ss:$8 sps:$4 sm:$0xff]   ;;  %v7463_v26 = vld [vmem:[#allocation2 + $0x64] ss:$8 sps:$4 sm:$0xff]  }
  0xab   :  { %401 = vmatprep.subr.bf16.mxu1 %v7439_v10  ;;  %280 = vmatprep.subr.bf16.mxu0 %v7442_v11  ;;  %v7466_v27 = vld [vmem:[#allocation4 + $0x64] ss:$8 sps:$4 sm:$0xff]   ;;  %v7465_v28 = vld [vmem:[#allocation2 + $0x60] ss:$8 sps:$4 sm:$0xff]   ;;  %v7469_v30 = vld [vmem:[#allocation2 + $0x74] ss:$8 sps:$4 sm:$0xff]  }
  0xac   :  { %v7468_v29 = vld [vmem:[#allocation4 + $0x60] ss:$8 sps:$4 sm:$0xff]   ;;  %v7472_v31 = vld [vmem:[#allocation4 + $0x74] ss:$8 sps:$4 sm:$0xff]   ;;  %v7471_v32 = vld [vmem:[#allocation2 + $0x70] ss:$8 sps:$4 sm:$0xff]  }
  0xad   :  { %v7474_v33 = vld [vmem:[#allocation4 + $0x70] ss:$8 sps:$4 sm:$0xff]   ;;  %v153_v35 = vld [vmem:[%s8832_s0] sm:$0xf]  ;;  %v156_v62 = vand.u32 127, %v155_v61 }
  0xae   :  { %402 = vmatpush1.bf16.msra.mxu1 %v7441_v12  ;;  %281 = vmatpush1.bf16.msra.mxu0 %v7444_v13  ;;  %v7477_v34 = vld [vmem:[#allocation7 + $0x4] ss:$16 sps:$4 sm:$0xff]   ;;  %v7475_v36 = vld [vmem:[#allocation7] ss:$16 sps:$4 sm:$0xff]   ;;  %v8451_v0 = vmov 1.0|1.0  }
  0xaf   :  { %403 = vmatprep.subr.bf16.mxu1 %v7445_v14  ;;  %282 = vmatprep.subr.bf16.mxu0 %v7448_v15  ;;  %v7480_v37 = vld [vmem:[#allocation7 + $0x24] ss:$16 sps:$4 sm:$0xff]   ;;  %v7478_v38 = vld [vmem:[#allocation7 + $0x20] ss:$16 sps:$4 sm:$0xff]   ;;  %v7525_v7 = vld [vmem:[#allocation7 + $0xc] ss:$16 sps:$4 sm:$0xff]  }
  0xb0   :  { %v7483_v39 = vld [vmem:[#allocation7 + $0x44] ss:$16 sps:$4 sm:$0xff]   ;;  %v7481_v40 = vld [vmem:[#allocation7 + $0x40] ss:$16 sps:$4 sm:$0xff]  }
  0xb1   :  { %v7486_v41 = vld [vmem:[#allocation7 + $0x64] ss:$16 sps:$4 sm:$0xff]   ;;  %v7484_v42 = vld [vmem:[#allocation7 + $0x60] ss:$16 sps:$4 sm:$0xff]  }
  0xb2   :  { %404 = vmatpush1.bf16.msra.mxu1 %v7447_v16  ;;  %283 = vmatpush1.bf16.msra.mxu0 %v7450_v17  ;;  %v7489_v43 = vld [vmem:[#allocation7 + $0x84] ss:$16 sps:$4 sm:$0xff]   ;;  %v7487_v44 = vld [vmem:[#allocation7 + $0x80] ss:$16 sps:$4 sm:$0xff]  }
  0xb3   :  { %405 = vmatprep.subr.bf16.mxu1 %v7451_v18  ;;  %284 = vmatprep.subr.bf16.mxu0 %v7454_v19  ;;  %v7492_v45 = vld [vmem:[#allocation7 + $0xa4] ss:$16 sps:$4 sm:$0xff]   ;;  %v7490_v46 = vld [vmem:[#allocation7 + $0xa0] ss:$16 sps:$4 sm:$0xff]  }
  0xb4   :  { %v7495_v47 = vld [vmem:[#allocation7 + $0xc4] ss:$16 sps:$4 sm:$0xff]   ;;  %v7493_v48 = vld [vmem:[#allocation7 + $0xc0] ss:$16 sps:$4 sm:$0xff]  }
  0xb5   :  { %v7498_v49 = vld [vmem:[#allocation7 + $0xe4] ss:$16 sps:$4 sm:$0xff]   ;;  %v7496_v50 = vld [vmem:[#allocation7 + $0xe0] ss:$16 sps:$4 sm:$0xff]  }
  0xb6   :  { %406 = vmatpush1.bf16.msra.mxu1 %v7453_v20  ;;  %285 = vmatpush1.bf16.msra.mxu0 %v7456_v21  ;;  %v7501_v51 = vld [vmem:[#allocation7 + $0x104] ss:$16 sps:$4 sm:$0xff]   ;;  %v7499_v52 = vld [vmem:[#allocation7 + $0x100] ss:$16 sps:$4 sm:$0xff]  }
  0xb7   :  { %407 = vmatprep.subr.bf16.mxu1 %v7457_v22  ;;  %286 = vmatprep.subr.bf16.mxu0 %v7460_v23  ;;  %v7504_v53 = vld [vmem:[#allocation7 + $0x124] ss:$16 sps:$4 sm:$0xff]   ;;  %v7502_v54 = vld [vmem:[#allocation7 + $0x120] ss:$16 sps:$4 sm:$0xff]  }
  0xb8   :  { %v7507_v55 = vld [vmem:[#allocation7 + $0x144] ss:$16 sps:$4 sm:$0xff]   ;;  %v7505_v56 = vld [vmem:[#allocation7 + $0x140] ss:$16 sps:$4 sm:$0xff]  }
  0xb9   :  { %v7510_v57 = vld [vmem:[#allocation7 + $0x164] ss:$16 sps:$4 sm:$0xff]   ;;  %v7508_v58 = vld [vmem:[#allocation7 + $0x160] ss:$16 sps:$4 sm:$0xff]  }
  0xba   :  { %408 = vmatpush1.bf16.msra.mxu1 %v7459_v24  ;;  %287 = vmatpush1.bf16.msra.mxu0 %v7462_v25  ;;  %v7513_v59 = vld [vmem:[#allocation7 + $0x184] ss:$16 sps:$4 sm:$0xff]   ;;  %v7511_v60 = vld [vmem:[#allocation7 + $0x180] ss:$16 sps:$4 sm:$0xff]  }
  0xbb   :  { %409 = vmatprep.subr.bf16.mxu1 %v7463_v26  ;;  %288 = vmatprep.subr.bf16.mxu0 %v7466_v27  ;;  %v7516_v1 = vld [vmem:[#allocation7 + $0x1a4] ss:$16 sps:$4 sm:$0xff]   ;;  %v7514_v2 = vld [vmem:[#allocation7 + $0x1a0] ss:$16 sps:$4 sm:$0xff]  }
  0xbc   :  { %v7519_v3 = vld [vmem:[#allocation7 + $0x1c4] ss:$16 sps:$4 sm:$0xff]   ;;  %v7517_v4 = vld [vmem:[#allocation7 + $0x1c0] ss:$16 sps:$4 sm:$0xff]  }
  0xbd   :  { %v7522_v5 = vld [vmem:[#allocation7 + $0x1e4] ss:$16 sps:$4 sm:$0xff]   ;;  %v7520_v6 = vld [vmem:[#allocation7 + $0x1e0] ss:$16 sps:$4 sm:$0xff]  }
  0xbe   :  { %410 = vmatpush1.bf16.msra.mxu1 %v7465_v28  ;;  %289 = vmatpush1.bf16.msra.mxu0 %v7468_v29  ;;  %v958_v12 = vld [vmem:[#allocation10] sm:$0xff] }
  0xbf   :  { %411 = vmatprep.subr.bf16.mxu1 %v7469_v30  ;;  %290 = vmatprep.subr.bf16.mxu0 %v7472_v31  ;;  %v962_v13 = vld [vmem:[#allocation10 + $0x20] sm:$0xff] }
  0xc0   :  { %v6541_v14 = vcombine.low %v958_v12, %v962_v13  ;;  %v6542_v15 = vcombine.high %v958_v12, %v962_v13  ;;  %v966_v16 = vld [vmem:[#allocation10 + $0x40] sm:$0xff] }
  0xc1   :  { %v970_v17 = vld [vmem:[#allocation10 + $0x60] sm:$0xff] }
  0xc2   :  { %412 = vmatpush1.bf16.msra.mxu1 %v7471_v32  ;;  %291 = vmatpush1.bf16.msra.mxu0 %v7474_v33  ;;  %v6550_v18 = vcombine.high %v966_v16, %v970_v17  ;;  %v6549_v19 = vcombine.low %v966_v16, %v970_v17  ;;  %v974_v20 = vld [vmem:[#allocation10 + $0x80] sm:$0xff] }
  0xc3   :  { %864 = vmatprep.subr.bf16.mxu1 %v7477_v34  ;;  %2536 = vmatprep.subr.bf16.mxu0 %v6542_v15  ;;  %v978_v21 = vld [vmem:[#allocation10 + $0xa0] sm:$0xff] }
  0xc4   :  { %v6558_v22 = vcombine.high %v974_v20, %v978_v21  ;;  %v6557_v23 = vcombine.low %v974_v20, %v978_v21  ;;  %v982_v24 = vld [vmem:[#allocation10 + $0xc0] sm:$0xff] }
  0xc5   :  { %430 = vmatmul.mubr.bf16.vlgmr.msra.gmra.mrb[0].mxu1 %v153_v35  ;;  %v986_v25 = vld [vmem:[#allocation10 + $0xe0] sm:$0xff] }
  0xc6   :  { %865 = vmatpush1.bf16.msra.mxu1 %v7475_v36  ;;  %v6566_v26 = vcombine.high %v982_v24, %v986_v25  ;;  %v6565_v27 = vcombine.low %v982_v24, %v986_v25  ;;  %v990_v28 = vld [vmem:[#allocation10 + $0x100] sm:$0xff] }
  0xc7   :  { %866 = vmatprep.subr.bf16.mxu1 %v7480_v37  ;;  %v994_v29 = vld [vmem:[#allocation10 + $0x120] sm:$0xff] }
  0xc8   :  { %v6574_v30 = vcombine.high %v990_v28, %v994_v29  ;;  %v6573_v31 = vcombine.low %v990_v28, %v994_v29  ;;  %v998_v32 = vld [vmem:[#allocation10 + $0x140] sm:$0xff]  ;;  %v7534_v29 = vld [vmem:[#allocation7 + $0x6c] ss:$16 sps:$4 sm:$0xff]  }
  0xc9   :  { %v1002_v33 = vld [vmem:[#allocation10 + $0x160] sm:$0xff] }
  0xca   :  { %867 = vmatpush1.bf16.msra.mxu1 %v7478_v38  ;;  %v6582_v34 = vcombine.high %v998_v32, %v1002_v33  ;;  %v6581_v35 = vcombine.low %v998_v32, %v1002_v33  ;;  %v1006_v36 = vld [vmem:[#allocation10 + $0x180] sm:$0xff]  ;;  %v7540_v33 = vld [vmem:[#allocation7 + $0xac] ss:$16 sps:$4 sm:$0xff]  }
  0xcb   :  { %868 = vmatprep.subr.bf16.mxu1 %v7483_v39  ;;  %v1010_v37 = vld [vmem:[#allocation10 + $0x1a0] sm:$0xff] }
  0xcc   :  { %v6590_v38 = vcombine.high %v1006_v36, %v1010_v37  ;;  %v6589_v39 = vcombine.low %v1006_v36, %v1010_v37  ;;  %v7523_v25 = vld [vmem:[#allocation7 + $0x8] ss:$16 sps:$4 sm:$0xff]   ;;  %v7546_v37 = vld [vmem:[#allocation7 + $0xec] ss:$16 sps:$4 sm:$0xff]  }
  0xcd   :  { %v7529_v28 = vld [vmem:[#allocation7 + $0x48] ss:$16 sps:$4 sm:$0xff]  }
  0xce   :  { %869 = vmatpush1.bf16.msra.mxu1 %v7481_v40  ;;  %v1014_v40 = vld [vmem:[#allocation10 + $0x1c0] sm:$0xff] }
  0xcf   :  { %870 = vmatprep.subr.bf16.mxu1 %v7486_v41  ;;  %v1018_v41 = vld [vmem:[#allocation10 + $0x1e0] sm:$0xff] }
  0xd0   :  { %v7535_v32 = vld [vmem:[#allocation7 + $0x88] ss:$16 sps:$4 sm:$0xff]  }
  0xd1   :  { %v7541_v36 = vld [vmem:[#allocation7 + $0xc8] ss:$16 sps:$4 sm:$0xff]  }
  0xd2   :  { %871 = vmatpush1.bf16.msra.mxu1 %v7484_v42  ;;  %v6598_v42 = vcombine.high %v1014_v40, %v1018_v41 }
  0xd3   :  { %872 = vmatprep.subr.bf16.mxu1 %v7489_v43  ;;  %v6597_v43 = vcombine.low %v1014_v40, %v1018_v41  ;;  %v7547_v40 = vld [vmem:[#allocation7 + $0x108] ss:$16 sps:$4 sm:$0xff]   ;;  %v7552_v41 = vld [vmem:[#allocation7 + $0x12c] ss:$16 sps:$4 sm:$0xff]  }
  0xd6   :  { %873 = vmatpush1.bf16.msra.mxu1 %v7487_v44  ;;  %v1022_v44 = vld [vmem:[#allocation10 + $0x200] sm:$0xff] }
  0xd7   :  { %874 = vmatprep.subr.bf16.mxu1 %v7492_v45  ;;  %v1026_v45 = vld [vmem:[#allocation10 + $0x220] sm:$0xff] }
  0xda   :  { %875 = vmatpush1.bf16.msra.mxu1 %v7490_v46  ;;  %v6606_v46 = vcombine.high %v1022_v44, %v1026_v45 }
  0xdb   :  { %876 = vmatprep.subr.bf16.mxu1 %v7495_v47  ;;  %v6605_v47 = vcombine.low %v1022_v44, %v1026_v45  ;;  %v7553_v44 = vld [vmem:[#allocation7 + $0x148] ss:$16 sps:$4 sm:$0xff]   ;;  %v7558_v45 = vld [vmem:[#allocation7 + $0x16c] ss:$16 sps:$4 sm:$0xff]  }
  0xde   :  { %877 = vmatpush1.bf16.msra.mxu1 %v7493_v48  ;;  %v1030_v48 = vld [vmem:[#allocation10 + $0x240] sm:$0xff] }
  0xdf   :  { %878 = vmatprep.subr.bf16.mxu1 %v7498_v49  ;;  %v1034_v49 = vld [vmem:[#allocation10 + $0x260] sm:$0xff] }
  0xe2   :  { %879 = vmatpush1.bf16.msra.mxu1 %v7496_v50  ;;  %v6614_v50 = vcombine.high %v1030_v48, %v1034_v49 }
  0xe3   :  { %880 = vmatprep.subr.bf16.mxu1 %v7501_v51  ;;  %v6613_v51 = vcombine.low %v1030_v48, %v1034_v49  ;;  %v7559_v48 = vld [vmem:[#allocation7 + $0x188] ss:$16 sps:$4 sm:$0xff]   ;;  %v7564_v49 = vld [vmem:[#allocation7 + $0x1ac] ss:$16 sps:$4 sm:$0xff]  }
  0xe6   :  { %881 = vmatpush1.bf16.msra.mxu1 %v7499_v52  ;;  %v1038_v52 = vld [vmem:[#allocation10 + $0x280] sm:$0xff] }
  0xe7   :  { %882 = vmatprep.subr.bf16.mxu1 %v7504_v53  ;;  %v1042_v53 = vld [vmem:[#allocation10 + $0x2a0] sm:$0xff] }
  0xea   :  { %883 = vmatpush1.bf16.msra.mxu1 %v7502_v54  ;;  %v6622_v54 = vcombine.high %v1038_v52, %v1042_v53 }
  0xeb   :  { %884 = vmatprep.subr.bf16.mxu1 %v7507_v55  ;;  %v6621_v55 = vcombine.low %v1038_v52, %v1042_v53  ;;  %v7565_v52 = vld [vmem:[#allocation7 + $0x1c8] ss:$16 sps:$4 sm:$0xff]   ;;  %v7570_v53 = vld [vmem:[#allocation7 + $0x1ec] ss:$16 sps:$4 sm:$0xff]  }
  0xee   :  { %885 = vmatpush1.bf16.msra.mxu1 %v7505_v56  ;;  %v1046_v56 = vld [vmem:[#allocation10 + $0x2c0] sm:$0xff] }
  0xef   :  { %886 = vmatprep.subr.bf16.mxu1 %v7510_v57  ;;  %v1050_v57 = vld [vmem:[#allocation10 + $0x2e0] sm:$0xff] }
  0xf2   :  { %887 = vmatpush1.bf16.msra.mxu1 %v7508_v58  ;;  %v8645_v58 = vshrl.u32 %v155_v61, 7  ;;  %v1066_v61 = vld [vmem:[#allocation10 + $0x360] sm:$0xff] }
  0xf3   :  { %888 = vmatprep.subr.bf16.mxu1 %v7513_v59  ;;  %v6630_v59 = vcombine.high %v1046_v56, %v1050_v57 }
  0xf6   :  { %889 = vmatpush1.bf16.msra.mxu1 %v7511_v60  ;;  %v6629_v60 = vcombine.low %v1046_v56, %v1050_v57  ;;  %v7568_v56 = vld [vmem:[#allocation7 + $0x1e8] ss:$16 sps:$4 sm:$0xff]  }
  0xf7   :  { %890 = vmatprep.subr.bf16.mxu1 %v7516_v1 }
  0xfa   :  { %891 = vmatpush1.bf16.msra.mxu1 %v7514_v2  ;;  %v438_v2 = vld [vmem:[#allocation6] sm:$0x3] }
  0xfb   :  { %892 = vmatprep.subr.bf16.mxu1 %v7519_v3  ;;  %v8651_v3 = vsub.s32 1, %v8645_v58 }
  0xfe   :  { %893 = vmatpush1.bf16.msra.mxu1 %v7517_v4 }
  0xff   :  { %894 = vmatprep.subr.bf16.mxu1 %v7522_v5  ;;  %v1062_v5 = vld [vmem:[#allocation10 + $0x340] sm:$0xff] }
 0x102   :  { %895 = vmatpush1.bf16.msra.mxu1 %v7520_v6 }
 0x103   :  { %905 = vmatprep.subr.bf16.mxu1 %v7525_v7  ;;  %v6646_v7 = vcombine.high %v1062_v5, %v1066_v61 }
 0x123   :  { %v159_v63 = vpop.permute.xlu0 %158 }
 0x124   :  { %vm160_vm0 = vcmp.eq.s32.totalorder %v159_v63, %v156_v62  ;;  %v1054_v62 = vld [vmem:[#allocation10 + $0x300] sm:$0xff] }
 0x125   :  { %vm6459_vm1 = vmpackc.low %vm160_vm0, %vm160_vm0  ;;  %v1058_v63 = vld [vmem:[#allocation10 + $0x320] sm:$0xff] }
 0x126   :  { %6460 = vmatmul.mubr.msk.bf16.vlgmr.msra.gmra.mrb[0].mxu0 %vm6459_vm1, %v8451_v0  ;;  %v8648_v0 = vsub.s32 0, %v8645_v58  ;;  %v6638_v1 = vcombine.high %v1054_v62, %v1058_v63  ;;  %v6637_v4 = vcombine.low %v1054_v62, %v1058_v63 }
 0x127   :  { %2537 = vmatpush1.bf16.msra.mxu0 %v6541_v14  ;;  %v6645_v14 = vcombine.low %v1062_v5, %v1066_v61  ;;  %v983_v61 = vld [vmem:[#allocation10 + $0xc8] sm:$0xff] }
 0x128   :  { %2538 = vmatprep.subr.bf16.mxu0 %v6550_v18  ;;  %v443_v6 = vrot.slane %v438_v2, %v8648_v0 }
 0x12b   :  { %2539 = vmatpush1.bf16.msra.mxu0 %v6549_v19 }
 0x12c   :  { %2540 = vmatprep.subr.bf16.mxu0 %v6558_v22 }
 0x12f   :  { %2541 = vmatpush1.bf16.msra.mxu0 %v6557_v23 }
 0x130   :  { %2542 = vmatprep.subr.bf16.mxu0 %v6566_v26 }
 0x133   :  { %2543 = vmatpush1.bf16.msra.mxu0 %v6565_v27  ;;  %v7531_v27 = vld [vmem:[#allocation7 + $0x4c] ss:$16 sps:$4 sm:$0xff]  }
 0x134   :  { %2544 = vmatprep.subr.bf16.mxu0 %v6574_v30  ;;  %v7532_v30 = vld [vmem:[#allocation7 + $0x68] ss:$16 sps:$4 sm:$0xff]  }
 0x137   :  { %2545 = vmatpush1.bf16.msra.mxu0 %v6573_v31  ;;  %v7537_v31 = vld [vmem:[#allocation7 + $0x8c] ss:$16 sps:$4 sm:$0xff]  }
 0x138   :  { %2546 = vmatprep.subr.bf16.mxu0 %v6582_v34  ;;  %v7538_v34 = vld [vmem:[#allocation7 + $0xa8] ss:$16 sps:$4 sm:$0xff]  }
 0x13b   :  { %2547 = vmatpush1.bf16.msra.mxu0 %v6581_v35  ;;  %v7543_v35 = vld [vmem:[#allocation7 + $0xcc] ss:$16 sps:$4 sm:$0xff]  }
 0x13c   :  { %2548 = vmatprep.subr.bf16.mxu0 %v6590_v38  ;;  %v7544_v38 = vld [vmem:[#allocation7 + $0xe8] ss:$16 sps:$4 sm:$0xff]  }
 0x13f   :  { %2549 = vmatpush1.bf16.msra.mxu0 %v6589_v39  ;;  %v7549_v39 = vld [vmem:[#allocation7 + $0x10c] ss:$16 sps:$4 sm:$0xff]  }
 0x140   :  { %2550 = vmatprep.subr.bf16.mxu0 %v6598_v42  ;;  %v7550_v42 = vld [vmem:[#allocation7 + $0x128] ss:$16 sps:$4 sm:$0xff]  }
 0x143   :  { %2551 = vmatpush1.bf16.msra.mxu0 %v6597_v43  ;;  %v7555_v43 = vld [vmem:[#allocation7 + $0x14c] ss:$16 sps:$4 sm:$0xff]  }
 0x144   :  { %2552 = vmatprep.subr.bf16.mxu0 %v6606_v46  ;;  %v7556_v46 = vld [vmem:[#allocation7 + $0x168] ss:$16 sps:$4 sm:$0xff]  }
 0x147   :  { %2553 = vmatpush1.bf16.msra.mxu0 %v6605_v47  ;;  %v7561_v47 = vld [vmem:[#allocation7 + $0x18c] ss:$16 sps:$4 sm:$0xff]  }
 0x148   :  { %2554 = vmatprep.subr.bf16.mxu0 %v6614_v50  ;;  %v7562_v50 = vld [vmem:[#allocation7 + $0x1a8] ss:$16 sps:$4 sm:$0xff]  }
 0x14b   :  { %2555 = vmatpush1.bf16.msra.mxu0 %v6613_v51  ;;  %v7567_v51 = vld [vmem:[#allocation7 + $0x1cc] ss:$16 sps:$4 sm:$0xff]  }
 0x14c   :  { %2556 = vmatprep.subr.bf16.mxu0 %v6622_v54  ;;  %v959_v54 = vld [vmem:[#allocation10 + $0x8] sm:$0xff] }
 0x14f   :  { %2557 = vmatpush1.bf16.msra.mxu0 %v6621_v55  ;;  %v963_v55 = vld [vmem:[#allocation10 + $0x28] sm:$0xff] }
 0x150   :  { %2558 = vmatprep.subr.bf16.mxu0 %v6630_v59  ;;  %v6544_v57 = vcombine.high %v959_v54, %v963_v55  ;;  %v967_v59 = vld [vmem:[#allocation10 + $0x48] sm:$0xff]  ;;  %v6543_v62 = vcombine.low %v959_v54, %v963_v55 }
 0x153   :  { %2559 = vmatpush1.bf16.msra.mxu0 %v6629_v60  ;;  %v971_v60 = vld [vmem:[#allocation10 + $0x68] sm:$0xff] }
 0x154   :  { %2560 = vmatprep.subr.bf16.mxu0 %v6638_v1  ;;  %v6552_v63 = vcombine.high %v967_v59, %v971_v60  ;;  %v975_v1 = vld [vmem:[#allocation10 + $0x88] sm:$0xff] }
 0x157   :  { %2561 = vmatpush1.bf16.msra.mxu0 %v6637_v4  ;;  %v6551_v4 = vcombine.low %v967_v59, %v971_v60 }
 0x158   :  { %2562 = vmatprep.subr.bf16.mxu0 %v6646_v7 }
 0x15b   :  { %2563 = vmatpush1.bf16.msra.mxu0 %v6645_v14 }
 0x198   :  { %v8640_v8 = vpop.f32.mrb[0].mxu1 }
 0x199   :  { %v8642_v9 = vpop.f32.mrb[1].mxu1 }
 0x19a   :  { %v435_v10 = vpop.f32.mrb[2].mxu1 }
 0x19b   :  { %v436_v11 = vpop.f32.mrb[3].mxu1 }
 0x19c   :  { %v447_v11 = vrot.slane %v438_v2, %v8651_v3  ;;  %v979_v2 = vld [vmem:[#allocation10 + $0xa8] sm:$0xff] }
 0x19d   :  { %v6560_v5 = vcombine.high %v975_v1, %v979_v2  ;;  %v6559_v7 = vcombine.low %v975_v1, %v979_v2 }
 0x1f9   :  { %v310_v10 = vpop.f32.mrb[0].mxu0 }
 0x1fa   :  { %v432_v12 = vadd.f32 %v8640_v8, %v310_v10  ;;  %v312_v13 = vpop.f32.mrb[1].mxu0  ;;  %v7528_v8 = vld [vmem:[#allocation7 + $0x2c] ss:$16 sps:$4 sm:$0xff]  }
 0x1fb   :  { %v434_v15 = vadd.f32 %v8642_v9, %v312_v13  ;;  %v314_v16 = vpop.f32.mrb[2].mxu0  ;;  %v7526_v9 = vld [vmem:[#allocation7 + $0x28] ss:$16 sps:$4 sm:$0xff]  }
 0x1fc   :  { %v450_v17 = vadd.f32 %v443_v6, %v432_v12  ;;  %v315_v18 = vpop.f32.mrb[3].mxu0  ;;  %v987_v6 = vld [vmem:[#allocation10 + $0xe8] sm:$0xff] }
 0x1fd   :  { %v451_v19 = vadd.f32 %v447_v11, %v434_v15  ;;  %v6568_v10 = vcombine.high %v983_v61, %v987_v6  ;;  %v991_v11 = vld [vmem:[#allocation10 + $0x108] sm:$0xff]  ;;  %v6567_v13 = vcombine.low %v983_v61, %v987_v6 }
 0x1fe   :  { %v452_v20 = vmul.f32 0.2, %v450_v17  ;;  %v995_v12 = vld [vmem:[#allocation10 + $0x128] sm:$0xff] }
 0x1ff   :  { %v453_v21 = vmul.f32 0.2, %v451_v19  ;;  %v6576_v14 = vcombine.high %v991_v11, %v995_v12  ;;  %v999_v15 = vld [vmem:[#allocation10 + $0x148] sm:$0xff] }
 0x200   :  { %v454_v22 = vmax.f32 %v450_v17, %v452_v20  ;;  %v1003_v16 = vld [vmem:[#allocation10 + $0x168] sm:$0xff]  ;;  %v6575_v17 = vcombine.low %v991_v11, %v995_v12 }
 0x201   :  { %v455_v23 = vmax.f32 %v451_v19, %v453_v21  ;;  %v6584_v18 = vcombine.high %v999_v15, %v1003_v16  ;;  %v1007_v19 = vld [vmem:[#allocation10 + $0x188] sm:$0xff]  ;;  %v6583_v21 = vcombine.low %v999_v15, %v1003_v16  ;;  %v8677_v15 = vld [vmem:[#allocation9] sm:$0xf] }
 0x202   :  { %v8657_v26 = vpack.c.bf16 %v454_v22, %v454_v22  ;;  %v1011_v20 = vld [vmem:[#allocation10 + $0x1a8] sm:$0xff]  ;;  %v527_v16 = vrot.slane %v8677_v15, %v8648_v0 }
 0x203   :  { %v457_v24 = vpack.c.bf16 %v455_v23, %v455_v23  ;;  %v6592_v22 = vcombine.high %v1007_v19, %v1011_v20  ;;  %v1015_v23 = vld [vmem:[#allocation10 + $0x1c8] sm:$0xff] }
 0x205   :  { %896 = vmatprep.mubr.bf16.mxu1 %v457_v24 }
 0x206   :  { %897 = vmatmul.mubr.bf16.vlgmr.msra.gmra.mrb[4].mxu1 %v8657_v26 }
 0x207   :  { %906 = vmatpush1.bf16.msra.mxu1 %v7523_v25  ;;  %937 = vmatprep.mubr.bf16.mxu1 %v457_v24  ;;  %v1019_v24 = vld [vmem:[#allocation10 + $0x1e8] sm:$0xff]  ;;  %v1070_v25 = vld [vmem:[#allocation10 + $0x380] sm:$0xff] }
 0x208   :  { %907 = vmatprep.subr.bf16.mxu1 %v7528_v8 }
 0x20b   :  { %908 = vmatpush1.bf16.msra.mxu1 %v7526_v9  ;;  %v6591_v9 = vcombine.low %v1007_v19, %v1011_v20 }
 0x20c   :  { %909 = vmatprep.subr.bf16.mxu1 %v7531_v27 }
 0x20f   :  { %910 = vmatpush1.bf16.msra.mxu1 %v7529_v28  ;;  %v6600_v28 = vcombine.high %v1015_v23, %v1019_v24 }
 0x210   :  { %911 = vmatprep.subr.bf16.mxu1 %v7534_v29  ;;  %v1023_v29 = vld [vmem:[#allocation10 + $0x208] sm:$0xff] }
 0x213   :  { %912 = vmatpush1.bf16.msra.mxu1 %v7532_v30  ;;  %v1027_v30 = vld [vmem:[#allocation10 + $0x228] sm:$0xff] }
 0x214   :  { %913 = vmatprep.subr.bf16.mxu1 %v7537_v31  ;;  %v1078_v31 = vld [vmem:[#allocation10 + $0x3c0] sm:$0xff] }
 0x217   :  { %914 = vmatpush1.bf16.msra.mxu1 %v7535_v32  ;;  %v1082_v32 = vld [vmem:[#allocation10 + $0x3e0] sm:$0xff] }
 0x218   :  { %915 = vmatprep.subr.bf16.mxu1 %v7540_v33  ;;  %v6662_v33 = vcombine.high %v1078_v31, %v1082_v32 }
 0x21b   :  { %916 = vmatpush1.bf16.msra.mxu1 %v7538_v34  ;;  %v6599_v34 = vcombine.low %v1015_v23, %v1019_v24 }
 0x21c   :  { %917 = vmatprep.subr.bf16.mxu1 %v7543_v35  ;;  %v6661_v35 = vcombine.low %v1078_v31, %v1082_v32 }
 0x21f   :  { %918 = vmatpush1.bf16.msra.mxu1 %v7541_v36  ;;  %v6608_v36 = vcombine.high %v1023_v29, %v1027_v30 }
 0x220   :  { %919 = vmatprep.subr.bf16.mxu1 %v7546_v37  ;;  %v1031_v37 = vld [vmem:[#allocation10 + $0x248] sm:$0xff] }
 0x223   :  { %920 = vmatpush1.bf16.msra.mxu1 %v7544_v38  ;;  %v1035_v38 = vld [vmem:[#allocation10 + $0x268] sm:$0xff] }
 0x224   :  { %921 = vmatprep.subr.bf16.mxu1 %v7549_v39  ;;  %v8661_v39 = vld [vmem:[#allocation10 + $0x400] sm:$0xff] }
 0x227   :  { %922 = vmatpush1.bf16.msra.mxu1 %v7547_v40  ;;  %v8663_v40 = vld [vmem:[#allocation10 + $0x420] sm:$0xff] }
 0x228   :  { %923 = vmatprep.subr.bf16.mxu1 %v7552_v41  ;;  %v8665_v41 = vld [vmem:[#allocation10 + $0x408] sm:$0xff] }
 0x22b   :  { %924 = vmatpush1.bf16.msra.mxu1 %v7550_v42  ;;  %v6670_v42 = vcombine.high %v8661_v39, %v8663_v40 }
 0x22c   :  { %925 = vmatprep.subr.bf16.mxu1 %v7555_v43  ;;  %v8669_v43 = vld [vmem:[#allocation10 + $0x428] sm:$0xff] }
 0x22f   :  { %926 = vmatpush1.bf16.msra.mxu1 %v7553_v44  ;;  %v6607_v44 = vcombine.low %v1023_v29, %v1027_v30  ;;  %v1099_v29 = vld [vmem:[#allocation10 + $0x468] sm:$0xff] }
 0x230   :  { %927 = vmatprep.subr.bf16.mxu1 %v7558_v45  ;;  %v6669_v45 = vcombine.low %v8661_v39, %v8663_v40 }
 0x233   :  { %928 = vmatpush1.bf16.msra.mxu1 %v7556_v46  ;;  %v6671_v46 = vcombine.low %v8665_v41, %v8669_v43 }
 0x234   :  { %929 = vmatprep.subr.bf16.mxu1 %v7561_v47  ;;  %v6616_v47 = vcombine.high %v1031_v37, %v1035_v38 }
 0x237   :  { %930 = vmatpush1.bf16.msra.mxu1 %v7559_v48  ;;  %v1039_v48 = vld [vmem:[#allocation10 + $0x288] sm:$0xff] }
 0x238   :  { %931 = vmatprep.subr.bf16.mxu1 %v7564_v49  ;;  %v1043_v49 = vld [vmem:[#allocation10 + $0x2a8] sm:$0xff] }
 0x239   :  { %v6623_v54 = vcombine.low %v1039_v48, %v1043_v49 }
 0x23b   :  { %932 = vmatpush1.bf16.msra.mxu1 %v7562_v50  ;;  %v6615_v50 = vcombine.low %v1031_v37, %v1035_v38  ;;  %v1107_v37 = vld [vmem:[#allocation10 + $0x4a8] sm:$0xff] }
 0x23c   :  { %933 = vmatprep.subr.bf16.mxu1 %v7567_v51  ;;  %v6624_v51 = vcombine.high %v1039_v48, %v1043_v49  ;;  %v1110_v48 = vld [vmem:[#allocation10 + $0x4c0] sm:$0xff] }
 0x23d   :  { %v1114_v49 = vld [vmem:[#allocation10 + $0x4e0] sm:$0xff] }
 0x23e   :  { %v6694_v39 = vcombine.high %v1110_v48, %v1114_v49 }
 0x23f   :  { %934 = vmatpush1.bf16.msra.mxu1 %v7565_v52  ;;  %v1047_v52 = vld [vmem:[#allocation10 + $0x2c8] sm:$0xff] }
 0x240   :  { %935 = vmatprep.subr.bf16.mxu1 %v7570_v53  ;;  %v1051_v53 = vld [vmem:[#allocation10 + $0x2e8] sm:$0xff] }
 0x241   :  { %v6632_v55 = vcombine.high %v1047_v52, %v1051_v53  ;;  %v6631_v59 = vcombine.low %v1047_v52, %v1051_v53 }
 0x243   :  { %936 = vmatpush1.bf16.msra.mxu1 %v7568_v56  ;;  %v1055_v56 = vld [vmem:[#allocation10 + $0x308] sm:$0xff] }
 0x244   :  { %2618 = vmatprep.subr.bf16.mxu1 %v6544_v57  ;;  %v1059_v57 = vld [vmem:[#allocation10 + $0x328] sm:$0xff] }
 0x245   :  { %v6640_v60 = vcombine.high %v1055_v56, %v1059_v57  ;;  %v6639_v1 = vcombine.low %v1055_v56, %v1059_v57 }
 0x246   :  { %938 = vmatmul.mubr.bf16.vlgmr.msra.gmra.mrb[8].mxu1 %v8657_v26  ;;  %v1074_v26 = vld [vmem:[#allocation10 + $0x3a0] sm:$0xff] }
 0x247   :  { %2619 = vmatpush1.bf16.msra.mxu1 %v6543_v62  ;;  %v6654_v8 = vcombine.high %v1070_v25, %v1074_v26  ;;  %v6653_v27 = vcombine.low %v1070_v25, %v1074_v26  ;;  %v1063_v62 = vld [vmem:[#allocation10 + $0x348] sm:$0xff] }
 0x248   :  { %2620 = vmatprep.subr.bf16.mxu1 %v6552_v63  ;;  %v1067_v63 = vld [vmem:[#allocation10 + $0x368] sm:$0xff] }
 0x249   :  { %2564 = vmatprep.subr.bf16.mxu0 %v6654_v8  ;;  %v6648_v2 = vcombine.high %v1063_v62, %v1067_v63  ;;  %v6647_v61 = vcombine.low %v1063_v62, %v1067_v63  ;;  %v1094_v8 = vld [vmem:[#allocation10 + $0x440] sm:$0xff]  ;;  %v1127_v62 = vld [vmem:[#allocation10 + $0x548] sm:$0xff] }
 0x24a   :  { %2565 = vmatpush1.bf16.msra.mxu0 %v6653_v27  ;;  %v1098_v27 = vld [vmem:[#allocation10 + $0x460] sm:$0xff]  ;;  %v1131_v63 = vld [vmem:[#allocation10 + $0x568] sm:$0xff] }
 0x24b   :  { %2621 = vmatpush1.bf16.msra.mxu1 %v6551_v4  ;;  %2566 = vmatprep.subr.bf16.mxu0 %v6662_v33  ;;  %v1071_v4 = vld [vmem:[#allocation10 + $0x388] sm:$0xff]  ;;  %v6678_v32 = vcombine.high %v1094_v8, %v1098_v27  ;;  %v6677_v38 = vcombine.low %v1094_v8, %v1098_v27 }
 0x24c   :  { %2622 = vmatprep.subr.bf16.mxu1 %v6560_v5  ;;  %v1075_v5 = vld [vmem:[#allocation10 + $0x3a8] sm:$0xff] }
 0x24d   :  { %v6656_v6 = vcombine.high %v1071_v4, %v1075_v5  ;;  %v6655_v11 = vcombine.low %v1071_v4, %v1075_v5  ;;  %v6712_v5 = vcombine.high %v1127_v62, %v1131_v63  ;;  %v1155_v8 = vld [vmem:[#allocation10 + $0x628] sm:$0xff] }
 0x24e   :  { %2567 = vmatpush1.bf16.msra.mxu0 %v6661_v35  ;;  %v1106_v35 = vld [vmem:[#allocation10 + $0x4a0] sm:$0xff] }
 0x24f   :  { %2623 = vmatpush1.bf16.msra.mxu1 %v6559_v7  ;;  %2577 = vmatprep.subr.bf16.mxu0 %v6670_v42  ;;  %v1079_v7 = vld [vmem:[#allocation10 + $0x3c8] sm:$0xff] }
 0x250   :  { %2624 = vmatprep.subr.bf16.mxu1 %v6568_v10  ;;  %v1083_v10 = vld [vmem:[#allocation10 + $0x3e8] sm:$0xff] }
 0x251   :  { %v6664_v12 = vcombine.high %v1079_v7, %v1083_v10 }
 0x253   :  { %2625 = vmatpush1.bf16.msra.mxu1 %v6567_v13  ;;  %v6663_v13 = vcombine.low %v1079_v7, %v1083_v10  ;;  %v1135_v7 = vld [vmem:[#allocation10 + $0x588] sm:$0xff] }
 0x254   :  { %2626 = vmatprep.subr.bf16.mxu1 %v6576_v14  ;;  %v6672_v14 = vcombine.high %v8665_v41, %v8669_v43  ;;  %v1118_v41 = vld [vmem:[#allocation10 + $0x500] sm:$0xff]  ;;  %v1139_v10 = vld [vmem:[#allocation10 + $0x5a8] sm:$0xff] }
 0x255   :  { %v1122_v43 = vld [vmem:[#allocation10 + $0x520] sm:$0xff] }
 0x256   :  { %v6702_v56 = vcombine.high %v1118_v41, %v1122_v43 }
 0x257   :  { %2627 = vmatpush1.bf16.msra.mxu1 %v6575_v17  ;;  %v531_v17 = vrot.slane %v8677_v15, %v8651_v3 }
 0x258   :  { %2628 = vmatprep.subr.bf16.mxu1 %v6584_v18 }
 0x25b   :  { %2629 = vmatpush1.bf16.msra.mxu1 %v6583_v21 }
 0x25c   :  { %2630 = vmatprep.subr.bf16.mxu1 %v6592_v22 }
 0x25f   :  { %2631 = vmatpush1.bf16.msra.mxu1 %v6591_v9 }
 0x260   :  { %2632 = vmatprep.subr.bf16.mxu1 %v6600_v28  ;;  %v1095_v28 = vld [vmem:[#allocation10 + $0x448] sm:$0xff] }
 0x261   :  { %v6680_v33 = vcombine.high %v1095_v28, %v1099_v29  ;;  %v6679_v42 = vcombine.low %v1095_v28, %v1099_v29 }
 0x263   :  { %2633 = vmatpush1.bf16.msra.mxu1 %v6599_v34  ;;  %v1102_v34 = vld [vmem:[#allocation10 + $0x480] sm:$0xff] }
 0x264   :  { %2634 = vmatprep.subr.bf16.mxu1 %v6608_v36  ;;  %v1103_v36 = vld [vmem:[#allocation10 + $0x488] sm:$0xff]  ;;  %v6685_v52 = vcombine.low %v1102_v34, %v1106_v35 }
 0x265   :  { %v6687_v53 = vcombine.low %v1103_v36, %v1107_v37 }
 0x267   :  { %2635 = vmatpush1.bf16.msra.mxu1 %v6607_v44  ;;  %v6686_v44 = vcombine.high %v1102_v34, %v1106_v35  ;;  %v1159_v34 = vld [vmem:[#allocation10 + $0x648] sm:$0xff] }
 0x268   :  { %2636 = vmatprep.subr.bf16.mxu1 %v6616_v47  ;;  %v6688_v47 = vcombine.high %v1103_v36, %v1107_v37  ;;  %v1163_v35 = vld [vmem:[#allocation10 + $0x668] sm:$0xff] }
 0x26b   :  { %2637 = vmatpush1.bf16.msra.mxu1 %v6615_v50  ;;  %v1111_v50 = vld [vmem:[#allocation10 + $0x4c8] sm:$0xff] }
 0x26c   :  { %2638 = vmatprep.subr.bf16.mxu1 %v6624_v51  ;;  %v1115_v51 = vld [vmem:[#allocation10 + $0x4e8] sm:$0xff] }
 0x26d   :  { %v6696_v40 = vcombine.high %v1111_v50, %v1115_v51 }
 0x26f   :  { %2639 = vmatpush1.bf16.msra.mxu1 %v6623_v54  ;;  %v6693_v54 = vcombine.low %v1110_v48, %v1114_v49  ;;  %v1167_v48 = vld [vmem:[#allocation10 + $0x688] sm:$0xff] }
 0x270   :  { %2640 = vmatprep.subr.bf16.mxu1 %v6632_v55  ;;  %v6695_v55 = vcombine.low %v1111_v50, %v1115_v51  ;;  %v1171_v49 = vld [vmem:[#allocation10 + $0x6a8] sm:$0xff]  ;;  %v6743_v51 = vcombine.low %v1159_v34, %v1163_v35 }
 0x273   :  { %2641 = vmatpush1.bf16.msra.mxu1 %v6631_v59  ;;  %v1126_v59 = vld [vmem:[#allocation10 + $0x540] sm:$0xff] }
 0x274   :  { %2642 = vmatprep.subr.bf16.mxu1 %v6640_v60  ;;  %v1130_v60 = vld [vmem:[#allocation10 + $0x560] sm:$0xff] }
 0x275   :  { %v6710_v4 = vcombine.high %v1126_v59, %v1130_v60 }
 0x277   :  { %2643 = vmatpush1.bf16.msra.mxu1 %v6639_v1  ;;  %v6701_v1 = vcombine.low %v1118_v41, %v1122_v43  ;;  %v1175_v41 = vld [vmem:[#allocation10 + $0x6c8] sm:$0xff] }
 0x278   :  { %2644 = vmatprep.subr.bf16.mxu1 %v6648_v2  ;;  %v1179_v43 = vld [vmem:[#allocation10 + $0x6e8] sm:$0xff] }
 0x27b   :  { %2645 = vmatpush1.bf16.msra.mxu1 %v6647_v61  ;;  %v1134_v61 = vld [vmem:[#allocation10 + $0x580] sm:$0xff] }
 0x27c   :  { %2646 = vmatprep.subr.bf16.mxu1 %v6656_v6  ;;  %v1138_v6 = vld [vmem:[#allocation10 + $0x5a0] sm:$0xff] }
 0x27f   :  { %2647 = vmatpush1.bf16.msra.mxu1 %v6655_v11  ;;  %v6709_v11 = vcombine.low %v1126_v59, %v1130_v60  ;;  %v1183_v59 = vld [vmem:[#allocation10 + $0x708] sm:$0xff] }
 0x280   :  { %2648 = vmatprep.subr.bf16.mxu1 %v6664_v12  ;;  %v6711_v12 = vcombine.low %v1127_v62, %v1131_v63  ;;  %v1187_v60 = vld [vmem:[#allocation10 + $0x728] sm:$0xff]  ;;  %v6759_v63 = vcombine.low %v1175_v41, %v1179_v43 }
 0x283   :  { %2649 = vmatpush1.bf16.msra.mxu1 %v6663_v13  ;;  %v6718_v13 = vcombine.high %v1134_v61, %v1138_v6 }
 0x284   :  { %2659 = vmatprep.subr.bf16.mxu1 %v6672_v14  ;;  %v6720_v14 = vcombine.high %v1135_v7, %v1139_v10 }
 0x2d9   :  { %v898_v18 = vpop.f32.mrb[4].mxu1 }
 0x2da   :  { %v899_v19 = vadd.f32 %v898_v18, %v527_v16  ;;  %v900_v20 = vpop.f32.mrb[5].mxu1  ;;  %v1142_v16 = vld [vmem:[#allocation10 + $0x5c0] sm:$0xff]  ;;  %v1143_v18 = vld [vmem:[#allocation10 + $0x5c8] sm:$0xff] }
 0x2db   :  { %v901_v21 = vadd.f32 %v900_v20, %v531_v17  ;;  %v902_v22 = vpop.f32.mrb[6].mxu1  ;;  %v1146_v17 = vld [vmem:[#allocation10 + $0x5e0] sm:$0xff]  ;;  %v6717_v20 = vcombine.low %v1134_v61, %v1138_v6  ;;  %v1191_v61 = vld [vmem:[#allocation10 + $0x748] sm:$0xff] }
 0x2dc   :  { %v946_v23 = vmul.f32 0.2, %v899_v19  ;;  %v903_v24 = vpop.f32.mrb[7].mxu1  ;;  %v6726_v22 = vcombine.high %v1142_v16, %v1146_v17  ;;  %v1195_v6 = vld [vmem:[#allocation10 + $0x768] sm:$0xff] }
 0x2dd   :  { %v947_v25 = vmul.f32 0.2, %v901_v21  ;;  %v1150_v24 = vld [vmem:[#allocation10 + $0x600] sm:$0xff] }
 0x2de   :  { %v950_v26 = vmax.f32 %v899_v19, %v946_v23  ;;  %v1147_v19 = vld [vmem:[#allocation10 + $0x5e8] sm:$0xff] }
 0x2df   :  { %v951_v9 = vmax.f32 %v901_v21, %v947_v25  ;;  %v6719_v21 = vcombine.low %v1135_v7, %v1139_v10  ;;  %v6728_v23 = vcombine.high %v1143_v18, %v1147_v19  ;;  %v1154_v25 = vld [vmem:[#allocation10 + $0x620] sm:$0xff]  ;;  %v6727_v27 = vcombine.low %v1143_v18, %v1147_v19  ;;  %v1199_v18 = vld [vmem:[#allocation10 + $0x788] sm:$0xff] }
 0x2e0   :  { %v8685_v31 = vpack.c.bf16 %v950_v26, %v950_v26  ;;  %v1151_v26 = vld [vmem:[#allocation10 + $0x608] sm:$0xff]  ;;  %v6734_v28 = vcombine.high %v1150_v24, %v1154_v25  ;;  %v6733_v36 = vcombine.low %v1150_v24, %v1154_v25  ;;  %v6767_v10 = vcombine.low %v1183_v59, %v1187_v60  ;;  %v1206_v25 = vld [vmem:[#allocation10 + $0x7c0] sm:$0xff] }
 0x2e1   :  { %v8683_v30 = vpack.c.bf16 %v951_v9, %v951_v9  ;;  %v6725_v9 = vcombine.low %v1142_v16, %v1146_v17  ;;  %v6736_v29 = vcombine.high %v1151_v26, %v1155_v8  ;;  %v6735_v37 = vcombine.low %v1151_v26, %v1155_v8  ;;  %v1202_v17 = vld [vmem:[#allocation10 + $0x7a0] sm:$0xff]  ;;  %v1203_v19 = vld [vmem:[#allocation10 + $0x7a8] sm:$0xff] }
 0x2e2   :  { %v8701_v16 = vsub.s32 3, %v8645_v58  ;;  %v6784_v24 = vcombine.high %v1199_v18, %v1203_v19  ;;  %v1210_v8 = vld [vmem:[#allocation10 + $0x7e0] sm:$0xff] }
 0x2e3   :  { %2568 = vmatprep.mubr.bf16.mxu0 %v8683_v30  ;;  %2650 = vmatprep.mubr.bf16.mxu1 %v8683_v30 }
 0x2e4   :  { %2569 = vmatmul.mubr.bf16.vlgmr.msra.gmra.mrb[4].mxu0 %v8685_v31  ;;  %2651 = vmatmul.mubr.bf16.vlgmr.msra.gmra.mrb[12].mxu1 %v8685_v31  ;;  %v539_v26 = vrot.slane %v8677_v15, %v8701_v16 }
 0x2e5   :  { %2578 = vmatpush1.bf16.msra.mxu0 %v6669_v45  ;;  %2660 = vmatpush1.bf16.msra.mxu1 %v6671_v46  ;;  %v1119_v45 = vld [vmem:[#allocation10 + $0x508] sm:$0xff] }
 0x2e6   :  { %2579 = vmatprep.subr.bf16.mxu0 %v6678_v32  ;;  %2661 = vmatprep.subr.bf16.mxu1 %v6680_v33  ;;  %v1123_v46 = vld [vmem:[#allocation10 + $0x528] sm:$0xff]  ;;  %v1158_v32 = vld [vmem:[#allocation10 + $0x640] sm:$0xff] }
 0x2e7   :  { %v6704_v57 = vcombine.high %v1119_v45, %v1123_v46  ;;  %v6703_v2 = vcombine.low %v1119_v45, %v1123_v46  ;;  %v1162_v33 = vld [vmem:[#allocation10 + $0x660] sm:$0xff]  ;;  %v6751_v46 = vcombine.low %v1167_v48, %v1171_v49 }
 0x2e8   :  { %v6741_v50 = vcombine.low %v1158_v32, %v1162_v33 }
 0x2e9   :  { %2580 = vmatpush1.bf16.msra.mxu0 %v6677_v38  ;;  %2662 = vmatpush1.bf16.msra.mxu1 %v6679_v42  ;;  %v6742_v38 = vcombine.high %v1158_v32, %v1162_v33  ;;  %v6744_v42 = vcombine.high %v1159_v34, %v1163_v35  ;;  %v6783_v32 = vcombine.low %v1199_v18, %v1203_v19 }
 0x2ea   :  { %2581 = vmatprep.subr.bf16.mxu0 %v6686_v44  ;;  %2663 = vmatprep.subr.bf16.mxu1 %v6688_v47  ;;  %v1166_v44 = vld [vmem:[#allocation10 + $0x680] sm:$0xff]  ;;  %v6790_v35 = vcombine.high %v1206_v25, %v1210_v8 }
 0x2eb   :  { %v1170_v47 = vld [vmem:[#allocation10 + $0x6a0] sm:$0xff] }
 0x2ec   :  { %v6749_v45 = vcombine.low %v1166_v44, %v1170_v47 }
 0x2ed   :  { %2582 = vmatpush1.bf16.msra.mxu0 %v6685_v52  ;;  %2664 = vmatpush1.bf16.msra.mxu1 %v6687_v53  ;;  %v6750_v52 = vcombine.high %v1166_v44, %v1170_v47  ;;  %v6752_v53 = vcombine.high %v1167_v48, %v1171_v49  ;;  %v964_v44 = vld [vmem:[#allocation10 + $0x30] sm:$0xff]  ;;  %v961_v47 = vld [vmem:[#allocation10 + $0x18] sm:$0xff] }
 0x2ee   :  { %2583 = vmatprep.subr.bf16.mxu0 %v6694_v39  ;;  %2665 = vmatprep.subr.bf16.mxu1 %v6696_v40  ;;  %v1174_v39 = vld [vmem:[#allocation10 + $0x6c0] sm:$0xff] }
 0x2ef   :  { %v1178_v40 = vld [vmem:[#allocation10 + $0x6e0] sm:$0xff] }
 0x2f0   :  { %v6757_v62 = vcombine.low %v1174_v39, %v1178_v40 }
 0x2f1   :  { %2584 = vmatpush1.bf16.msra.mxu0 %v6693_v54  ;;  %2666 = vmatpush1.bf16.msra.mxu1 %v6695_v55  ;;  %v6758_v54 = vcombine.high %v1174_v39, %v1178_v40  ;;  %v6760_v55 = vcombine.high %v1175_v41, %v1179_v43  ;;  %v968_v43 = vld [vmem:[#allocation10 + $0x50] sm:$0xff] }
 0x2f2   :  { %2585 = vmatprep.subr.bf16.mxu0 %v6702_v56  ;;  %2667 = vmatprep.subr.bf16.mxu1 %v6704_v57  ;;  %v1182_v56 = vld [vmem:[#allocation10 + $0x700] sm:$0xff] }
 0x2f3   :  { %v1186_v57 = vld [vmem:[#allocation10 + $0x720] sm:$0xff] }
 0x2f4   :  { %v6765_v7 = vcombine.low %v1182_v56, %v1186_v57 }
 0x2f5   :  { %2586 = vmatpush1.bf16.msra.mxu0 %v6701_v1  ;;  %2668 = vmatpush1.bf16.msra.mxu1 %v6703_v2  ;;  %v6766_v1 = vcombine.high %v1182_v56, %v1186_v57  ;;  %v6768_v2 = vcombine.high %v1183_v59, %v1187_v60 }
 0x2f6   :  { %2587 = vmatprep.subr.bf16.mxu0 %v6710_v4  ;;  %2669 = vmatprep.subr.bf16.mxu1 %v6712_v5  ;;  %v1190_v4 = vld [vmem:[#allocation10 + $0x740] sm:$0xff] }
 0x2f7   :  { %v1194_v5 = vld [vmem:[#allocation10 + $0x760] sm:$0xff] }
 0x2f9   :  { %2588 = vmatpush1.bf16.msra.mxu0 %v6709_v11  ;;  %2670 = vmatpush1.bf16.msra.mxu1 %v6711_v12  ;;  %v6774_v11 = vcombine.high %v1190_v4, %v1194_v5  ;;  %v6776_v12 = vcombine.high %v1191_v61, %v1195_v6 }
 0x2fa   :  { %2589 = vmatprep.subr.bf16.mxu0 %v6718_v13  ;;  %2671 = vmatprep.subr.bf16.mxu1 %v6720_v14  ;;  %v8698_v13 = vsub.s32 2, %v8645_v58  ;;  %v1198_v14 = vld [vmem:[#allocation10 + $0x780] sm:$0xff] }
 0x2fd   :  { %2590 = vmatpush1.bf16.msra.mxu0 %v6717_v20  ;;  %2672 = vmatpush1.bf16.msra.mxu1 %v6719_v21  ;;  %v6773_v20 = vcombine.low %v1190_v4, %v1194_v5  ;;  %v6775_v21 = vcombine.low %v1191_v61, %v1195_v6  ;;  %v981_v4 = vld [vmem:[#allocation10 + $0xb8] sm:$0xff] }
 0x2fe   :  { %2591 = vmatprep.subr.bf16.mxu0 %v6726_v22  ;;  %2673 = vmatprep.subr.bf16.mxu1 %v6728_v23  ;;  %v535_v22 = vrot.slane %v8677_v15, %v8698_v13  ;;  %v6782_v23 = vcombine.high %v1198_v14, %v1202_v17  ;;  %v965_v15 = vld [vmem:[#allocation10 + $0x38] sm:$0xff] }
 0x2ff   :  { %v6548_v40 = vcombine.high %v961_v47, %v965_v15  ;;  %v6547_v59 = vcombine.low %v961_v47, %v965_v15 }
 0x301   :  { %2592 = vmatpush1.bf16.msra.mxu0 %v6725_v9  ;;  %2674 = vmatpush1.bf16.msra.mxu1 %v6727_v27  ;;  %v1207_v9 = vld [vmem:[#allocation10 + $0x7c8] sm:$0xff] }
 0x302   :  { %2593 = vmatprep.subr.bf16.mxu0 %v6734_v28  ;;  %2675 = vmatprep.subr.bf16.mxu1 %v6736_v29  ;;  %v1211_v27 = vld [vmem:[#allocation10 + $0x7e8] sm:$0xff]  ;;  %v6781_v29 = vcombine.low %v1198_v14, %v1202_v17  ;;  %v989_v14 = vld [vmem:[#allocation10 + $0xf8] sm:$0xff] }
 0x305   :  { %2594 = vmatpush1.bf16.msra.mxu0 %v6733_v36  ;;  %2676 = vmatpush1.bf16.msra.mxu1 %v6735_v37  ;;  %v6792_v36 = vcombine.high %v1207_v9, %v1211_v27  ;;  %v960_v37 = vld [vmem:[#allocation10 + $0x10] sm:$0xff] }
 0x306   :  { %2595 = vmatprep.subr.bf16.mxu0 %v6742_v38  ;;  %2677 = vmatprep.subr.bf16.mxu1 %v6744_v42  ;;  %v6546_v39 = vcombine.high %v960_v37, %v964_v44  ;;  %v6545_v56 = vcombine.low %v960_v37, %v964_v44  ;;  %v1012_v37 = vld [vmem:[#allocation10 + $0x1b0] sm:$0xff] }
 0x309   :  { %2596 = vmatpush1.bf16.msra.mxu0 %v6741_v50  ;;  %2678 = vmatpush1.bf16.msra.mxu1 %v6743_v51  ;;  %v6789_v51 = vcombine.low %v1206_v25, %v1210_v8 }
 0x30a   :  { %2597 = vmatprep.subr.bf16.mxu0 %v6750_v52  ;;  %2679 = vmatprep.subr.bf16.mxu1 %v6752_v53  ;;  %v6791_v52 = vcombine.low %v1207_v9, %v1211_v27  ;;  %v1000_v9 = vld [vmem:[#allocation10 + $0x150] sm:$0xff] }
 0x30b   :  { %v1004_v27 = vld [vmem:[#allocation10 + $0x170] sm:$0xff] }
 0x30c   :  { %v6585_v44 = vcombine.low %v1000_v9, %v1004_v27 }
 0x30d   :  { %2598 = vmatpush1.bf16.msra.mxu0 %v6749_v45  ;;  %2680 = vmatpush1.bf16.msra.mxu1 %v6751_v46  ;;  %v972_v45 = vld [vmem:[#allocation10 + $0x70] sm:$0xff]  ;;  %v969_v46 = vld [vmem:[#allocation10 + $0x58] sm:$0xff] }
 0x30e   :  { %2599 = vmatprep.subr.bf16.mxu0 %v6758_v54  ;;  %2681 = vmatprep.subr.bf16.mxu1 %v6760_v55  ;;  %v973_v54 = vld [vmem:[#allocation10 + $0x78] sm:$0xff]  ;;  %v6554_v60 = vcombine.high %v968_v43, %v972_v45  ;;  %v6553_v5 = vcombine.low %v968_v43, %v972_v45  ;;  %v1024_v43 = vld [vmem:[#allocation10 + $0x210] sm:$0xff] }
 0x30f   :  { %v6555_v61 = vcombine.low %v969_v46, %v973_v54  ;;  %v1028_v45 = vld [vmem:[#allocation10 + $0x230] sm:$0xff] }
 0x311   :  { %2600 = vmatpush1.bf16.msra.mxu0 %v6757_v62  ;;  %2682 = vmatpush1.bf16.msra.mxu1 %v6759_v63  ;;  %v6556_v62 = vcombine.high %v969_v46, %v973_v54  ;;  %v976_v63 = vld [vmem:[#allocation10 + $0x90] sm:$0xff]  ;;  %v1025_v46 = vld [vmem:[#allocation10 + $0x218] sm:$0xff] }
 0x312   :  { %2601 = vmatprep.subr.bf16.mxu0 %v6766_v1  ;;  %2683 = vmatprep.subr.bf16.mxu1 %v6768_v2  ;;  %v980_v1 = vld [vmem:[#allocation10 + $0xb0] sm:$0xff]  ;;  %v977_v2 = vld [vmem:[#allocation10 + $0x98] sm:$0xff] }
 0x313   :  { %v6562_v6 = vcombine.high %v976_v63, %v980_v1  ;;  %v6561_v17 = vcombine.low %v976_v63, %v980_v1  ;;  %v6563_v18 = vcombine.low %v977_v2, %v981_v4  ;;  %v1029_v54 = vld [vmem:[#allocation10 + $0x238] sm:$0xff]  ;;  %v1032_v63 = vld [vmem:[#allocation10 + $0x250] sm:$0xff] }
 0x314   :  { %v1036_v1 = vld [vmem:[#allocation10 + $0x270] sm:$0xff] }
 0x315   :  { %2602 = vmatpush1.bf16.msra.mxu0 %v6765_v7  ;;  %2684 = vmatpush1.bf16.msra.mxu1 %v6767_v10  ;;  %v6564_v7 = vcombine.high %v977_v2, %v981_v4  ;;  %v984_v10 = vld [vmem:[#allocation10 + $0xd0] sm:$0xff]  ;;  %v1033_v2 = vld [vmem:[#allocation10 + $0x258] sm:$0xff] }
 0x316   :  { %2603 = vmatprep.subr.bf16.mxu0 %v6774_v11  ;;  %2685 = vmatprep.subr.bf16.mxu1 %v6776_v12  ;;  %v988_v11 = vld [vmem:[#allocation10 + $0xf0] sm:$0xff]  ;;  %v985_v12 = vld [vmem:[#allocation10 + $0xd8] sm:$0xff] }
 0x317   :  { %v6570_v19 = vcombine.high %v984_v10, %v988_v11  ;;  %v6571_v25 = vcombine.low %v985_v12, %v989_v14  ;;  %v1037_v4 = vld [vmem:[#allocation10 + $0x278] sm:$0xff] }
 0x319   :  { %v939_v28 = vpop.f32.mrb[8].mxu1  ;;  %2604 = vmatpush1.bf16.msra.mxu0 %v6773_v20  ;;  %2686 = vmatpush1.bf16.msra.mxu1 %v6775_v21  ;;  %v6572_v20 = vcombine.high %v985_v12, %v989_v14  ;;  %v992_v21 = vld [vmem:[#allocation10 + $0x110] sm:$0xff]  ;;  %v1041_v12 = vld [vmem:[#allocation10 + $0x298] sm:$0xff] }
 0x31a   :  { %v940_v33 = vadd.f32 %v939_v28, %v535_v22  ;;  %v941_v34 = vpop.f32.mrb[9].mxu1  ;;  %2605 = vmatprep.subr.bf16.mxu0 %v6782_v23  ;;  %2687 = vmatprep.subr.bf16.mxu1 %v6784_v24  ;;  %v996_v22 = vld [vmem:[#allocation10 + $0x130] sm:$0xff]  ;;  %v997_v23 = vld [vmem:[#allocation10 + $0x138] sm:$0xff]  ;;  %v6569_v24 = vcombine.low %v984_v10, %v988_v11 }
 0x31b   :  { %v942_v38 = vadd.f32 %v941_v34, %v539_v26  ;;  %v943_v42 = vpop.f32.mrb[10].mxu1  ;;  %v6578_v26 = vcombine.high %v992_v21, %v996_v22  ;;  %v1001_v28 = vld [vmem:[#allocation10 + $0x158] sm:$0xff]  ;;  %v6586_v34 = vcombine.high %v1000_v9, %v1004_v27  ;;  %v1040_v10 = vld [vmem:[#allocation10 + $0x290] sm:$0xff] }
 0x31c   :  { %v948_v48 = vmul.f32 0.2, %v940_v33  ;;  %v944_v49 = vpop.f32.mrb[11].mxu1  ;;  %v1013_v42 = vld [vmem:[#allocation10 + $0x1b8] sm:$0xff]  ;;  %v1044_v11 = vld [vmem:[#allocation10 + $0x2b0] sm:$0xff] }
 0x31d   :  { %v949_v50 = vmul.f32 0.2, %v942_v38  ;;  %2606 = vmatpush1.bf16.msra.mxu0 %v6781_v29  ;;  %2688 = vmatpush1.bf16.msra.mxu1 %v6783_v32  ;;  %v1005_v29 = vld [vmem:[#allocation10 + $0x178] sm:$0xff]  ;;  %v6577_v32 = vcombine.low %v992_v21, %v996_v22  ;;  %v1016_v49 = vld [vmem:[#allocation10 + $0x1d0] sm:$0xff] }
 0x31e   :  { %v952_v53 = vmax.f32 %v940_v33, %v948_v48  ;;  %2607 = vmatprep.subr.bf16.mxu0 %v6790_v35  ;;  %2689 = vmatprep.subr.bf16.mxu1 %v6792_v36  ;;  %v6588_v35 = vcombine.high %v1001_v28, %v1005_v29  ;;  %v1008_v36 = vld [vmem:[#allocation10 + $0x190] sm:$0xff]  ;;  %v6587_v47 = vcombine.low %v1001_v28, %v1005_v29  ;;  %v1045_v14 = vld [vmem:[#allocation10 + $0x2b8] sm:$0xff] }
 0x31f   :  { %v953_v41 = vmax.f32 %v942_v38, %v949_v50  ;;  %v1009_v38 = vld [vmem:[#allocation10 + $0x198] sm:$0xff]  ;;  %v6594_v15 = vcombine.high %v1008_v36, %v1012_v37  ;;  %v1020_v50 = vld [vmem:[#allocation10 + $0x1f0] sm:$0xff] }
 0x320   :  { %v8709_v57 = vpack.c.bf16 %v952_v53, %v952_v53  ;;  %v6596_v48 = vcombine.high %v1009_v38, %v1013_v42  ;;  %v6593_v53 = vcombine.low %v1008_v36, %v1012_v37  ;;  %v1048_v21 = vld [vmem:[#allocation10 + $0x2d0] sm:$0xff]  ;;  %v1057_v28 = vld [vmem:[#allocation10 + $0x318] sm:$0xff] }
 0x321   :  { %v8707_v55 = vpack.c.bf16 %v953_v41, %v953_v41  ;;  %2608 = vmatpush1.bf16.msra.mxu0 %v6789_v51  ;;  %2690 = vmatpush1.bf16.msra.mxu1 %v6791_v52  ;;  %v1017_v51 = vld [vmem:[#allocation10 + $0x1d8] sm:$0xff]  ;;  %v1052_v22 = vld [vmem:[#allocation10 + $0x2f0] sm:$0xff] }
 0x322   :  { %2700 = vmatprep.subr.bf16.mxu0 %v6546_v39  ;;  %2782 = vmatprep.subr.bf16.mxu1 %v6548_v40  ;;  %v1021_v52 = vld [vmem:[#allocation10 + $0x1f8] sm:$0xff]  ;;  %v6595_v39 = vcombine.low %v1009_v38, %v1013_v42  ;;  %v6602_v40 = vcombine.high %v1016_v49, %v1020_v50  ;;  %v1056_v9 = vld [vmem:[#allocation10 + $0x310] sm:$0xff] }
 0x323   :  { %2609 = vmatprep.mubr.bf16.mxu0 %v8707_v55  ;;  %2691 = vmatprep.mubr.bf16.mxu1 %v8707_v55  ;;  %v6604_v41 = vcombine.high %v1017_v51, %v1021_v52  ;;  %v1060_v27 = vld [vmem:[#allocation10 + $0x330] sm:$0xff]  ;;  %v1061_v29 = vld [vmem:[#allocation10 + $0x338] sm:$0xff] }
 0x324   :  { %2610 = vmatmul.mubr.bf16.vlgmr.msra.gmra.mrb[4].mxu0 %v8709_v57  ;;  %2692 = vmatmul.mubr.bf16.vlgmr.msra.gmra.mrb[12].mxu1 %v8709_v57  ;;  %v1064_v36 = vld [vmem:[#allocation10 + $0x350] sm:$0xff]  ;;  %v1065_v38 = vld [vmem:[#allocation10 + $0x358] sm:$0xff] }
 0x325   :  { %2701 = vmatpush1.bf16.msra.mxu0 %v6545_v56  ;;  %2732 = vmatprep.mubr.bf16.mxu0 %v8683_v30  ;;  %v6601_v56 = vcombine.low %v1016_v49, %v1020_v50  ;;  %v1068_v37 = vld [vmem:[#allocation10 + $0x370] sm:$0xff]  ;;  %v1069_v42 = vld [vmem:[#allocation10 + $0x378] sm:$0xff] }
 0x326   :  { %2783 = vmatpush1.bf16.msra.mxu1 %v6547_v59  ;;  %2814 = vmatprep.mubr.bf16.mxu1 %v8683_v30  ;;  %v993_v30 = vld [vmem:[#allocation10 + $0x118] sm:$0xff]  ;;  %v6603_v59 = vcombine.low %v1017_v51, %v1021_v52  ;;  %v1072_v49 = vld [vmem:[#allocation10 + $0x390] sm:$0xff] }
 0x327   :  { %2702 = vmatprep.subr.bf16.mxu0 %v6554_v60  ;;  %2784 = vmatprep.subr.bf16.mxu1 %v6556_v62  ;;  %v6580_v8 = vcombine.high %v993_v30, %v997_v23  ;;  %v6579_v33 = vcombine.low %v993_v30, %v997_v23  ;;  %v6610_v60 = vcombine.high %v1024_v43, %v1028_v45  ;;  %v1049_v30 = vld [vmem:[#allocation10 + $0x2d8] sm:$0xff]  ;;  %v1076_v50 = vld [vmem:[#allocation10 + $0x3b0] sm:$0xff] }
 0x328   :  { %v6612_v62 = vcombine.high %v1025_v46, %v1029_v54  ;;  %v1053_v23 = vld [vmem:[#allocation10 + $0x2f8] sm:$0xff] }
 0x329   :  { %2703 = vmatpush1.bf16.msra.mxu0 %v6553_v5  ;;  %v6609_v5 = vcombine.low %v1024_v43, %v1028_v45  ;;  %v1073_v51 = vld [vmem:[#allocation10 + $0x398] sm:$0xff]  ;;  %v1080_v43 = vld [vmem:[#allocation10 + $0x3d0] sm:$0xff] }
 0x32a   :  { %2785 = vmatpush1.bf16.msra.mxu1 %v6555_v61  ;;  %2704 = vmatprep.subr.bf16.mxu0 %v6562_v6  ;;  %v6611_v61 = vcombine.low %v1025_v46, %v1029_v54  ;;  %v6618_v6 = vcombine.high %v1032_v63, %v1036_v1  ;;  %v1077_v52 = vld [vmem:[#allocation10 + $0x3b8] sm:$0xff]  ;;  %v1084_v45 = vld [vmem:[#allocation10 + $0x3f0] sm:$0xff] }
 0x32b   :  { %2786 = vmatprep.subr.bf16.mxu1 %v6564_v7  ;;  %v6620_v7 = vcombine.high %v1033_v2, %v1037_v4  ;;  %v1081_v46 = vld [vmem:[#allocation10 + $0x3d8] sm:$0xff] }
 0x32c   :  { %v1085_v54 = vld [vmem:[#allocation10 + $0x3f8] sm:$0xff] }
 0x32d   :  { %2705 = vmatpush1.bf16.msra.mxu0 %v6561_v17  ;;  %v6617_v17 = vcombine.low %v1032_v63, %v1036_v1  ;;  %v1088_v63 = vld [vmem:[#allocation10 + $0x410] sm:$0xff] }
 0x32e   :  { %2787 = vmatpush1.bf16.msra.mxu1 %v6563_v18  ;;  %2706 = vmatprep.subr.bf16.mxu0 %v6570_v19  ;;  %v6619_v18 = vcombine.low %v1033_v2, %v1037_v4  ;;  %v6626_v19 = vcombine.high %v1040_v10, %v1044_v11  ;;  %v1092_v1 = vld [vmem:[#allocation10 + $0x430] sm:$0xff]  ;;  %v1089_v2 = vld [vmem:[#allocation10 + $0x418] sm:$0xff] }
 0x32f   :  { %2788 = vmatprep.subr.bf16.mxu1 %v6572_v20  ;;  %v6628_v20 = vcombine.high %v1041_v12, %v1045_v14  ;;  %v1093_v4 = vld [vmem:[#allocation10 + $0x438] sm:$0xff] }
 0x331   :  { %2707 = vmatpush1.bf16.msra.mxu0 %v6569_v24  ;;  %v6625_v24 = vcombine.low %v1040_v10, %v1044_v11  ;;  %v1096_v10 = vld [vmem:[#allocation10 + $0x450] sm:$0xff] }
 0x332   :  { %2789 = vmatpush1.bf16.msra.mxu1 %v6571_v25  ;;  %2708 = vmatprep.subr.bf16.mxu0 %v6578_v26  ;;  %v6627_v25 = vcombine.low %v1041_v12, %v1045_v14  ;;  %v6634_v26 = vcombine.high %v1048_v21, %v1052_v22  ;;  %v1100_v11 = vld [vmem:[#allocation10 + $0x470] sm:$0xff]  ;;  %v6673_v12 = vcombine.low %v1088_v63, %v1092_v1  ;;  %v1097_v14 = vld [vmem:[#allocation10 + $0x458] sm:$0xff] }
 0x333   :  { %2790 = vmatprep.subr.bf16.mxu1 %v6580_v8  ;;  %v6636_v8 = vcombine.high %v1049_v30, %v1053_v23 }
 0x335   :  { %2709 = vmatpush1.bf16.msra.mxu0 %v6577_v32  ;;  %v6633_v32 = vcombine.low %v1048_v21, %v1052_v22  ;;  %v1108_v21 = vld [vmem:[#allocation10 + $0x4b0] sm:$0xff] }
 0x336   :  { %2791 = vmatpush1.bf16.msra.mxu1 %v6579_v33  ;;  %2710 = vmatprep.subr.bf16.mxu0 %v6586_v34  ;;  %v6635_v33 = vcombine.low %v1049_v30, %v1053_v23  ;;  %v6642_v34 = vcombine.high %v1056_v9, %v1060_v27  ;;  %v1105_v30 = vld [vmem:[#allocation10 + $0x498] sm:$0xff] }
 0x337   :  { %2792 = vmatprep.subr.bf16.mxu1 %v6588_v35  ;;  %v6644_v35 = vcombine.high %v1057_v28, %v1061_v29  ;;  %v1109_v23 = vld [vmem:[#allocation10 + $0x4b8] sm:$0xff] }
 0x339   :  { %2711 = vmatpush1.bf16.msra.mxu0 %v6585_v44  ;;  %v6641_v44 = vcombine.low %v1056_v9, %v1060_v27  ;;  %v1112_v9 = vld [vmem:[#allocation10 + $0x4d0] sm:$0xff] }
 0x33a   :  { %2793 = vmatpush1.bf16.msra.mxu1 %v6587_v47  ;;  %2712 = vmatprep.subr.bf16.mxu0 %v6594_v15  ;;  %v6643_v47 = vcombine.low %v1057_v28, %v1061_v29  ;;  %v6650_v15 = vcombine.high %v1064_v36, %v1068_v37  ;;  %v1116_v27 = vld [vmem:[#allocation10 + $0x4f0] sm:$0xff]  ;;  %v1113_v28 = vld [vmem:[#allocation10 + $0x4d8] sm:$0xff] }
 0x33b   :  { %2794 = vmatprep.subr.bf16.mxu1 %v6596_v48  ;;  %v6652_v48 = vcombine.high %v1065_v38, %v1069_v42  ;;  %v1117_v29 = vld [vmem:[#allocation10 + $0x4f8] sm:$0xff] }
 0x33d   :  { %2713 = vmatpush1.bf16.msra.mxu0 %v6593_v53  ;;  %v6649_v53 = vcombine.low %v1064_v36, %v1068_v37  ;;  %v1124_v36 = vld [vmem:[#allocation10 + $0x530] sm:$0xff]  ;;  %v1121_v37 = vld [vmem:[#allocation10 + $0x518] sm:$0xff] }
 0x33e   :  { %2795 = vmatpush1.bf16.msra.mxu1 %v6595_v39  ;;  %2714 = vmatprep.subr.bf16.mxu0 %v6602_v40  ;;  %v6651_v39 = vcombine.low %v1065_v38, %v1069_v42  ;;  %v6658_v40 = vcombine.high %v1072_v49, %v1076_v50  ;;  %v1125_v38 = vld [vmem:[#allocation10 + $0x538] sm:$0xff]  ;;  %v6699_v42 = vcombine.low %v1113_v28, %v1117_v29 }
 0x33f   :  { %2796 = vmatprep.subr.bf16.mxu1 %v6604_v41  ;;  %v6660_v41 = vcombine.high %v1073_v51, %v1077_v52 }
 0x341   :  { %2715 = vmatpush1.bf16.msra.mxu0 %v6601_v56  ;;  %v6657_v56 = vcombine.low %v1072_v49, %v1076_v50  ;;  %v1129_v49 = vld [vmem:[#allocation10 + $0x558] sm:$0xff] }
 0x342   :  { %2797 = vmatpush1.bf16.msra.mxu1 %v6603_v59  ;;  %2716 = vmatprep.subr.bf16.mxu0 %v6610_v60  ;;  %v6659_v59 = vcombine.low %v1073_v51, %v1077_v52  ;;  %v6666_v60 = vcombine.high %v1080_v43, %v1084_v45  ;;  %v1133_v50 = vld [vmem:[#allocation10 + $0x578] sm:$0xff]  ;;  %v6707_v52 = vcombine.low %v1121_v37, %v1125_v38 }
 0x343   :  { %2798 = vmatprep.subr.bf16.mxu1 %v6612_v62  ;;  %v6668_v62 = vcombine.high %v1081_v46, %v1085_v54 }
 0x345   :  { %2717 = vmatpush1.bf16.msra.mxu0 %v6609_v5  ;;  %v6665_v5 = vcombine.low %v1080_v43, %v1084_v45  ;;  %v1137_v43 = vld [vmem:[#allocation10 + $0x598] sm:$0xff] }
 0x346   :  { %2799 = vmatpush1.bf16.msra.mxu1 %v6611_v61  ;;  %2718 = vmatprep.subr.bf16.mxu0 %v6618_v6  ;;  %v6667_v61 = vcombine.low %v1081_v46, %v1085_v54  ;;  %v6674_v6 = vcombine.high %v1088_v63, %v1092_v1  ;;  %v1141_v45 = vld [vmem:[#allocation10 + $0x5b8] sm:$0xff]  ;;  %v6715_v54 = vcombine.low %v1129_v49, %v1133_v50 }
 0x347   :  { %2800 = vmatprep.subr.bf16.mxu1 %v6620_v7  ;;  %v6676_v7 = vcombine.high %v1089_v2, %v1093_v4  ;;  %v1145_v63 = vld [vmem:[#allocation10 + $0x5d8] sm:$0xff] }
 0x348   :  { %v1149_v1 = vld [vmem:[#allocation10 + $0x5f8] sm:$0xff] }
 0x349   :  { %2719 = vmatpush1.bf16.msra.mxu0 %v6617_v17  ;;  %v1101_v17 = vld [vmem:[#allocation10 + $0x478] sm:$0xff] }
 0x34a   :  { %2801 = vmatpush1.bf16.msra.mxu1 %v6619_v18  ;;  %2720 = vmatprep.subr.bf16.mxu0 %v6626_v19  ;;  %v6675_v18 = vcombine.low %v1089_v2, %v1093_v4  ;;  %v6682_v19 = vcombine.high %v1096_v10, %v1100_v11  ;;  %v6684_v22 = vcombine.high %v1097_v14, %v1101_v17 }
 0x34b   :  { %2802 = vmatprep.subr.bf16.mxu1 %v6628_v20  ;;  %v1104_v20 = vld [vmem:[#allocation10 + $0x490] sm:$0xff]  ;;  %v6723_v4 = vcombine.low %v1137_v43, %v1141_v45 }
 0x34d   :  { %2721 = vmatpush1.bf16.msra.mxu0 %v6625_v24  ;;  %v6681_v24 = vcombine.low %v1096_v10, %v1100_v11  ;;  %v1153_v10 = vld [vmem:[#allocation10 + $0x618] sm:$0xff] }
 0x34e   :  { %2803 = vmatpush1.bf16.msra.mxu1 %v6627_v25  ;;  %2722 = vmatprep.subr.bf16.mxu0 %v6634_v26  ;;  %v6683_v25 = vcombine.low %v1097_v14, %v1101_v17  ;;  %v6690_v26 = vcombine.high %v1104_v20, %v1108_v21  ;;  %v1157_v11 = vld [vmem:[#allocation10 + $0x638] sm:$0xff]  ;;  %v6731_v14 = vcombine.low %v1145_v63, %v1149_v1 }
 0x34f   :  { %2804 = vmatprep.subr.bf16.mxu1 %v6636_v8  ;;  %v6692_v8 = vcombine.high %v1105_v30, %v1109_v23 }
 0x351   :  { %2723 = vmatpush1.bf16.msra.mxu0 %v6633_v32  ;;  %v6689_v32 = vcombine.low %v1104_v20, %v1108_v21  ;;  %v1164_v20 = vld [vmem:[#allocation10 + $0x670] sm:$0xff]  ;;  %v1161_v21 = vld [vmem:[#allocation10 + $0x658] sm:$0xff] }
 0x352   :  { %2805 = vmatpush1.bf16.msra.mxu1 %v6635_v33  ;;  %2724 = vmatprep.subr.bf16.mxu0 %v6642_v34  ;;  %v6698_v33 = vcombine.high %v1112_v9, %v1116_v27  ;;  %v6700_v34 = vcombine.high %v1113_v28, %v1117_v29 }
 0x353   :  { %2806 = vmatprep.subr.bf16.mxu1 %v6644_v35  ;;  %v1120_v35 = vld [vmem:[#allocation10 + $0x510] sm:$0xff] }
 0x354   :  { %v6705_v51 = vcombine.low %v1120_v35, %v1124_v36 }
 0x355   :  { %2725 = vmatpush1.bf16.msra.mxu0 %v6641_v44  ;;  %v6706_v44 = vcombine.high %v1120_v35, %v1124_v36  ;;  %v1177_v35 = vld [vmem:[#allocation10 + $0x6d8] sm:$0xff] }
 0x356   :  { %2807 = vmatpush1.bf16.msra.mxu1 %v6643_v47  ;;  %2726 = vmatprep.subr.bf16.mxu0 %v6650_v15  ;;  %v6708_v47 = vcombine.high %v1121_v37, %v1125_v38  ;;  %v1128_v15 = vld [vmem:[#allocation10 + $0x550] sm:$0xff]  ;;  %v1181_v36 = vld [vmem:[#allocation10 + $0x6f8] sm:$0xff] }
 0x357   :  { %2808 = vmatprep.subr.bf16.mxu1 %v6652_v48  ;;  %v1132_v48 = vld [vmem:[#allocation10 + $0x570] sm:$0xff] }
 0x358   :  { %v6713_v46 = vcombine.low %v1128_v15, %v1132_v48 }
 0x359   :  { %2727 = vmatpush1.bf16.msra.mxu0 %v6649_v53  ;;  %v6714_v53 = vcombine.high %v1128_v15, %v1132_v48  ;;  %v1185_v15 = vld [vmem:[#allocation10 + $0x718] sm:$0xff] }
 0x35a   :  { %2809 = vmatpush1.bf16.msra.mxu1 %v6651_v39  ;;  %2728 = vmatprep.subr.bf16.mxu0 %v6658_v40  ;;  %v6716_v39 = vcombine.high %v1129_v49, %v1133_v50  ;;  %v1136_v40 = vld [vmem:[#allocation10 + $0x590] sm:$0xff]  ;;  %v1189_v48 = vld [vmem:[#allocation10 + $0x738] sm:$0xff]  ;;  %v6763_v50 = vcombine.low %v1177_v35, %v1181_v36 }
 0x35b   :  { %2810 = vmatprep.subr.bf16.mxu1 %v6660_v41  ;;  %v1140_v41 = vld [vmem:[#allocation10 + $0x5b0] sm:$0xff] }
 0x35c   :  { %v6721_v2 = vcombine.low %v1136_v40, %v1140_v41 }
 0x35d   :  { %2729 = vmatpush1.bf16.msra.mxu0 %v6657_v56  ;;  %v6722_v56 = vcombine.high %v1136_v40, %v1140_v41  ;;  %v1193_v40 = vld [vmem:[#allocation10 + $0x758] sm:$0xff] }
 0x35e   :  { %2811 = vmatpush1.bf16.msra.mxu1 %v6659_v59  ;;  %2730 = vmatprep.subr.bf16.mxu0 %v6666_v60  ;;  %v6724_v59 = vcombine.high %v1137_v43, %v1141_v45  ;;  %v1144_v60 = vld [vmem:[#allocation10 + $0x5d0] sm:$0xff]  ;;  %v1197_v41 = vld [vmem:[#allocation10 + $0x778] sm:$0xff]  ;;  %v6771_v45 = vcombine.low %v1185_v15, %v1189_v48 }
 0x35f   :  { %2812 = vmatprep.subr.bf16.mxu1 %v6668_v62  ;;  %v1148_v62 = vld [vmem:[#allocation10 + $0x5f0] sm:$0xff] }
 0x361   :  { %2731 = vmatpush1.bf16.msra.mxu0 %v6665_v5  ;;  %v6730_v5 = vcombine.high %v1144_v60, %v1148_v62 }
 0x362   :  { %2813 = vmatpush1.bf16.msra.mxu1 %v6667_v61  ;;  %2741 = vmatprep.subr.bf16.mxu0 %v6674_v6  ;;  %v6732_v61 = vcombine.high %v1145_v63, %v1149_v1  ;;  %v1152_v6 = vld [vmem:[#allocation10 + $0x610] sm:$0xff]  ;;  %v6779_v1 = vcombine.low %v1193_v40, %v1197_v41 }
 0x363   :  { %2823 = vmatprep.subr.bf16.mxu1 %v6676_v7  ;;  %v1156_v7 = vld [vmem:[#allocation10 + $0x630] sm:$0xff] }
 0x364   :  { %2733 = vmatmul.mubr.bf16.vlgmr.msra.gmra.mrb[8].mxu0 %v8685_v31  ;;  %v6738_v17 = vcombine.high %v1152_v6, %v1156_v7 }
 0x365   :  { %2815 = vmatmul.mubr.bf16.vlgmr.msra.gmra.mrb[16].mxu1 %v8685_v31  ;;  %2742 = vmatpush1.bf16.msra.mxu0 %v6673_v12  ;;  %v6691_v31 = vcombine.low %v1105_v30, %v1109_v23  ;;  %v6729_v12 = vcombine.low %v1144_v60, %v1148_v62  ;;  %v6737_v30 = vcombine.low %v1152_v6, %v1156_v7  ;;  %v1201_v60 = vld [vmem:[#allocation10 + $0x798] sm:$0xff] }
 0x366   :  { %2773 = vmatprep.mubr.bf16.mxu0 %v8707_v55  ;;  %2824 = vmatpush1.bf16.msra.mxu1 %v6675_v18  ;;  %v6740_v18 = vcombine.high %v1153_v10, %v1157_v11  ;;  %v6739_v23 = vcombine.low %v1153_v10, %v1157_v11  ;;  %v1205_v62 = vld [vmem:[#allocation10 + $0x7b8] sm:$0xff] }
 0x367   :  { %2855 = vmatprep.mubr.bf16.mxu1 %v8707_v55  ;;  %2743 = vmatprep.subr.bf16.mxu0 %v6682_v19  ;;  %v6697_v55 = vcombine.low %v1112_v9, %v1116_v27  ;;  %v1160_v19 = vld [vmem:[#allocation10 + $0x650] sm:$0xff]  ;;  %v1169_v9 = vld [vmem:[#allocation10 + $0x698] sm:$0xff]  ;;  %v6787_v11 = vcombine.low %v1201_v60, %v1205_v62 }
 0x368   :  { %2825 = vmatprep.subr.bf16.mxu1 %v6684_v22  ;;  %v1165_v22 = vld [vmem:[#allocation10 + $0x678] sm:$0xff]  ;;  %v6745_v28 = vcombine.low %v1160_v19, %v1164_v20 }
 0x369   :  { %2744 = vmatpush1.bf16.msra.mxu0 %v6681_v24  ;;  %v6746_v24 = vcombine.high %v1160_v19, %v1164_v20  ;;  %v1173_v27 = vld [vmem:[#allocation10 + $0x6b8] sm:$0xff]  ;;  %v6747_v29 = vcombine.low %v1161_v21, %v1165_v22  ;;  %v7573_v19 = vld [vmem:[#allocation13 + $0x4] ss:$28 sps:$4 sm:$0xff]   ;;  %v7576_v20 = vld [vmem:[#allocation13 + $0xc] ss:$28 sps:$4 sm:$0xff]  }
 0x36a   :  { %2826 = vmatpush1.bf16.msra.mxu1 %v6683_v25  ;;  %2745 = vmatprep.subr.bf16.mxu0 %v6690_v26  ;;  %v6748_v25 = vcombine.high %v1161_v21, %v1165_v22  ;;  %v1168_v26 = vld [vmem:[#allocation10 + $0x690] sm:$0xff]  ;;  %v6755_v38 = vcombine.low %v1169_v9, %v1173_v27  ;;  %v1209_v6 = vld [vmem:[#allocation10 + $0x7d8] sm:$0xff]  ;;  %v7571_v21 = vld [vmem:[#allocation13] ss:$28 sps:$4 sm:$0xff]  }
 0x36b   :  { %2827 = vmatprep.subr.bf16.mxu1 %v6692_v8  ;;  %v1172_v8 = vld [vmem:[#allocation10 + $0x6b0] sm:$0xff]  ;;  %v1213_v7 = vld [vmem:[#allocation10 + $0x7f8] sm:$0xff] }
 0x36c   :  { %v6753_v37 = vcombine.low %v1168_v26, %v1172_v8  ;;  %v7574_v22 = vld [vmem:[#allocation13 + $0x8] ss:$28 sps:$4 sm:$0xff]  }
 0x36d   :  { %2746 = vmatpush1.bf16.msra.mxu0 %v6689_v32  ;;  %v6754_v32 = vcombine.high %v1168_v26, %v1172_v8  ;;  %v7585_v26 = vld [vmem:[#allocation13 + $0x74] ss:$28 sps:$4 sm:$0xff]   ;;  %v7588_v8 = vld [vmem:[#allocation13 + $0x7c] ss:$28 sps:$4 sm:$0xff]  }
 0x36e   :  { %2828 = vmatpush1.bf16.msra.mxu1 %v6691_v31  ;;  %2747 = vmatprep.subr.bf16.mxu0 %v6698_v33  ;;  %v6756_v31 = vcombine.high %v1169_v9, %v1173_v27  ;;  %v1176_v33 = vld [vmem:[#allocation10 + $0x6d0] sm:$0xff]  ;;  %v7586_v27 = vld [vmem:[#allocation13 + $0x78] ss:$28 sps:$4 sm:$0xff]  }
 0x36f   :  { %2829 = vmatprep.subr.bf16.mxu1 %v6700_v34  ;;  %v1180_v34 = vld [vmem:[#allocation10 + $0x6f0] sm:$0xff] }
 0x370   :  { %v6761_v49 = vcombine.low %v1176_v33, %v1180_v34  ;;  %v7583_v9 = vld [vmem:[#allocation13 + $0x70] ss:$28 sps:$4 sm:$0xff]  }
 0x371   :  { %2748 = vmatpush1.bf16.msra.mxu0 %v6697_v55  ;;  %v6762_v55 = vcombine.high %v1176_v33, %v1180_v34  ;;  %v7600_v33 = vld [vmem:[#allocation13 + $0xec] ss:$28 sps:$4 sm:$0xff]   ;;  %v7595_v34 = vld [vmem:[#allocation13 + $0xe0] ss:$28 sps:$4 sm:$0xff]  }
 0x372   :  { %2830 = vmatpush1.bf16.msra.mxu1 %v6699_v42  ;;  %2749 = vmatprep.subr.bf16.mxu0 %v6706_v44  ;;  %v6764_v42 = vcombine.high %v1177_v35, %v1181_v36  ;;  %v1184_v44 = vld [vmem:[#allocation10 + $0x710] sm:$0xff]  ;;  %v7603_v36 = vld [vmem:[#allocation13 + $0x11c] ss:$28 sps:$4 sm:$0xff]  }
 0x373   :  { %2831 = vmatprep.subr.bf16.mxu1 %v6708_v47  ;;  %v1188_v47 = vld [vmem:[#allocation10 + $0x730] sm:$0xff] }
 0x374   :  { %v6769_v43 = vcombine.low %v1184_v44, %v1188_v47  ;;  %v7598_v35 = vld [vmem:[#allocation13 + $0xe8] ss:$28 sps:$4 sm:$0xff]  }
 0x375   :  { %2750 = vmatpush1.bf16.msra.mxu0 %v6705_v51  ;;  %v6770_v51 = vcombine.high %v1184_v44, %v1188_v47  ;;  %v7612_v44 = vld [vmem:[#allocation13 + $0x15c] ss:$28 sps:$4 sm:$0xff]   ;;  %v7607_v47 = vld [vmem:[#allocation13 + $0x150] ss:$28 sps:$4 sm:$0xff]  }
 0x376   :  { %2832 = vmatpush1.bf16.msra.mxu1 %v6707_v52  ;;  %2751 = vmatprep.subr.bf16.mxu0 %v6714_v53  ;;  %v6772_v52 = vcombine.high %v1185_v15, %v1189_v48  ;;  %v1192_v53 = vld [vmem:[#allocation10 + $0x750] sm:$0xff]  ;;  %v7610_v15 = vld [vmem:[#allocation13 + $0x158] ss:$28 sps:$4 sm:$0xff]  }
 0x377   :  { %2833 = vmatprep.subr.bf16.mxu1 %v6716_v39  ;;  %v1196_v39 = vld [vmem:[#allocation10 + $0x770] sm:$0xff] }
 0x378   :  { %v6777_v63 = vcombine.low %v1192_v53, %v1196_v39  ;;  %v7615_v48 = vld [vmem:[#allocation13 + $0x18c] ss:$28 sps:$4 sm:$0xff]  }
 0x379   :  { %2752 = vmatpush1.bf16.msra.mxu0 %v6713_v46  ;;  %v6778_v46 = vcombine.high %v1192_v53, %v1196_v39  ;;  %v7624_v53 = vld [vmem:[#allocation13 + $0x1cc] ss:$28 sps:$4 sm:$0xff]   ;;  %v7619_v39 = vld [vmem:[#allocation13 + $0x1c0] ss:$28 sps:$4 sm:$0xff]  }
 0x37a   :  { %2834 = vmatpush1.bf16.msra.mxu1 %v6715_v54  ;;  %2753 = vmatprep.subr.bf16.mxu0 %v6722_v56  ;;  %v6780_v54 = vcombine.high %v1193_v40, %v1197_v41  ;;  %v1200_v56 = vld [vmem:[#allocation10 + $0x790] sm:$0xff]  ;;  %v7627_v41 = vld [vmem:[#allocation13 + $0x1fc] ss:$28 sps:$4 sm:$0xff]  }
 0x37b   :  { %2835 = vmatprep.subr.bf16.mxu1 %v6724_v59  ;;  %v1204_v59 = vld [vmem:[#allocation10 + $0x7b0] sm:$0xff] }
 0x37c   :  { %v6785_v10 = vcombine.low %v1200_v56, %v1204_v59  ;;  %v7622_v40 = vld [vmem:[#allocation13 + $0x1c8] ss:$28 sps:$4 sm:$0xff]  }
 0x37d   :  { %2754 = vmatpush1.bf16.msra.mxu0 %v6721_v2  ;;  %v6786_v2 = vcombine.high %v1200_v56, %v1204_v59  ;;  %v7636_v56 = vld [vmem:[#allocation13 + $0x23c] ss:$28 sps:$4 sm:$0xff]   ;;  %v7631_v59 = vld [vmem:[#allocation13 + $0x230] ss:$28 sps:$4 sm:$0xff]  }
 0x37e   :  { %2836 = vmatpush1.bf16.msra.mxu1 %v6723_v4  ;;  %2755 = vmatprep.subr.bf16.mxu0 %v6730_v5  ;;  %v6788_v4 = vcombine.high %v1201_v60, %v1205_v62  ;;  %v1208_v5 = vld [vmem:[#allocation10 + $0x7d0] sm:$0xff]  ;;  %v7634_v60 = vld [vmem:[#allocation13 + $0x238] ss:$28 sps:$4 sm:$0xff]  }
 0x37f   :  { %2837 = vmatprep.subr.bf16.mxu1 %v6732_v61  ;;  %v1212_v61 = vld [vmem:[#allocation10 + $0x7f0] sm:$0xff] }
 0x380   :  { %v7639_v62 = vld [vmem:[#allocation13 + $0x26c] ss:$28 sps:$4 sm:$0xff]  }
 0x381   :  { %2756 = vmatpush1.bf16.msra.mxu0 %v6729_v12  ;;  %v6794_v12 = vcombine.high %v1208_v5, %v1212_v61 }
 0x382   :  { %2838 = vmatpush1.bf16.msra.mxu1 %v6731_v14  ;;  %2757 = vmatprep.subr.bf16.mxu0 %v6738_v17  ;;  %v6796_v14 = vcombine.high %v1209_v6, %v1213_v7  ;;  %v6793_v17 = vcombine.low %v1208_v5, %v1212_v61  ;;  %v7648_v5 = vld [vmem:[#allocation13 + $0x2ac] ss:$28 sps:$4 sm:$0xff]   ;;  %v7643_v61 = vld [vmem:[#allocation13 + $0x2a0] ss:$28 sps:$4 sm:$0xff]  }
 0x383   :  { %2839 = vmatprep.subr.bf16.mxu1 %v6740_v18  ;;  %v6795_v18 = vcombine.low %v1209_v6, %v1213_v7  ;;  %v7646_v6 = vld [vmem:[#allocation13 + $0x2a8] ss:$28 sps:$4 sm:$0xff]   ;;  %v7651_v7 = vld [vmem:[#allocation13 + $0x2dc] ss:$28 sps:$4 sm:$0xff]  }
 0x385   :  { %2758 = vmatpush1.bf16.msra.mxu0 %v6737_v30  ;;  %v7579_v30 = vld [vmem:[#allocation13 + $0x3c] ss:$28 sps:$4 sm:$0xff]  }
 0x386   :  { %2840 = vmatpush1.bf16.msra.mxu1 %v6739_v23  ;;  %2759 = vmatprep.subr.bf16.mxu0 %v6746_v24  ;;  %v7582_v23 = vld [vmem:[#allocation13 + $0x44] ss:$28 sps:$4 sm:$0xff]   ;;  %v7577_v24 = vld [vmem:[#allocation13 + $0x38] ss:$28 sps:$4 sm:$0xff]  }
 0x387   :  { %2841 = vmatprep.subr.bf16.mxu1 %v6748_v25  ;;  %v7580_v25 = vld [vmem:[#allocation13 + $0x40] ss:$28 sps:$4 sm:$0xff]  }
 0x389   :  { %2760 = vmatpush1.bf16.msra.mxu0 %v6745_v28  ;;  %v7591_v28 = vld [vmem:[#allocation13 + $0xac] ss:$28 sps:$4 sm:$0xff]  }
 0x38a   :  { %2842 = vmatpush1.bf16.msra.mxu1 %v6747_v29  ;;  %2761 = vmatprep.subr.bf16.mxu0 %v6754_v32  ;;  %v7594_v29 = vld [vmem:[#allocation13 + $0xb4] ss:$28 sps:$4 sm:$0xff]   ;;  %v7589_v32 = vld [vmem:[#allocation13 + $0xa8] ss:$28 sps:$4 sm:$0xff]  }
 0x38b   :  { %2843 = vmatprep.subr.bf16.mxu1 %v6756_v31  ;;  %v7597_v31 = vld [vmem:[#allocation13 + $0xe4] ss:$28 sps:$4 sm:$0xff]  }
 0x38d   :  { %2762 = vmatpush1.bf16.msra.mxu0 %v6753_v37  ;;  %v7606_v37 = vld [vmem:[#allocation13 + $0x124] ss:$28 sps:$4 sm:$0xff]  }
 0x38e   :  { %2844 = vmatpush1.bf16.msra.mxu1 %v6755_v38  ;;  %2763 = vmatprep.subr.bf16.mxu0 %v6762_v55  ;;  %v7601_v38 = vld [vmem:[#allocation13 + $0x118] ss:$28 sps:$4 sm:$0xff]   ;;  %v7604_v55 = vld [vmem:[#allocation13 + $0x120] ss:$28 sps:$4 sm:$0xff]  }
 0x38f   :  { %2845 = vmatprep.subr.bf16.mxu1 %v6764_v42  ;;  %v7609_v42 = vld [vmem:[#allocation13 + $0x154] ss:$28 sps:$4 sm:$0xff]  }
 0x391   :  { %2764 = vmatpush1.bf16.msra.mxu0 %v6761_v49  ;;  %v7618_v49 = vld [vmem:[#allocation13 + $0x194] ss:$28 sps:$4 sm:$0xff]  }
 0x392   :  { %2846 = vmatpush1.bf16.msra.mxu1 %v6763_v50  ;;  %2765 = vmatprep.subr.bf16.mxu0 %v6770_v51  ;;  %v7613_v50 = vld [vmem:[#allocation13 + $0x188] ss:$28 sps:$4 sm:$0xff]   ;;  %v7616_v51 = vld [vmem:[#allocation13 + $0x190] ss:$28 sps:$4 sm:$0xff]  }
 0x393   :  { %2847 = vmatprep.subr.bf16.mxu1 %v6772_v52  ;;  %v7621_v52 = vld [vmem:[#allocation13 + $0x1c4] ss:$28 sps:$4 sm:$0xff]  }
 0x395   :  { %2766 = vmatpush1.bf16.msra.mxu0 %v6769_v43  ;;  %v7630_v43 = vld [vmem:[#allocation13 + $0x204] ss:$28 sps:$4 sm:$0xff]  }
 0x396   :  { %2848 = vmatpush1.bf16.msra.mxu1 %v6771_v45  ;;  %2767 = vmatprep.subr.bf16.mxu0 %v6778_v46  ;;  %v7625_v45 = vld [vmem:[#allocation13 + $0x1f8] ss:$28 sps:$4 sm:$0xff]   ;;  %v7628_v46 = vld [vmem:[#allocation13 + $0x200] ss:$28 sps:$4 sm:$0xff]  }
 0x397   :  { %2849 = vmatprep.subr.bf16.mxu1 %v6780_v54  ;;  %v7633_v54 = vld [vmem:[#allocation13 + $0x234] ss:$28 sps:$4 sm:$0xff]  }
 0x399   :  { %2768 = vmatpush1.bf16.msra.mxu0 %v6777_v63  ;;  %v7642_v63 = vld [vmem:[#allocation13 + $0x274] ss:$28 sps:$4 sm:$0xff]  }
 0x39a   :  { %2850 = vmatpush1.bf16.msra.mxu1 %v6779_v1  ;;  %2769 = vmatprep.subr.bf16.mxu0 %v6786_v2  ;;  %v7637_v1 = vld [vmem:[#allocation13 + $0x268] ss:$28 sps:$4 sm:$0xff]   ;;  %v7640_v2 = vld [vmem:[#allocation13 + $0x270] ss:$28 sps:$4 sm:$0xff]  }
 0x39b   :  { %2851 = vmatprep.subr.bf16.mxu1 %v6788_v4  ;;  %v7645_v4 = vld [vmem:[#allocation13 + $0x2a4] ss:$28 sps:$4 sm:$0xff]  }
 0x39d   :  { %2770 = vmatpush1.bf16.msra.mxu0 %v6785_v10  ;;  %v7654_v10 = vld [vmem:[#allocation13 + $0x2e4] ss:$28 sps:$4 sm:$0xff]  }
 0x39e   :  { %2852 = vmatpush1.bf16.msra.mxu1 %v6787_v11  ;;  %2771 = vmatprep.subr.bf16.mxu0 %v6794_v12  ;;  %v7649_v11 = vld [vmem:[#allocation13 + $0x2d8] ss:$28 sps:$4 sm:$0xff]   ;;  %v7652_v12 = vld [vmem:[#allocation13 + $0x2e0] ss:$28 sps:$4 sm:$0xff]  }
 0x39f   :  { %2853 = vmatprep.subr.bf16.mxu1 %v6796_v14  ;;  %v7657_v14 = vld [vmem:[#allocation13 + $0x314] ss:$28 sps:$4 sm:$0xff]  }
 0x3a1   :  { %2772 = vmatpush1.bf16.msra.mxu0 %v6793_v17  ;;  %v7660_v17 = vld [vmem:[#allocation13 + $0x31c] ss:$28 sps:$4 sm:$0xff]  }
 0x3a2   :  { %2854 = vmatpush1.bf16.msra.mxu1 %v6795_v18  ;;  %5741 = vmatprep.subr.bf16.mxu0 %v7573_v19  ;;  %v7655_v18 = vld [vmem:[#allocation13 + $0x310] ss:$28 sps:$4 sm:$0xff]   ;;  %v7658_v19 = vld [vmem:[#allocation13 + $0x318] ss:$28 sps:$4 sm:$0xff]  }
 0x3a3   :  { %5905 = vmatprep.subr.bf16.mxu1 %v7576_v20  ;;  %v7663_v20 = vld [vmem:[#allocation13 + $0x34c] ss:$28 sps:$4 sm:$0xff]  }
 0x3a4   :  { %2774 = vmatmul.mubr.bf16.vlgmr.msra.gmra.mrb[8].mxu0 %v8709_v57 }
 0x3a5   :  { %2856 = vmatmul.mubr.bf16.vlgmr.msra.gmra.mrb[16].mxu1 %v8709_v57  ;;  %5742 = vmatpush1.bf16.msra.mxu0 %v7571_v21  ;;  %v7592_v57 = vld [vmem:[#allocation13 + $0xb0] ss:$28 sps:$4 sm:$0xff]  }
 0x3a6   :  { %5906 = vmatpush1.bf16.msra.mxu1 %v7574_v22  ;;  %5743 = vmatprep.subr.bf16.mxu0 %v7579_v30  ;;  %v7666_v21 = vld [vmem:[#allocation13 + $0x354] ss:$28 sps:$4 sm:$0xff]   ;;  %v7661_v22 = vld [vmem:[#allocation13 + $0x348] ss:$28 sps:$4 sm:$0xff]  }
 0x3a7   :  { %5907 = vmatprep.subr.bf16.mxu1 %v7582_v23  ;;  %v7664_v30 = vld [vmem:[#allocation13 + $0x350] ss:$28 sps:$4 sm:$0xff]   ;;  %v7669_v23 = vld [vmem:[#allocation13 + $0x384] ss:$28 sps:$4 sm:$0xff]  }
 0x3a9   :  { %5744 = vmatpush1.bf16.msra.mxu0 %v7577_v24  ;;  %v7672_v24 = vld [vmem:[#allocation13 + $0x38c] ss:$28 sps:$4 sm:$0xff]  }
 0x3aa   :  { %5908 = vmatpush1.bf16.msra.mxu1 %v7580_v25  ;;  %5745 = vmatprep.subr.bf16.mxu0 %v7585_v26  ;;  %v8723_v25 = vld [vmem:[#allocation12] sm:$0xff] }
 0x3ab   :  { %5909 = vmatprep.subr.bf16.mxu1 %v7588_v8  ;;  %v1219_v26 = vrot.slane %v8723_v25, %v8648_v0  ;;  %v1223_v8 = vrot.slane %v8723_v25, %v8651_v3 }
 0x3ad   :  { %5746 = vmatpush1.bf16.msra.mxu0 %v7583_v9  ;;  %v1231_v9 = vrot.slane %v8723_v25, %v8701_v16 }
 0x3ae   :  { %5910 = vmatpush1.bf16.msra.mxu1 %v7586_v27  ;;  %5747 = vmatprep.subr.bf16.mxu0 %v7591_v28 }
 0x3af   :  { %5911 = vmatprep.subr.bf16.mxu1 %v7594_v29 }
 0x3b1   :  { %5748 = vmatpush1.bf16.msra.mxu0 %v7589_v32 }
 0x3b2   :  { %5912 = vmatpush1.bf16.msra.mxu1 %v7592_v57  ;;  %5749 = vmatprep.subr.bf16.mxu0 %v7597_v31 }
 0x3b3   :  { %5913 = vmatprep.subr.bf16.mxu1 %v7600_v33 }
 0x3b5   :  { %5750 = vmatpush1.bf16.msra.mxu0 %v7595_v34 }
 0x3b6   :  { %5914 = vmatpush1.bf16.msra.mxu1 %v7598_v35  ;;  %5751 = vmatprep.subr.bf16.mxu0 %v7603_v36 }
 0x3b7   :  { %5915 = vmatprep.subr.bf16.mxu1 %v7606_v37 }
 0x3b9   :  { %5752 = vmatpush1.bf16.msra.mxu0 %v7601_v38 }
 0x3ba   :  { %5916 = vmatpush1.bf16.msra.mxu1 %v7604_v55  ;;  %5753 = vmatprep.subr.bf16.mxu0 %v7609_v42 }
 0x3bb   :  { %5917 = vmatprep.subr.bf16.mxu1 %v7612_v44 }
 0x3bd   :  { %5754 = vmatpush1.bf16.msra.mxu0 %v7607_v47 }
 0x3be   :  { %5918 = vmatpush1.bf16.msra.mxu1 %v7610_v15  ;;  %5755 = vmatprep.subr.bf16.mxu0 %v7615_v48 }
 0x3bf   :  { %5919 = vmatprep.subr.bf16.mxu1 %v7618_v49  ;;  %v7667_v49 = vld [vmem:[#allocation13 + $0x380] ss:$28 sps:$4 sm:$0xff]  }
 0x3c1   :  { %5756 = vmatpush1.bf16.msra.mxu0 %v7613_v50  ;;  %v7670_v50 = vld [vmem:[#allocation13 + $0x388] ss:$28 sps:$4 sm:$0xff]  }
 0x3c2   :  { %5920 = vmatpush1.bf16.msra.mxu1 %v7616_v51  ;;  %5757 = vmatprep.subr.bf16.mxu0 %v7621_v52  ;;  %v7675_v52 = vld [vmem:[#allocation13 + $0x3bc] ss:$28 sps:$4 sm:$0xff]  }
 0x3c3   :  { %5921 = vmatprep.subr.bf16.mxu1 %v7624_v53  ;;  %v7678_v53 = vld [vmem:[#allocation13 + $0x3c4] ss:$28 sps:$4 sm:$0xff]  }
 0x3c5   :  { %5758 = vmatpush1.bf16.msra.mxu0 %v7619_v39 }
 0x3c6   :  { %5922 = vmatpush1.bf16.msra.mxu1 %v7622_v40  ;;  %5759 = vmatprep.subr.bf16.mxu0 %v7627_v41  ;;  %v7673_v40 = vld [vmem:[#allocation13 + $0x3b8] ss:$28 sps:$4 sm:$0xff]   ;;  %v7676_v41 = vld [vmem:[#allocation13 + $0x3c0] ss:$28 sps:$4 sm:$0xff]  }
 0x3c7   :  { %5923 = vmatprep.subr.bf16.mxu1 %v7630_v43  ;;  %v7681_v43 = vld [vmem:[#allocation13 + $0x3f4] ss:$28 sps:$4 sm:$0xff]  }
 0x3c9   :  { %5760 = vmatpush1.bf16.msra.mxu0 %v7625_v45  ;;  %v7684_v45 = vld [vmem:[#allocation13 + $0x3fc] ss:$28 sps:$4 sm:$0xff]  }
 0x3ca   :  { %5924 = vmatpush1.bf16.msra.mxu1 %v7628_v46  ;;  %5761 = vmatprep.subr.bf16.mxu0 %v7633_v54  ;;  %v7679_v46 = vld [vmem:[#allocation13 + $0x3f0] ss:$28 sps:$4 sm:$0xff]   ;;  %v7682_v54 = vld [vmem:[#allocation13 + $0x3f8] ss:$28 sps:$4 sm:$0xff]  }
 0x3cb   :  { %5925 = vmatprep.subr.bf16.mxu1 %v7636_v56  ;;  %v7687_v56 = vld [vmem:[#allocation13 + $0x42c] ss:$28 sps:$4 sm:$0xff]  }
 0x3cd   :  { %5762 = vmatpush1.bf16.msra.mxu0 %v7631_v59  ;;  %v7690_v59 = vld [vmem:[#allocation13 + $0x434] ss:$28 sps:$4 sm:$0xff]  }
 0x3ce   :  { %5926 = vmatpush1.bf16.msra.mxu1 %v7634_v60  ;;  %5763 = vmatprep.subr.bf16.mxu0 %v7639_v62  ;;  %v7685_v60 = vld [vmem:[#allocation13 + $0x428] ss:$28 sps:$4 sm:$0xff]   ;;  %v7688_v62 = vld [vmem:[#allocation13 + $0x430] ss:$28 sps:$4 sm:$0xff]  }
 0x3cf   :  { %5927 = vmatprep.subr.bf16.mxu1 %v7642_v63  ;;  %v7693_v63 = vld [vmem:[#allocation13 + $0x464] ss:$28 sps:$4 sm:$0xff]  }
 0x3d1   :  { %5764 = vmatpush1.bf16.msra.mxu0 %v7637_v1  ;;  %v7696_v1 = vld [vmem:[#allocation13 + $0x46c] ss:$28 sps:$4 sm:$0xff]  }
 0x3d2   :  { %5928 = vmatpush1.bf16.msra.mxu1 %v7640_v2  ;;  %5765 = vmatprep.subr.bf16.mxu0 %v7645_v4  ;;  %v7691_v2 = vld [vmem:[#allocation13 + $0x460] ss:$28 sps:$4 sm:$0xff]   ;;  %v7694_v4 = vld [vmem:[#allocation13 + $0x468] ss:$28 sps:$4 sm:$0xff]  }
 0x3d3   :  { %5929 = vmatprep.subr.bf16.mxu1 %v7648_v5  ;;  %v7699_v5 = vld [vmem:[#allocation13 + $0x49c] ss:$28 sps:$4 sm:$0xff]  }
 0x3d5   :  { %5766 = vmatpush1.bf16.msra.mxu0 %v7643_v61  ;;  %v7702_v61 = vld [vmem:[#allocation13 + $0x4a4] ss:$28 sps:$4 sm:$0xff]  }
 0x3d6   :  { %5930 = vmatpush1.bf16.msra.mxu1 %v7646_v6  ;;  %5767 = vmatprep.subr.bf16.mxu0 %v7651_v7  ;;  %v7697_v6 = vld [vmem:[#allocation13 + $0x498] ss:$28 sps:$4 sm:$0xff]   ;;  %v7700_v7 = vld [vmem:[#allocation13 + $0x4a0] ss:$28 sps:$4 sm:$0xff]  }
 0x3d7   :  { %5931 = vmatprep.subr.bf16.mxu1 %v7654_v10  ;;  %v7705_v10 = vld [vmem:[#allocation13 + $0x4d4] ss:$28 sps:$4 sm:$0xff]  }
 0x3d9   :  { %5768 = vmatpush1.bf16.msra.mxu0 %v7649_v11  ;;  %v7708_v11 = vld [vmem:[#allocation13 + $0x4dc] ss:$28 sps:$4 sm:$0xff]  }
 0x3da   :  { %5932 = vmatpush1.bf16.msra.mxu1 %v7652_v12  ;;  %5769 = vmatprep.subr.bf16.mxu0 %v7657_v14  ;;  %v7703_v12 = vld [vmem:[#allocation13 + $0x4d0] ss:$28 sps:$4 sm:$0xff]   ;;  %v7706_v14 = vld [vmem:[#allocation13 + $0x4d8] ss:$28 sps:$4 sm:$0xff]  }
 0x3db   :  { %5933 = vmatprep.subr.bf16.mxu1 %v7660_v17  ;;  %v7711_v17 = vld [vmem:[#allocation13 + $0x50c] ss:$28 sps:$4 sm:$0xff]  }
 0x3dd   :  { %5770 = vmatpush1.bf16.msra.mxu0 %v7655_v18  ;;  %v7714_v18 = vld [vmem:[#allocation13 + $0x514] ss:$28 sps:$4 sm:$0xff]  }
 0x3de   :  { %5934 = vmatpush1.bf16.msra.mxu1 %v7658_v19  ;;  %5771 = vmatprep.subr.bf16.mxu0 %v7663_v20  ;;  %v7709_v19 = vld [vmem:[#allocation13 + $0x508] ss:$28 sps:$4 sm:$0xff]   ;;  %v7712_v20 = vld [vmem:[#allocation13 + $0x510] ss:$28 sps:$4 sm:$0xff]  }
 0x3df   :  { %5935 = vmatprep.subr.bf16.mxu1 %v7666_v21  ;;  %v7717_v21 = vld [vmem:[#allocation13 + $0x544] ss:$28 sps:$4 sm:$0xff]  }
 0x3e1   :  { %5772 = vmatpush1.bf16.msra.mxu0 %v7661_v22  ;;  %v7720_v22 = vld [vmem:[#allocation13 + $0x54c] ss:$28 sps:$4 sm:$0xff]  }
 0x3e2   :  { %5936 = vmatpush1.bf16.msra.mxu1 %v7664_v30  ;;  %5782 = vmatprep.subr.bf16.mxu0 %v7669_v23  ;;  %v7715_v30 = vld [vmem:[#allocation13 + $0x540] ss:$28 sps:$4 sm:$0xff]   ;;  %v7718_v23 = vld [vmem:[#allocation13 + $0x548] ss:$28 sps:$4 sm:$0xff]  }
 0x3e3   :  { %5946 = vmatprep.subr.bf16.mxu1 %v7672_v24  ;;  %v7723_v24 = vld [vmem:[#allocation13 + $0x57c] ss:$28 sps:$4 sm:$0xff]  }
 0x3f7   :  { %v2611_v27 = vpop.f32.mrb[4].mxu0  ;;  %v8731_v28 = vpop.f32.mrb[12].mxu1 }
 0x3f8   :  { %v7341_v29 = vadd.f32 %v2611_v27, %v1219_v26  ;;  %v2613_v32 = vpop.f32.mrb[5].mxu0  ;;  %v2695_v57 = vpop.f32.mrb[13].mxu1  ;;  %v7726_v26 = vld [vmem:[#allocation13 + $0x584] ss:$28 sps:$4 sm:$0xff]   ;;  %v7729_v27 = vld [vmem:[#allocation13 + $0x5b4] ss:$28 sps:$4 sm:$0xff]  }
 0x3f9   :  { %v7342_v31 = vadd.f32 %v2613_v32, %v1223_v8  ;;  %v7344_v33 = vadd.f32 %v2695_v57, %v1231_v9  ;;  %v2615_v34 = vpop.f32.mrb[6].mxu0  ;;  %v2697_v35 = vpop.f32.mrb[14].mxu1  ;;  %v7721_v8 = vld [vmem:[#allocation13 + $0x578] ss:$28 sps:$4 sm:$0xff]   ;;  %v7724_v9 = vld [vmem:[#allocation13 + $0x580] ss:$28 sps:$4 sm:$0xff]  }
 0x3fa   :  { %v2864_v36 = vmul.f32 0.2, %v7341_v29  ;;  %v2616_v37 = vpop.f32.mrb[7].mxu0  ;;  %v2698_v38 = vpop.f32.mrb[15].mxu1  ;;  %v7727_v32 = vld [vmem:[#allocation13 + $0x5b0] ss:$28 sps:$4 sm:$0xff]  }
 0x3fb   :  { %v2865_v55 = vmul.f32 0.2, %v7342_v31  ;;  %v2867_v42 = vmul.f32 0.2, %v7344_v33  ;;  %v7730_v57 = vld [vmem:[#allocation13 + $0x5b8] ss:$28 sps:$4 sm:$0xff]  }
 0x3fc   :  { %v2872_v44 = vmax.f32 %v7341_v29, %v2864_v36  ;;  %v7732_v29 = vld [vmem:[#allocation13 + $0x5bc] ss:$28 sps:$4 sm:$0xff]   ;;  %v7733_v34 = vld [vmem:[#allocation13 + $0x5e8] ss:$28 sps:$4 sm:$0xff]   ;;  %v7736_v35 = vld [vmem:[#allocation13 + $0x5f0] ss:$28 sps:$4 sm:$0xff]  }
 0x3fd   :  { %v2873_v47 = vmax.f32 %v7342_v31, %v2865_v55  ;;  %v2875_v15 = vmax.f32 %v7344_v33, %v2867_v42  ;;  %v7735_v31 = vld [vmem:[#allocation13 + $0x5ec] ss:$28 sps:$4 sm:$0xff]   ;;  %v7738_v33 = vld [vmem:[#allocation13 + $0x5f4] ss:$28 sps:$4 sm:$0xff]   ;;  %v7741_v36 = vld [vmem:[#allocation13 + $0x624] ss:$28 sps:$4 sm:$0xff]   ;;  %v1227_v42 = vrot.slane %v8723_v25, %v8698_v13 }
 0x3fe   :  { %v8735_v51 = vpack.c.bf16 %v2872_v44, %v2872_v44  ;;  %v7744_v37 = vld [vmem:[#allocation13 + $0x62c] ss:$28 sps:$4 sm:$0xff]   ;;  %v7739_v38 = vld [vmem:[#allocation13 + $0x620] ss:$28 sps:$4 sm:$0xff]  }
 0x3ff   :  { %v8733_v48 = vpack.c.bf16 %v2873_v47, %v2873_v47  ;;  %v8739_v39 = vpack.c.bf16 %v2875_v15, %v2875_v15  ;;  %v7742_v55 = vld [vmem:[#allocation13 + $0x628] ss:$28 sps:$4 sm:$0xff]   ;;  %v7747_v44 = vld [vmem:[#allocation13 + $0x65c] ss:$28 sps:$4 sm:$0xff]  }
 0x400   :  { %v7750_v47 = vld [vmem:[#allocation13 + $0x664] ss:$28 sps:$4 sm:$0xff]   ;;  %v7745_v15 = vld [vmem:[#allocation13 + $0x658] ss:$28 sps:$4 sm:$0xff]  }
 0x401   :  { %5773 = vmatprep.mubr.bf16.mxu0 %v8733_v48  ;;  %5937 = vmatprep.mubr.bf16.mxu1 %v8733_v48 }
 0x402   :  { %5774 = vmatmul.mubr.bf16.vlgmr.msra.gmra.mrb[12].mxu0 %v8735_v51  ;;  %5938 = vmatmul.mubr.bf16.vlgmr.msra.gmra.mrb[20].mxu1 %v8735_v51 }
 0x403   :  { %5783 = vmatpush1.bf16.msra.mxu0 %v7667_v49  ;;  %5947 = vmatpush1.bf16.msra.mxu1 %v7670_v50  ;;  %v7748_v49 = vld [vmem:[#allocation13 + $0x660] ss:$28 sps:$4 sm:$0xff]   ;;  %v7343_v50 = vadd.f32 %v8731_v28, %v1227_v42  ;;  %v7817_v42 = vld [vmem:[#allocation13 + $0x8f8] ss:$28 sps:$4 sm:$0xff]  }
 0x404   :  { %5814 = vmatprep.mubr.bf16.mxu0 %v8739_v39  ;;  %5978 = vmatprep.mubr.bf16.mxu1 %v8739_v39  ;;  %v7765_v28 = vld [vmem:[#allocation13 + $0x704] ss:$28 sps:$4 sm:$0xff]  }
 0x405   :  { %5784 = vmatprep.subr.bf16.mxu0 %v7675_v52  ;;  %5948 = vmatprep.subr.bf16.mxu1 %v7678_v53  ;;  %v7753_v52 = vld [vmem:[#allocation13 + $0x694] ss:$28 sps:$4 sm:$0xff]   ;;  %v7756_v53 = vld [vmem:[#allocation13 + $0x69c] ss:$28 sps:$4 sm:$0xff]  }
 0x407   :  { %5785 = vmatpush1.bf16.msra.mxu0 %v7673_v40  ;;  %5949 = vmatpush1.bf16.msra.mxu1 %v7676_v41  ;;  %v7751_v40 = vld [vmem:[#allocation13 + $0x690] ss:$28 sps:$4 sm:$0xff]   ;;  %v7754_v41 = vld [vmem:[#allocation13 + $0x698] ss:$28 sps:$4 sm:$0xff]  }
 0x408   :  { %5786 = vmatprep.subr.bf16.mxu0 %v7681_v43  ;;  %5950 = vmatprep.subr.bf16.mxu1 %v7684_v45  ;;  %v2866_v43 = vmul.f32 0.2, %v7343_v50  ;;  %v7759_v45 = vld [vmem:[#allocation13 + $0x6cc] ss:$28 sps:$4 sm:$0xff]  }
 0x40b   :  { %5787 = vmatpush1.bf16.msra.mxu0 %v7679_v46  ;;  %5951 = vmatpush1.bf16.msra.mxu1 %v7682_v54  ;;  %v7762_v46 = vld [vmem:[#allocation13 + $0x6d4] ss:$28 sps:$4 sm:$0xff]   ;;  %v7757_v54 = vld [vmem:[#allocation13 + $0x6c8] ss:$28 sps:$4 sm:$0xff]  }
 0x40c   :  { %5788 = vmatprep.subr.bf16.mxu0 %v7687_v56  ;;  %5952 = vmatprep.subr.bf16.mxu1 %v7690_v59  ;;  %v7760_v56 = vld [vmem:[#allocation13 + $0x6d0] ss:$28 sps:$4 sm:$0xff]   ;;  %v2874_v59 = vmax.f32 %v7343_v50, %v2866_v43  ;;  %v7826_v50 = vld [vmem:[#allocation13 + $0x938] ss:$28 sps:$4 sm:$0xff]   ;;  %v7837_v43 = vld [vmem:[#allocation13 + $0x9a4] ss:$28 sps:$4 sm:$0xff]  }
 0x40f   :  { %5789 = vmatpush1.bf16.msra.mxu0 %v7685_v60  ;;  %5953 = vmatpush1.bf16.msra.mxu1 %v7688_v62  ;;  %v7768_v60 = vld [vmem:[#allocation13 + $0x70c] ss:$28 sps:$4 sm:$0xff]   ;;  %v7763_v62 = vld [vmem:[#allocation13 + $0x700] ss:$28 sps:$4 sm:$0xff]  }
 0x410   :  { %5790 = vmatprep.subr.bf16.mxu0 %v7693_v63  ;;  %5954 = vmatprep.subr.bf16.mxu1 %v7696_v1  ;;  %v7766_v63 = vld [vmem:[#allocation13 + $0x708] ss:$28 sps:$4 sm:$0xff]   ;;  %v8748_v1 = vpack.c.bf16 %v2874_v59, %v2874_v59 }
 0x411   :  { %v7846_v59 = vld [vmem:[#allocation13 + $0x9e4] ss:$28 sps:$4 sm:$0xff]  }
 0x413   :  { %5791 = vmatpush1.bf16.msra.mxu0 %v7691_v2  ;;  %5955 = vmatpush1.bf16.msra.mxu1 %v7694_v4  ;;  %v7771_v2 = vld [vmem:[#allocation13 + $0x73c] ss:$28 sps:$4 sm:$0xff]   ;;  %v7774_v4 = vld [vmem:[#allocation13 + $0x744] ss:$28 sps:$4 sm:$0xff]  }
 0x414   :  { %5792 = vmatprep.subr.bf16.mxu0 %v7699_v5  ;;  %5956 = vmatprep.subr.bf16.mxu1 %v7702_v61  ;;  %v7769_v5 = vld [vmem:[#allocation13 + $0x738] ss:$28 sps:$4 sm:$0xff]   ;;  %v7772_v61 = vld [vmem:[#allocation13 + $0x740] ss:$28 sps:$4 sm:$0xff]  }
 0x417   :  { %5793 = vmatpush1.bf16.msra.mxu0 %v7697_v6  ;;  %5957 = vmatpush1.bf16.msra.mxu1 %v7700_v7  ;;  %v7777_v6 = vld [vmem:[#allocation13 + $0x774] ss:$28 sps:$4 sm:$0xff]   ;;  %v7780_v7 = vld [vmem:[#allocation13 + $0x77c] ss:$28 sps:$4 sm:$0xff]  }
 0x418   :  { %5794 = vmatprep.subr.bf16.mxu0 %v7705_v10  ;;  %5958 = vmatprep.subr.bf16.mxu1 %v7708_v11  ;;  %v7775_v10 = vld [vmem:[#allocation13 + $0x770] ss:$28 sps:$4 sm:$0xff]   ;;  %v7778_v11 = vld [vmem:[#allocation13 + $0x778] ss:$28 sps:$4 sm:$0xff]  }
 0x41b   :  { %5795 = vmatpush1.bf16.msra.mxu0 %v7703_v12  ;;  %5959 = vmatpush1.bf16.msra.mxu1 %v7706_v14  ;;  %v7783_v12 = vld [vmem:[#allocation13 + $0x7ac] ss:$28 sps:$4 sm:$0xff]   ;;  %v7786_v14 = vld [vmem:[#allocation13 + $0x7b4] ss:$28 sps:$4 sm:$0xff]  }
 0x41c   :  { %5796 = vmatprep.subr.bf16.mxu0 %v7711_v17  ;;  %5960 = vmatprep.subr.bf16.mxu1 %v7714_v18  ;;  %v7781_v17 = vld [vmem:[#allocation13 + $0x7a8] ss:$28 sps:$4 sm:$0xff]   ;;  %v7784_v18 = vld [vmem:[#allocation13 + $0x7b0] ss:$28 sps:$4 sm:$0xff]  }
 0x41f   :  { %5797 = vmatpush1.bf16.msra.mxu0 %v7709_v19  ;;  %5961 = vmatpush1.bf16.msra.mxu1 %v7712_v20  ;;  %v7789_v19 = vld [vmem:[#allocation13 + $0x7e4] ss:$28 sps:$4 sm:$0xff]   ;;  %v7792_v20 = vld [vmem:[#allocation13 + $0x7ec] ss:$28 sps:$4 sm:$0xff]  }
 0x420   :  { %5798 = vmatprep.subr.bf16.mxu0 %v7717_v21  ;;  %5962 = vmatprep.subr.bf16.mxu1 %v7720_v22  ;;  %v7787_v21 = vld [vmem:[#allocation13 + $0x7e0] ss:$28 sps:$4 sm:$0xff]   ;;  %v7790_v22 = vld [vmem:[#allocation13 + $0x7e8] ss:$28 sps:$4 sm:$0xff]  }
 0x423   :  { %5799 = vmatpush1.bf16.msra.mxu0 %v7715_v30  ;;  %5963 = vmatpush1.bf16.msra.mxu1 %v7718_v23  ;;  %v7795_v30 = vld [vmem:[#allocation13 + $0x81c] ss:$28 sps:$4 sm:$0xff]   ;;  %v7798_v23 = vld [vmem:[#allocation13 + $0x824] ss:$28 sps:$4 sm:$0xff]  }
 0x424   :  { %5800 = vmatprep.subr.bf16.mxu0 %v7723_v24  ;;  %5964 = vmatprep.subr.bf16.mxu1 %v7726_v26  ;;  %v7793_v24 = vld [vmem:[#allocation13 + $0x818] ss:$28 sps:$4 sm:$0xff]   ;;  %v7796_v26 = vld [vmem:[#allocation13 + $0x820] ss:$28 sps:$4 sm:$0xff]  }
 0x427   :  { %5801 = vmatpush1.bf16.msra.mxu0 %v7721_v8  ;;  %5965 = vmatpush1.bf16.msra.mxu1 %v7724_v9  ;;  %v7801_v8 = vld [vmem:[#allocation13 + $0x854] ss:$28 sps:$4 sm:$0xff]   ;;  %v7804_v9 = vld [vmem:[#allocation13 + $0x85c] ss:$28 sps:$4 sm:$0xff]  }
 0x428   :  { %5802 = vmatprep.subr.bf16.mxu0 %v7729_v27  ;;  %5966 = vmatprep.subr.bf16.mxu1 %v7732_v29  ;;  %v7799_v27 = vld [vmem:[#allocation13 + $0x850] ss:$28 sps:$4 sm:$0xff]   ;;  %v7802_v29 = vld [vmem:[#allocation13 + $0x858] ss:$28 sps:$4 sm:$0xff]  }
 0x42b   :  { %5803 = vmatpush1.bf16.msra.mxu0 %v7727_v32  ;;  %5967 = vmatpush1.bf16.msra.mxu1 %v7730_v57  ;;  %v7807_v32 = vld [vmem:[#allocation13 + $0x88c] ss:$28 sps:$4 sm:$0xff]   ;;  %v7810_v57 = vld [vmem:[#allocation13 + $0x894] ss:$28 sps:$4 sm:$0xff]  }
 0x42c   :  { %5804 = vmatprep.subr.bf16.mxu0 %v7735_v31  ;;  %5968 = vmatprep.subr.bf16.mxu1 %v7738_v33  ;;  %v7805_v31 = vld [vmem:[#allocation13 + $0x888] ss:$28 sps:$4 sm:$0xff]   ;;  %v7808_v33 = vld [vmem:[#allocation13 + $0x890] ss:$28 sps:$4 sm:$0xff]  }
 0x42f   :  { %5805 = vmatpush1.bf16.msra.mxu0 %v7733_v34  ;;  %5969 = vmatpush1.bf16.msra.mxu1 %v7736_v35  ;;  %v7813_v34 = vld [vmem:[#allocation13 + $0x8c4] ss:$28 sps:$4 sm:$0xff]   ;;  %v7816_v35 = vld [vmem:[#allocation13 + $0x8cc] ss:$28 sps:$4 sm:$0xff]  }
 0x430   :  { %5806 = vmatprep.subr.bf16.mxu0 %v7741_v36  ;;  %5970 = vmatprep.subr.bf16.mxu1 %v7744_v37  ;;  %v7811_v36 = vld [vmem:[#allocation13 + $0x8c0] ss:$28 sps:$4 sm:$0xff]   ;;  %v7814_v37 = vld [vmem:[#allocation13 + $0x8c8] ss:$28 sps:$4 sm:$0xff]  }
 0x433   :  { %5807 = vmatpush1.bf16.msra.mxu0 %v7739_v38  ;;  %5971 = vmatpush1.bf16.msra.mxu1 %v7742_v55  ;;  %v7819_v38 = vld [vmem:[#allocation13 + $0x8fc] ss:$28 sps:$4 sm:$0xff]   ;;  %v7822_v55 = vld [vmem:[#allocation13 + $0x904] ss:$28 sps:$4 sm:$0xff]  }
 0x434   :  { %5808 = vmatprep.subr.bf16.mxu0 %v7747_v44  ;;  %5972 = vmatprep.subr.bf16.mxu1 %v7750_v47  ;;  %v7820_v44 = vld [vmem:[#allocation13 + $0x900] ss:$28 sps:$4 sm:$0xff]   ;;  %v7825_v47 = vld [vmem:[#allocation13 + $0x934] ss:$28 sps:$4 sm:$0xff]  }
 0x437   :  { %5809 = vmatpush1.bf16.msra.mxu0 %v7745_v15  ;;  %5973 = vmatpush1.bf16.msra.mxu1 %v7748_v49  ;;  %v7828_v15 = vld [vmem:[#allocation13 + $0x93c] ss:$28 sps:$4 sm:$0xff]   ;;  %v7823_v49 = vld [vmem:[#allocation13 + $0x930] ss:$28 sps:$4 sm:$0xff]  }
 0x438   :  { %5810 = vmatprep.subr.bf16.mxu0 %v7753_v52  ;;  %5974 = vmatprep.subr.bf16.mxu1 %v7756_v53  ;;  %v7831_v52 = vld [vmem:[#allocation13 + $0x96c] ss:$28 sps:$4 sm:$0xff]   ;;  %v7834_v53 = vld [vmem:[#allocation13 + $0x974] ss:$28 sps:$4 sm:$0xff]  }
 0x43b   :  { %5811 = vmatpush1.bf16.msra.mxu0 %v7751_v40  ;;  %5975 = vmatpush1.bf16.msra.mxu1 %v7754_v41  ;;  %v7829_v40 = vld [vmem:[#allocation13 + $0x968] ss:$28 sps:$4 sm:$0xff]   ;;  %v7832_v41 = vld [vmem:[#allocation13 + $0x970] ss:$28 sps:$4 sm:$0xff]  }
 0x43c   :  { %5812 = vmatprep.subr.bf16.mxu0 %v7759_v45  ;;  %5976 = vmatprep.subr.bf16.mxu1 %v7762_v46  ;;  %v7840_v45 = vld [vmem:[#allocation13 + $0x9ac] ss:$28 sps:$4 sm:$0xff]   ;;  %v7835_v46 = vld [vmem:[#allocation13 + $0x9a0] ss:$28 sps:$4 sm:$0xff]  }
 0x43f   :  { %5813 = vmatpush1.bf16.msra.mxu0 %v7757_v54  ;;  %5977 = vmatpush1.bf16.msra.mxu1 %v7760_v56  ;;  %v7838_v54 = vld [vmem:[#allocation13 + $0x9a8] ss:$28 sps:$4 sm:$0xff]   ;;  %v7843_v56 = vld [vmem:[#allocation13 + $0x9dc] ss:$28 sps:$4 sm:$0xff]  }
 0x440   :  { %5823 = vmatprep.subr.bf16.mxu0 %v7765_v28  ;;  %5987 = vmatprep.subr.bf16.mxu1 %v7768_v60  ;;  %v1234_v28 = vsub.s32 4, %v8645_v58  ;;  %v1238_v60 = vsub.s32 5, %v8645_v58 }
 0x442   :  { %5815 = vmatmul.mubr.bf16.vlgmr.msra.gmra.mrb[12].mxu0 %v8748_v1  ;;  %5979 = vmatmul.mubr.bf16.vlgmr.msra.gmra.mrb[20].mxu1 %v8748_v1 }
 0x443   :  { %5824 = vmatpush1.bf16.msra.mxu0 %v7763_v62  ;;  %5988 = vmatpush1.bf16.msra.mxu1 %v7766_v63  ;;  %v1246_v62 = vsub.s32 7, %v8645_v58  ;;  %v7841_v63 = vld [vmem:[#allocation13 + $0x9d8] ss:$28 sps:$4 sm:$0xff]  }
 0x444   :  { %5825 = vmatprep.subr.bf16.mxu0 %v7771_v2  ;;  %5989 = vmatprep.subr.bf16.mxu1 %v7774_v4  ;;  %v7844_v2 = vld [vmem:[#allocation13 + $0x9e0] ss:$28 sps:$4 sm:$0xff]   ;;  %v1235_v4 = vrot.slane %v8723_v25, %v1234_v28 }
 0x447   :  { %5826 = vmatpush1.bf16.msra.mxu0 %v7769_v5  ;;  %5990 = vmatpush1.bf16.msra.mxu1 %v7772_v61  ;;  %v7849_v5 = vld [vmem:[#allocation13 + $0xa14] ss:$28 sps:$4 sm:$0xff]   ;;  %v7852_v61 = vld [vmem:[#allocation13 + $0xa1c] ss:$28 sps:$4 sm:$0xff]  }
 0x448   :  { %5827 = vmatprep.subr.bf16.mxu0 %v7777_v6  ;;  %5991 = vmatprep.subr.bf16.mxu1 %v7780_v7  ;;  %v1239_v6 = vrot.slane %v8723_v25, %v1238_v60  ;;  %v1247_v7 = vrot.slane %v8723_v25, %v1246_v62  ;;  %v7883_v62 = vld [vmem:[#allocation13 + $0xb60] ss:$28 sps:$4 sm:$0xff]  }
 0x44b   :  { %5828 = vmatpush1.bf16.msra.mxu0 %v7775_v10  ;;  %5992 = vmatpush1.bf16.msra.mxu1 %v7778_v11  ;;  %v7847_v11 = vld [vmem:[#allocation13 + $0xa10] ss:$28 sps:$4 sm:$0xff]  }
 0x44c   :  { %5829 = vmatprep.subr.bf16.mxu0 %v7783_v12  ;;  %5993 = vmatprep.subr.bf16.mxu1 %v7786_v14  ;;  %v7850_v12 = vld [vmem:[#allocation13 + $0xa18] ss:$28 sps:$4 sm:$0xff]  }
 0x44f   :  { %5830 = vmatpush1.bf16.msra.mxu0 %v7781_v17  ;;  %5994 = vmatpush1.bf16.msra.mxu1 %v7784_v18 }
 0x450   :  { %5831 = vmatprep.subr.bf16.mxu0 %v7789_v19  ;;  %5995 = vmatprep.subr.bf16.mxu1 %v7792_v20  ;;  %v7855_v19 = vld [vmem:[#allocation13 + $0xa4c] ss:$28 sps:$4 sm:$0xff]   ;;  %v7858_v20 = vld [vmem:[#allocation13 + $0xa54] ss:$28 sps:$4 sm:$0xff]  }
 0x453   :  { %5832 = vmatpush1.bf16.msra.mxu0 %v7787_v21  ;;  %5996 = vmatpush1.bf16.msra.mxu1 %v7790_v22 }
 0x454   :  { %5833 = vmatprep.subr.bf16.mxu0 %v7795_v30  ;;  %5997 = vmatprep.subr.bf16.mxu1 %v7798_v23 }
 0x457   :  { %5834 = vmatpush1.bf16.msra.mxu0 %v7793_v24  ;;  %5998 = vmatpush1.bf16.msra.mxu1 %v7796_v26 }
 0x458   :  { %5835 = vmatprep.subr.bf16.mxu0 %v7801_v8  ;;  %5999 = vmatprep.subr.bf16.mxu1 %v7804_v9  ;;  %v7853_v9 = vld [vmem:[#allocation13 + $0xa48] ss:$28 sps:$4 sm:$0xff]  }
 0x45b   :  { %5836 = vmatpush1.bf16.msra.mxu0 %v7799_v27  ;;  %6000 = vmatpush1.bf16.msra.mxu1 %v7802_v29 }
 0x45c   :  { %5837 = vmatprep.subr.bf16.mxu0 %v7807_v32  ;;  %6001 = vmatprep.subr.bf16.mxu1 %v7810_v57  ;;  %v7856_v32 = vld [vmem:[#allocation13 + $0xa50] ss:$28 sps:$4 sm:$0xff]  }
 0x45f   :  { %5838 = vmatpush1.bf16.msra.mxu0 %v7805_v31  ;;  %6002 = vmatpush1.bf16.msra.mxu1 %v7808_v33  ;;  %v7861_v33 = vld [vmem:[#allocation13 + $0xa84] ss:$28 sps:$4 sm:$0xff]  }
 0x460   :  { %5839 = vmatprep.subr.bf16.mxu0 %v7813_v34  ;;  %6003 = vmatprep.subr.bf16.mxu1 %v7816_v35  ;;  %v7864_v34 = vld [vmem:[#allocation13 + $0xa8c] ss:$28 sps:$4 sm:$0xff]  }
 0x463   :  { %5840 = vmatpush1.bf16.msra.mxu0 %v7811_v36  ;;  %6004 = vmatpush1.bf16.msra.mxu1 %v7814_v37 }
 0x464   :  { %5841 = vmatprep.subr.bf16.mxu0 %v7819_v38  ;;  %6005 = vmatprep.subr.bf16.mxu1 %v7822_v55  ;;  %v7859_v38 = vld [vmem:[#allocation13 + $0xa80] ss:$28 sps:$4 sm:$0xff]   ;;  %v7862_v55 = vld [vmem:[#allocation13 + $0xa88] ss:$28 sps:$4 sm:$0xff]  }
 0x467   :  { %5842 = vmatpush1.bf16.msra.mxu0 %v7817_v42  ;;  %6006 = vmatpush1.bf16.msra.mxu1 %v7820_v44  ;;  %v7867_v44 = vld [vmem:[#allocation13 + $0xabc] ss:$28 sps:$4 sm:$0xff]  }
 0x468   :  { %5843 = vmatprep.subr.bf16.mxu0 %v7825_v47  ;;  %6007 = vmatprep.subr.bf16.mxu1 %v7828_v15  ;;  %v7870_v47 = vld [vmem:[#allocation13 + $0xac4] ss:$28 sps:$4 sm:$0xff]  }
 0x46b   :  { %5844 = vmatpush1.bf16.msra.mxu0 %v7823_v49  ;;  %6008 = vmatpush1.bf16.msra.mxu1 %v7826_v50  ;;  %v7865_v49 = vld [vmem:[#allocation13 + $0xab8] ss:$28 sps:$4 sm:$0xff]   ;;  %v7868_v50 = vld [vmem:[#allocation13 + $0xac0] ss:$28 sps:$4 sm:$0xff]  }
 0x46c   :  { %5845 = vmatprep.subr.bf16.mxu0 %v7831_v52  ;;  %6009 = vmatprep.subr.bf16.mxu1 %v7834_v53  ;;  %v7873_v52 = vld [vmem:[#allocation13 + $0xaf4] ss:$28 sps:$4 sm:$0xff]   ;;  %v7876_v53 = vld [vmem:[#allocation13 + $0xafc] ss:$28 sps:$4 sm:$0xff]  }
 0x46f   :  { %5846 = vmatpush1.bf16.msra.mxu0 %v7829_v40  ;;  %6010 = vmatpush1.bf16.msra.mxu1 %v7832_v41  ;;  %v7871_v40 = vld [vmem:[#allocation13 + $0xaf0] ss:$28 sps:$4 sm:$0xff]   ;;  %v7874_v41 = vld [vmem:[#allocation13 + $0xaf8] ss:$28 sps:$4 sm:$0xff]  }
 0x470   :  { %5847 = vmatprep.subr.bf16.mxu0 %v7837_v43  ;;  %6011 = vmatprep.subr.bf16.mxu1 %v7840_v45  ;;  %v7879_v43 = vld [vmem:[#allocation13 + $0xb2c] ss:$28 sps:$4 sm:$0xff]   ;;  %v7882_v45 = vld [vmem:[#allocation13 + $0xb34] ss:$28 sps:$4 sm:$0xff]  }
 0x473   :  { %5848 = vmatpush1.bf16.msra.mxu0 %v7835_v46  ;;  %6012 = vmatpush1.bf16.msra.mxu1 %v7838_v54  ;;  %v7877_v46 = vld [vmem:[#allocation13 + $0xb28] ss:$28 sps:$4 sm:$0xff]   ;;  %v7880_v54 = vld [vmem:[#allocation13 + $0xb30] ss:$28 sps:$4 sm:$0xff]  }
 0x474   :  { %5849 = vmatprep.subr.bf16.mxu0 %v7843_v56  ;;  %6013 = vmatprep.subr.bf16.mxu1 %v7846_v59  ;;  %v7885_v56 = vld [vmem:[#allocation13 + $0xb64] ss:$28 sps:$4 sm:$0xff]   ;;  %v7888_v59 = vld [vmem:[#allocation13 + $0xb6c] ss:$28 sps:$4 sm:$0xff]  }
 0x477   :  { %5850 = vmatpush1.bf16.msra.mxu0 %v7841_v63  ;;  %6014 = vmatpush1.bf16.msra.mxu1 %v7844_v2  ;;  %v2775_v10 = vpop.f32.mrb[8].mxu0  ;;  %v7886_v63 = vld [vmem:[#allocation13 + $0xb68] ss:$28 sps:$4 sm:$0xff]   ;;  %v7891_v2 = vld [vmem:[#allocation13 + $0xb9c] ss:$28 sps:$4 sm:$0xff]  }
 0x478   :  { %v7345_v14 = vadd.f32 %v2775_v10, %v1235_v4  ;;  %v8762_v17 = vpop.f32.mrb[16].mxu1  ;;  %v2777_v18 = vpop.f32.mrb[9].mxu0  ;;  %5851 = vmatprep.subr.bf16.mxu0 %v7849_v5  ;;  %6015 = vmatprep.subr.bf16.mxu1 %v7852_v61  ;;  %v7894_v4 = vld [vmem:[#allocation13 + $0xba4] ss:$28 sps:$4 sm:$0xff]   ;;  %v7889_v5 = vld [vmem:[#allocation13 + $0xb98] ss:$28 sps:$4 sm:$0xff]  }
 0x479   :  { %v7346_v21 = vadd.f32 %v2777_v18, %v1239_v6  ;;  %v2859_v22 = vpop.f32.mrb[17].mxu1  ;;  %v2779_v30 = vpop.f32.mrb[10].mxu0  ;;  %v7892_v61 = vld [vmem:[#allocation13 + $0xba0] ss:$28 sps:$4 sm:$0xff]   ;;  %v7897_v6 = vld [vmem:[#allocation13 + $0xbd4] ss:$28 sps:$4 sm:$0xff]  }
 0x47a   :  { %v2868_v23 = vmul.f32 0.2, %v7345_v14  ;;  %v7348_v24 = vadd.f32 %v2859_v22, %v1247_v7  ;;  %v2861_v26 = vpop.f32.mrb[18].mxu1  ;;  %v2780_v8 = vpop.f32.mrb[11].mxu0  ;;  %v7900_v7 = vld [vmem:[#allocation13 + $0xbdc] ss:$28 sps:$4 sm:$0xff]  }
 0x47b   :  { %v2869_v27 = vmul.f32 0.2, %v7346_v21  ;;  %v2862_v29 = vpop.f32.mrb[19].mxu1  ;;  %5852 = vmatpush1.bf16.msra.mxu0 %v7847_v11  ;;  %6016 = vmatpush1.bf16.msra.mxu1 %v7850_v12  ;;  %v7895_v10 = vld [vmem:[#allocation13 + $0xbd0] ss:$28 sps:$4 sm:$0xff]  }
 0x47c   :  { %v2876_v57 = vmax.f32 %v7345_v14, %v2868_v23  ;;  %v2871_v31 = vmul.f32 0.2, %v7348_v24  ;;  %5853 = vmatprep.subr.bf16.mxu0 %v7855_v19  ;;  %6017 = vmatprep.subr.bf16.mxu1 %v7858_v20  ;;  %v7898_v11 = vld [vmem:[#allocation13 + $0xbd8] ss:$28 sps:$4 sm:$0xff]   ;;  %v7903_v12 = vld [vmem:[#allocation13 + $0xc0c] ss:$28 sps:$4 sm:$0xff]  }
 0x47d   :  { %v2877_v35 = vmax.f32 %v7346_v21, %v2869_v27  ;;  %v7906_v14 = vld [vmem:[#allocation13 + $0xc14] ss:$28 sps:$4 sm:$0xff]   ;;  %v7901_v18 = vld [vmem:[#allocation13 + $0xc08] ss:$28 sps:$4 sm:$0xff]   ;;  %v7907_v22 = vld [vmem:[#allocation13 + $0xc40] ss:$28 sps:$4 sm:$0xff]  }
 0x47e   :  { %v2879_v36 = vmax.f32 %v7348_v24, %v2871_v31  ;;  %v8766_v42 = vpack.c.bf16 %v2876_v57, %v2876_v57  ;;  %v7904_v19 = vld [vmem:[#allocation13 + $0xc10] ss:$28 sps:$4 sm:$0xff]   ;;  %v7909_v20 = vld [vmem:[#allocation13 + $0xc44] ss:$28 sps:$4 sm:$0xff]   ;;  %v7915_v23 = vld [vmem:[#allocation13 + $0xc7c] ss:$28 sps:$4 sm:$0xff]  }
 0x47f   :  { %v8764_v37 = vpack.c.bf16 %v2877_v35, %v2877_v35  ;;  %5854 = vmatpush1.bf16.msra.mxu0 %v7853_v9  ;;  %6018 = vmatpush1.bf16.msra.mxu1 %v7856_v32  ;;  %v7912_v21 = vld [vmem:[#allocation13 + $0xc4c] ss:$28 sps:$4 sm:$0xff]   ;;  %v7918_v24 = vld [vmem:[#allocation13 + $0xc84] ss:$28 sps:$4 sm:$0xff]   ;;  %v7913_v26 = vld [vmem:[#allocation13 + $0xc78] ss:$28 sps:$4 sm:$0xff]  }
 0x480   :  { %5864 = vmatprep.subr.bf16.mxu0 %v7861_v33  ;;  %6028 = vmatprep.subr.bf16.mxu1 %v7864_v34  ;;  %v8770_v15 = vpack.c.bf16 %v2879_v36, %v2879_v36  ;;  %v7910_v30 = vld [vmem:[#allocation13 + $0xc48] ss:$28 sps:$4 sm:$0xff]   ;;  %v7916_v8 = vld [vmem:[#allocation13 + $0xc80] ss:$28 sps:$4 sm:$0xff]   ;;  %v7921_v9 = vld [vmem:[#allocation13 + $0xcb4] ss:$28 sps:$4 sm:$0xff]  }
 0x481   :  { %5855 = vmatprep.mubr.bf16.mxu0 %v8764_v37  ;;  %6019 = vmatprep.mubr.bf16.mxu1 %v8764_v37  ;;  %v7924_v27 = vld [vmem:[#allocation13 + $0xcbc] ss:$28 sps:$4 sm:$0xff]   ;;  %v7919_v29 = vld [vmem:[#allocation13 + $0xcb0] ss:$28 sps:$4 sm:$0xff]   ;;  %v7925_v33 = vld [vmem:[#allocation13 + $0xce8] ss:$28 sps:$4 sm:$0xff]  }
 0x482   :  { %5856 = vmatmul.mubr.bf16.vlgmr.msra.gmra.mrb[12].mxu0 %v8766_v42  ;;  %6020 = vmatmul.mubr.bf16.vlgmr.msra.gmra.mrb[20].mxu1 %v8766_v42  ;;  %v7922_v32 = vld [vmem:[#allocation13 + $0xcb8] ss:$28 sps:$4 sm:$0xff]   ;;  %v7927_v57 = vld [vmem:[#allocation13 + $0xcec] ss:$28 sps:$4 sm:$0xff]   ;;  %v1242_v35 = vsub.s32 6, %v8645_v58 }
 0x483   :  { %5865 = vmatpush1.bf16.msra.mxu0 %v7859_v38  ;;  %6029 = vmatpush1.bf16.msra.mxu1 %v7862_v55  ;;  %v7930_v31 = vld [vmem:[#allocation13 + $0xcf4] ss:$28 sps:$4 sm:$0xff]   ;;  %v7933_v36 = vld [vmem:[#allocation13 + $0xd24] ss:$28 sps:$4 sm:$0xff]   ;;  %v7936_v38 = vld [vmem:[#allocation13 + $0xd2c] ss:$28 sps:$4 sm:$0xff]  }
 0x484   :  { %5896 = vmatprep.mubr.bf16.mxu0 %v8770_v15  ;;  %6060 = vmatprep.mubr.bf16.mxu1 %v8770_v15  ;;  %v7928_v34 = vld [vmem:[#allocation13 + $0xcf0] ss:$28 sps:$4 sm:$0xff]   ;;  %v7931_v55 = vld [vmem:[#allocation13 + $0xd20] ss:$28 sps:$4 sm:$0xff]  }
 0x485   :  { %5866 = vmatprep.subr.bf16.mxu0 %v7867_v44  ;;  %6030 = vmatprep.subr.bf16.mxu1 %v7870_v47  ;;  %v7934_v44 = vld [vmem:[#allocation13 + $0xd28] ss:$28 sps:$4 sm:$0xff]   ;;  %v1243_v47 = vrot.slane %v8723_v25, %v1242_v35 }
 0x486   :  { %v7951_v25 = vld [vmem:[#allocation13 + $0xdcc] ss:$28 sps:$4 sm:$0xff]  }
 0x487   :  { %5867 = vmatpush1.bf16.msra.mxu0 %v7865_v49  ;;  %6031 = vmatpush1.bf16.msra.mxu1 %v7868_v50  ;;  %v7939_v49 = vld [vmem:[#allocation13 + $0xd5c] ss:$28 sps:$4 sm:$0xff]   ;;  %v7942_v50 = vld [vmem:[#allocation13 + $0xd64] ss:$28 sps:$4 sm:$0xff]  }
 0x488   :  { %5868 = vmatprep.subr.bf16.mxu0 %v7873_v52  ;;  %6032 = vmatprep.subr.bf16.mxu1 %v7876_v53  ;;  %v7937_v52 = vld [vmem:[#allocation13 + $0xd58] ss:$28 sps:$4 sm:$0xff]   ;;  %v7940_v53 = vld [vmem:[#allocation13 + $0xd60] ss:$28 sps:$4 sm:$0xff]  }
 0x48b   :  { %5869 = vmatpush1.bf16.msra.mxu0 %v7871_v40  ;;  %6033 = vmatpush1.bf16.msra.mxu1 %v7874_v41  ;;  %v7347_v40 = vadd.f32 %v8762_v17, %v1243_v47  ;;  %v7945_v41 = vld [vmem:[#allocation13 + $0xd94] ss:$28 sps:$4 sm:$0xff]  }
 0x48c   :  { %5870 = vmatprep.subr.bf16.mxu0 %v7879_v43  ;;  %6034 = vmatprep.subr.bf16.mxu1 %v7882_v45  ;;  %v7948_v43 = vld [vmem:[#allocation13 + $0xd9c] ss:$28 sps:$4 sm:$0xff]   ;;  %v7943_v45 = vld [vmem:[#allocation13 + $0xd90] ss:$28 sps:$4 sm:$0xff]  }
 0x48d   :  { %v7957_v17 = vld [vmem:[#allocation13 + $0x14] ss:$28 sps:$4 sm:$0xff]  }
 0x48e   :  { %v7998_v47 = vld [vmem:[#allocation13 + $0x558] ss:$28 sps:$4 sm:$0xff]  }
 0x48f   :  { %5871 = vmatpush1.bf16.msra.mxu0 %v7877_v46  ;;  %6035 = vmatpush1.bf16.msra.mxu1 %v7880_v54  ;;  %v7946_v46 = vld [vmem:[#allocation13 + $0xd98] ss:$28 sps:$4 sm:$0xff]   ;;  %v2870_v54 = vmul.f32 0.2, %v7347_v40 }
 0x490   :  { %5872 = vmatprep.subr.bf16.mxu0 %v7885_v56  ;;  %6036 = vmatprep.subr.bf16.mxu1 %v7888_v59  ;;  %v7954_v56 = vld [vmem:[#allocation13 + $0xdd4] ss:$28 sps:$4 sm:$0xff]   ;;  %v7949_v59 = vld [vmem:[#allocation13 + $0xdc8] ss:$28 sps:$4 sm:$0xff]  }
 0x493   :  { %5873 = vmatpush1.bf16.msra.mxu0 %v7883_v62  ;;  %6037 = vmatpush1.bf16.msra.mxu1 %v7886_v63  ;;  %v7952_v62 = vld [vmem:[#allocation13 + $0xdd0] ss:$28 sps:$4 sm:$0xff]   ;;  %v2878_v63 = vmax.f32 %v7347_v40, %v2870_v54  ;;  %v8000_v40 = vld [vmem:[#allocation13 + $0x208] ss:$28 sps:$4 sm:$0xff]  }
 0x494   :  { %5874 = vmatprep.subr.bf16.mxu0 %v7891_v2  ;;  %6038 = vmatprep.subr.bf16.mxu1 %v7894_v4  ;;  %v7958_v2 = vld [vmem:[#allocation13 + $0x1d8] ss:$28 sps:$4 sm:$0xff]   ;;  %v7955_v4 = vld [vmem:[#allocation13 + $0x10] ss:$28 sps:$4 sm:$0xff]   ;;  %v8009_v54 = vld [vmem:[#allocation13 + $0x408] ss:$28 sps:$4 sm:$0xff]  }
 0x497   :  { %5875 = vmatpush1.bf16.msra.mxu0 %v7889_v5  ;;  %6039 = vmatpush1.bf16.msra.mxu1 %v7892_v61  ;;  %v8781_v5 = vpack.c.bf16 %v2878_v63, %v2878_v63  ;;  %v7959_v61 = vld [vmem:[#allocation13 + $0x18] ss:$28 sps:$4 sm:$0xff]  }
 0x498   :  { %5876 = vmatprep.subr.bf16.mxu0 %v7897_v6  ;;  %6040 = vmatprep.subr.bf16.mxu1 %v7900_v7  ;;  %v7962_v6 = vld [vmem:[#allocation13 + $0x4c] ss:$28 sps:$4 sm:$0xff]   ;;  %v8017_v63 = vld [vmem:[#allocation13 + $0x2b4] ss:$28 sps:$4 sm:$0xff]  }
 0x499   :  { %v7963_v7 = vld [vmem:[#allocation13 + $0x210] ss:$28 sps:$4 sm:$0xff]  }
 0x49b   :  { %5877 = vmatpush1.bf16.msra.mxu0 %v7895_v10  ;;  %6041 = vmatpush1.bf16.msra.mxu1 %v7898_v11  ;;  %v7960_v10 = vld [vmem:[#allocation13 + $0x48] ss:$28 sps:$4 sm:$0xff]   ;;  %v7964_v11 = vld [vmem:[#allocation13 + $0x50] ss:$28 sps:$4 sm:$0xff]  }
 0x49c   :  { %5878 = vmatprep.subr.bf16.mxu0 %v7903_v12  ;;  %6042 = vmatprep.subr.bf16.mxu1 %v7906_v14  ;;  %v7967_v12 = vld [vmem:[#allocation13 + $0x84] ss:$28 sps:$4 sm:$0xff]  }
 0x49d   :  { %v7968_v14 = vld [vmem:[#allocation13 + $0x248] ss:$28 sps:$4 sm:$0xff]  }
 0x49f   :  { %5879 = vmatpush1.bf16.msra.mxu0 %v7901_v18  ;;  %6043 = vmatpush1.bf16.msra.mxu1 %v7904_v19  ;;  %v7965_v18 = vld [vmem:[#allocation13 + $0x80] ss:$28 sps:$4 sm:$0xff]   ;;  %v7969_v19 = vld [vmem:[#allocation13 + $0x88] ss:$28 sps:$4 sm:$0xff]  }
 0x4a0   :  { %5880 = vmatprep.subr.bf16.mxu0 %v7909_v20  ;;  %6044 = vmatprep.subr.bf16.mxu1 %v7912_v21  ;;  %v7972_v20 = vld [vmem:[#allocation13 + $0xbc] ss:$28 sps:$4 sm:$0xff]  }
 0x4a1   :  { %v7973_v21 = vld [vmem:[#allocation13 + $0x280] ss:$28 sps:$4 sm:$0xff]  }
 0x4a3   :  { %5881 = vmatpush1.bf16.msra.mxu0 %v7907_v22  ;;  %6045 = vmatpush1.bf16.msra.mxu1 %v7910_v30  ;;  %v7970_v22 = vld [vmem:[#allocation13 + $0xb8] ss:$28 sps:$4 sm:$0xff]   ;;  %v7974_v30 = vld [vmem:[#allocation13 + $0xc0] ss:$28 sps:$4 sm:$0xff]  }
 0x4a4   :  { %5882 = vmatprep.subr.bf16.mxu0 %v7915_v23  ;;  %6046 = vmatprep.subr.bf16.mxu1 %v7918_v24  ;;  %v7977_v23 = vld [vmem:[#allocation13 + $0xf4] ss:$28 sps:$4 sm:$0xff]  }
 0x4a5   :  { %v7975_v24 = vld [vmem:[#allocation13 + $0xf0] ss:$28 sps:$4 sm:$0xff]  }
 0x4a7   :  { %5883 = vmatpush1.bf16.msra.mxu0 %v7913_v26  ;;  %6047 = vmatpush1.bf16.msra.mxu1 %v7916_v8  ;;  %v7979_v26 = vld [vmem:[#allocation13 + $0xf8] ss:$28 sps:$4 sm:$0xff]   ;;  %v7982_v8 = vld [vmem:[#allocation13 + $0x12c] ss:$28 sps:$4 sm:$0xff]  }
 0x4a8   :  { %5884 = vmatprep.subr.bf16.mxu0 %v7921_v9  ;;  %6048 = vmatprep.subr.bf16.mxu1 %v7924_v27  ;;  %v7983_v9 = vld [vmem:[#allocation13 + $0x2f0] ss:$28 sps:$4 sm:$0xff]   ;;  %v7980_v27 = vld [vmem:[#allocation13 + $0x128] ss:$28 sps:$4 sm:$0xff]  }
 0x4ab   :  { %5885 = vmatpush1.bf16.msra.mxu0 %v7919_v29  ;;  %6049 = vmatpush1.bf16.msra.mxu1 %v7922_v32  ;;  %v7984_v29 = vld [vmem:[#allocation13 + $0x130] ss:$28 sps:$4 sm:$0xff]   ;;  %v7987_v32 = vld [vmem:[#allocation13 + $0x164] ss:$28 sps:$4 sm:$0xff]  }
 0x4ac   :  { %5886 = vmatprep.subr.bf16.mxu0 %v7927_v57  ;;  %6050 = vmatprep.subr.bf16.mxu1 %v7930_v31  ;;  %v7988_v57 = vld [vmem:[#allocation13 + $0x328] ss:$28 sps:$4 sm:$0xff]   ;;  %v7985_v31 = vld [vmem:[#allocation13 + $0x160] ss:$28 sps:$4 sm:$0xff]  }
 0x4af   :  { %5887 = vmatpush1.bf16.msra.mxu0 %v7925_v33  ;;  %6051 = vmatpush1.bf16.msra.mxu1 %v7928_v34  ;;  %v7989_v33 = vld [vmem:[#allocation13 + $0x168] ss:$28 sps:$4 sm:$0xff]   ;;  %v7992_v34 = vld [vmem:[#allocation13 + $0x19c] ss:$28 sps:$4 sm:$0xff]  }
 0x4b0   :  { %5888 = vmatprep.subr.bf16.mxu0 %v7933_v36  ;;  %6052 = vmatprep.subr.bf16.mxu1 %v7936_v38  ;;  %v7993_v36 = vld [vmem:[#allocation13 + $0x360] ss:$28 sps:$4 sm:$0xff]   ;;  %v7990_v38 = vld [vmem:[#allocation13 + $0x198] ss:$28 sps:$4 sm:$0xff]  }
 0x4b3   :  { %5889 = vmatpush1.bf16.msra.mxu0 %v7931_v55  ;;  %6053 = vmatpush1.bf16.msra.mxu1 %v7934_v44  ;;  %v7994_v55 = vld [vmem:[#allocation13 + $0x1a0] ss:$28 sps:$4 sm:$0xff]   ;;  %v7997_v44 = vld [vmem:[#allocation13 + $0x1d4] ss:$28 sps:$4 sm:$0xff]  }
 0x4b4   :  { %5890 = vmatprep.subr.bf16.mxu0 %v7939_v49  ;;  %6054 = vmatprep.subr.bf16.mxu1 %v7942_v50  ;;  %v7995_v49 = vld [vmem:[#allocation13 + $0x1d0] ss:$28 sps:$4 sm:$0xff]   ;;  %v7999_v50 = vld [vmem:[#allocation13 + $0x398] ss:$28 sps:$4 sm:$0xff]  }
 0x4b7   :  { %5891 = vmatpush1.bf16.msra.mxu0 %v7937_v52  ;;  %6055 = vmatpush1.bf16.msra.mxu1 %v7940_v53  ;;  %v8002_v52 = vld [vmem:[#allocation13 + $0x20c] ss:$28 sps:$4 sm:$0xff]  }
 0x4b8   :  { %5892 = vmatprep.subr.bf16.mxu0 %v7945_v41  ;;  %6056 = vmatprep.subr.bf16.mxu1 %v7948_v43  ;;  %v8003_v53 = vld [vmem:[#allocation13 + $0x590] ss:$28 sps:$4 sm:$0xff]   ;;  %v8007_v43 = vld [vmem:[#allocation13 + $0x244] ss:$28 sps:$4 sm:$0xff]  }
 0x4b9   :  { %v8004_v41 = vld [vmem:[#allocation13 + $0x3d0] ss:$28 sps:$4 sm:$0xff]  }
 0x4bb   :  { %5893 = vmatpush1.bf16.msra.mxu0 %v7943_v45  ;;  %6057 = vmatpush1.bf16.msra.mxu1 %v7946_v46  ;;  %v8008_v45 = vld [vmem:[#allocation13 + $0x5c8] ss:$28 sps:$4 sm:$0xff]   ;;  %v8005_v46 = vld [vmem:[#allocation13 + $0x240] ss:$28 sps:$4 sm:$0xff]  }
 0x4bc   :  { %5894 = vmatprep.subr.bf16.mxu0 %v7951_v25  ;;  %6058 = vmatprep.subr.bf16.mxu1 %v7954_v56  ;;  %v8012_v25 = vld [vmem:[#allocation13 + $0x27c] ss:$28 sps:$4 sm:$0xff]  }
 0x4bd   :  { %v8013_v56 = vld [vmem:[#allocation13 + $0x600] ss:$28 sps:$4 sm:$0xff]  }
 0x4bf   :  { %5895 = vmatpush1.bf16.msra.mxu0 %v7949_v59  ;;  %6059 = vmatpush1.bf16.msra.mxu1 %v7952_v62  ;;  %v8010_v59 = vld [vmem:[#allocation13 + $0x278] ss:$28 sps:$4 sm:$0xff]   ;;  %v8014_v62 = vld [vmem:[#allocation13 + $0x440] ss:$28 sps:$4 sm:$0xff]  }
 0x4c0   :  { %6069 = vmatprep.subr.bf16.mxu0 %v7957_v17  ;;  %7253 = vmatprep.subr.bf16.mxu1 %v7958_v2  ;;  %v8018_v17 = vld [vmem:[#allocation13 + $0x638] ss:$28 sps:$4 sm:$0xff]   ;;  %v8015_v2 = vld [vmem:[#allocation13 + $0x2b0] ss:$28 sps:$4 sm:$0xff]  }
 0x4c2   :  { %5897 = vmatmul.mubr.bf16.vlgmr.msra.gmra.mrb[12].mxu0 %v8781_v5  ;;  %6061 = vmatmul.mubr.bf16.vlgmr.msra.gmra.mrb[20].mxu1 %v8781_v5 }
 0x4c3   :  { %6070 = vmatpush1.bf16.msra.mxu0 %v7955_v4  ;;  %6101 = vmatprep.mubr.bf16.mxu0 %v8733_v48  ;;  %v8019_v4 = vld [vmem:[#allocation13 + $0x478] ss:$28 sps:$4 sm:$0xff]  }
 0x4c4   :  { %7254 = vmatpush3.bf16.msra.mxu1 %v7959_v61  ;;  %6265 = vmatprep.mubr.bf16.mxu1 %v8733_v48  ;;  %v7978_v48 = vld [vmem:[#allocation13 + $0x2b8] ss:$28 sps:$4 sm:$0xff]   ;;  %v8022_v61 = vld [vmem:[#allocation13 + $0x2ec] ss:$28 sps:$4 sm:$0xff]  }
 0x4c5   :  { %6071 = vmatprep.subr.bf16.mxu0 %v7962_v6  ;;  %7255 = vmatprep.subr.bf16.mxu1 %v7963_v7  ;;  %v8023_v6 = vld [vmem:[#allocation13 + $0x670] ss:$28 sps:$4 sm:$0xff]   ;;  %v8020_v7 = vld [vmem:[#allocation13 + $0x2e8] ss:$28 sps:$4 sm:$0xff]  }
 0x4c7   :  { %6072 = vmatpush1.bf16.msra.mxu0 %v7960_v10  ;;  %v8024_v10 = vld [vmem:[#allocation13 + $0x4b0] ss:$28 sps:$4 sm:$0xff]  }
 0x4c8   :  { %7256 = vmatpush3.bf16.msra.mxu1 %v7964_v11  ;;  %6073 = vmatprep.subr.bf16.mxu0 %v7967_v12  ;;  %v8027_v11 = vld [vmem:[#allocation13 + $0x324] ss:$28 sps:$4 sm:$0xff]  }
 0x4c9   :  { %7257 = vmatprep.subr.bf16.mxu1 %v7968_v14  ;;  %v8028_v12 = vld [vmem:[#allocation13 + $0x6a8] ss:$28 sps:$4 sm:$0xff]   ;;  %v8025_v14 = vld [vmem:[#allocation13 + $0x320] ss:$28 sps:$4 sm:$0xff]  }
 0x4cb   :  { %6074 = vmatpush1.bf16.msra.mxu0 %v7965_v18  ;;  %v8029_v18 = vld [vmem:[#allocation13 + $0x4e8] ss:$28 sps:$4 sm:$0xff]  }
 0x4cc   :  { %7258 = vmatpush3.bf16.msra.mxu1 %v7969_v19  ;;  %6075 = vmatprep.subr.bf16.mxu0 %v7972_v20  ;;  %v8032_v19 = vld [vmem:[#allocation13 + $0x35c] ss:$28 sps:$4 sm:$0xff]  }
 0x4cd   :  { %7259 = vmatprep.subr.bf16.mxu1 %v7973_v21  ;;  %v8033_v20 = vld [vmem:[#allocation13 + $0x6e0] ss:$28 sps:$4 sm:$0xff]   ;;  %v8030_v21 = vld [vmem:[#allocation13 + $0x358] ss:$28 sps:$4 sm:$0xff]  }
 0x4cf   :  { %6076 = vmatpush1.bf16.msra.mxu0 %v7970_v22  ;;  %v8034_v22 = vld [vmem:[#allocation13 + $0x520] ss:$28 sps:$4 sm:$0xff]  }
 0x4d0   :  { %7260 = vmatpush3.bf16.msra.mxu1 %v7974_v30  ;;  %6077 = vmatprep.subr.bf16.mxu0 %v7977_v23  ;;  %v8037_v30 = vld [vmem:[#allocation13 + $0x394] ss:$28 sps:$4 sm:$0xff]  }
 0x4d1   :  { %7261 = vmatprep.subr.bf16.mxu1 %v7978_v48  ;;  %v8038_v23 = vld [vmem:[#allocation13 + $0x8d8] ss:$28 sps:$4 sm:$0xff]   ;;  %v8035_v48 = vld [vmem:[#allocation13 + $0x390] ss:$28 sps:$4 sm:$0xff]  }
 0x4d3   :  { %6078 = vmatpush1.bf16.msra.mxu0 %v7975_v24  ;;  %v8039_v24 = vld [vmem:[#allocation13 + $0x718] ss:$28 sps:$4 sm:$0xff]  }
 0x4d4   :  { %7262 = vmatpush3.bf16.msra.mxu1 %v7979_v26  ;;  %6079 = vmatprep.subr.bf16.mxu0 %v7982_v8  ;;  %v8042_v26 = vld [vmem:[#allocation13 + $0x3cc] ss:$28 sps:$4 sm:$0xff]  }
 0x4d5   :  { %7263 = vmatprep.subr.bf16.mxu1 %v7983_v9  ;;  %v8043_v8 = vld [vmem:[#allocation13 + $0x910] ss:$28 sps:$4 sm:$0xff]   ;;  %v8040_v9 = vld [vmem:[#allocation13 + $0x3c8] ss:$28 sps:$4 sm:$0xff]  }
 0x4d7   :  { %6080 = vmatpush1.bf16.msra.mxu0 %v7980_v27  ;;  %v8044_v27 = vld [vmem:[#allocation13 + $0x750] ss:$28 sps:$4 sm:$0xff]  }
 0x4d8   :  { %7264 = vmatpush3.bf16.msra.mxu1 %v7984_v29  ;;  %6081 = vmatprep.subr.bf16.mxu0 %v7987_v32  ;;  %v8047_v29 = vld [vmem:[#allocation13 + $0x404] ss:$28 sps:$4 sm:$0xff]  }
 0x4d9   :  { %7265 = vmatprep.subr.bf16.mxu1 %v7988_v57  ;;  %v8048_v32 = vld [vmem:[#allocation13 + $0x948] ss:$28 sps:$4 sm:$0xff]   ;;  %v8045_v57 = vld [vmem:[#allocation13 + $0x400] ss:$28 sps:$4 sm:$0xff]  }
 0x4db   :  { %6082 = vmatpush1.bf16.msra.mxu0 %v7985_v31  ;;  %v8052_v31 = vld [vmem:[#allocation13 + $0x43c] ss:$28 sps:$4 sm:$0xff]  }
 0x4dc   :  { %7266 = vmatpush3.bf16.msra.mxu1 %v7989_v33  ;;  %6083 = vmatprep.subr.bf16.mxu0 %v7992_v34  ;;  %v8053_v33 = vld [vmem:[#allocation13 + $0x980] ss:$28 sps:$4 sm:$0xff]   ;;  %v8050_v34 = vld [vmem:[#allocation13 + $0x438] ss:$28 sps:$4 sm:$0xff]  }
 0x4dd   :  { %7267 = vmatprep.subr.bf16.mxu1 %v7993_v36  ;;  %v8057_v36 = vld [vmem:[#allocation13 + $0x474] ss:$28 sps:$4 sm:$0xff]  }
 0x4df   :  { %6084 = vmatpush1.bf16.msra.mxu0 %v7990_v38  ;;  %v8058_v38 = vld [vmem:[#allocation13 + $0x9b8] ss:$28 sps:$4 sm:$0xff]  }
 0x4e0   :  { %7268 = vmatpush3.bf16.msra.mxu1 %v7994_v55  ;;  %6085 = vmatprep.subr.bf16.mxu0 %v7997_v44  ;;  %v8055_v55 = vld [vmem:[#allocation13 + $0x470] ss:$28 sps:$4 sm:$0xff]   ;;  %v8059_v44 = vld [vmem:[#allocation13 + $0x7f8] ss:$28 sps:$4 sm:$0xff]  }
 0x4e1   :  { %7275 = vmatprep.subr.bf16.mxu1 %v7998_v47  ;;  %v8062_v47 = vld [vmem:[#allocation13 + $0x4ac] ss:$28 sps:$4 sm:$0xff]  }
 0x4e3   :  { %6266 = vmatmul.mubr.bf16.vlgmr.msra.gmra.mrb[24].mxu1 %v8735_v51  ;;  %6086 = vmatpush1.bf16.msra.mxu0 %v7995_v49  ;;  %v8063_v49 = vld [vmem:[#allocation13 + $0x9f0] ss:$28 sps:$4 sm:$0xff]  }
 0x4e4   :  { %7276 = vmatpush3.bf16.msra.mxu1 %v7999_v50  ;;  %6305 = vmatprep.mubr.bf16.mxu1 %v8739_v39  ;;  %v8060_v50 = vld [vmem:[#allocation13 + $0x4a8] ss:$28 sps:$4 sm:$0xff]  }
 0x4e5   :  { %6087 = vmatprep.subr.bf16.mxu0 %v8002_v52  ;;  %7277 = vmatprep.subr.bf16.mxu1 %v8003_v53  ;;  %v8064_v52 = vld [vmem:[#allocation13 + $0x830] ss:$28 sps:$4 sm:$0xff]   ;;  %v8067_v53 = vld [vmem:[#allocation13 + $0x4e4] ss:$28 sps:$4 sm:$0xff]  }
 0x4e7   :  { %6088 = vmatpush1.bf16.msra.mxu0 %v8000_v40  ;;  %v8068_v40 = vld [vmem:[#allocation13 + $0xa28] ss:$28 sps:$4 sm:$0xff]  }
 0x4e8   :  { %7278 = vmatpush3.bf16.msra.mxu1 %v8004_v41  ;;  %6089 = vmatprep.subr.bf16.mxu0 %v8007_v43  ;;  %v8065_v41 = vld [vmem:[#allocation13 + $0x4e0] ss:$28 sps:$4 sm:$0xff]   ;;  %v8069_v43 = vld [vmem:[#allocation13 + $0x868] ss:$28 sps:$4 sm:$0xff]  }
 0x4e9   :  { %7279 = vmatprep.subr.bf16.mxu1 %v8008_v45  ;;  %v8072_v45 = vld [vmem:[#allocation13 + $0x51c] ss:$28 sps:$4 sm:$0xff]  }
 0x4eb   :  { %6090 = vmatpush1.bf16.msra.mxu0 %v8005_v46  ;;  %v8073_v46 = vld [vmem:[#allocation13 + $0xa60] ss:$28 sps:$4 sm:$0xff]  }
 0x4ec   :  { %7280 = vmatpush3.bf16.msra.mxu1 %v8009_v54  ;;  %6091 = vmatprep.subr.bf16.mxu0 %v8012_v25  ;;  %v8070_v54 = vld [vmem:[#allocation13 + $0x518] ss:$28 sps:$4 sm:$0xff]   ;;  %v8074_v25 = vld [vmem:[#allocation13 + $0x8a0] ss:$28 sps:$4 sm:$0xff]  }
 0x4ed   :  { %7281 = vmatprep.subr.bf16.mxu1 %v8013_v56  ;;  %v8077_v56 = vld [vmem:[#allocation13 + $0x554] ss:$28 sps:$4 sm:$0xff]  }
 0x4ef   :  { %6092 = vmatpush1.bf16.msra.mxu0 %v8010_v59  ;;  %v8078_v59 = vld [vmem:[#allocation13 + $0xc58] ss:$28 sps:$4 sm:$0xff]  }
 0x4f0   :  { %7282 = vmatpush3.bf16.msra.mxu1 %v8014_v62  ;;  %6093 = vmatprep.subr.bf16.mxu0 %v8017_v63  ;;  %v8075_v62 = vld [vmem:[#allocation13 + $0x550] ss:$28 sps:$4 sm:$0xff]   ;;  %v8079_v63 = vld [vmem:[#allocation13 + $0xa98] ss:$28 sps:$4 sm:$0xff]  }
 0x4f1   :  { %7283 = vmatprep.subr.bf16.mxu1 %v8018_v17  ;;  %v8082_v17 = vld [vmem:[#allocation13 + $0x58c] ss:$28 sps:$4 sm:$0xff]  }
 0x4f3   :  { %6094 = vmatpush1.bf16.msra.mxu0 %v8015_v2  ;;  %v8083_v2 = vld [vmem:[#allocation13 + $0xc90] ss:$28 sps:$4 sm:$0xff]  }
 0x4f4   :  { %7284 = vmatpush3.bf16.msra.mxu1 %v8019_v4  ;;  %6095 = vmatprep.subr.bf16.mxu0 %v8022_v61  ;;  %v8080_v4 = vld [vmem:[#allocation13 + $0x588] ss:$28 sps:$4 sm:$0xff]   ;;  %v8084_v61 = vld [vmem:[#allocation13 + $0xad0] ss:$28 sps:$4 sm:$0xff]  }
 0x4f5   :  { %7285 = vmatprep.subr.bf16.mxu1 %v8023_v6  ;;  %v8087_v6 = vld [vmem:[#allocation13 + $0x5c4] ss:$28 sps:$4 sm:$0xff]  }
 0x4f7   :  { %6096 = vmatpush1.bf16.msra.mxu0 %v8020_v7  ;;  %v8088_v7 = vld [vmem:[#allocation13 + $0xcc8] ss:$28 sps:$4 sm:$0xff]  }
 0x4f8   :  { %7286 = vmatpush3.bf16.msra.mxu1 %v8024_v10  ;;  %6097 = vmatprep.subr.bf16.mxu0 %v8027_v11  ;;  %v8085_v10 = vld [vmem:[#allocation13 + $0x5c0] ss:$28 sps:$4 sm:$0xff]   ;;  %v8089_v11 = vld [vmem:[#allocation13 + $0xb08] ss:$28 sps:$4 sm:$0xff]  }
 0x4f9   :  { %7287 = vmatprep.subr.bf16.mxu1 %v8028_v12  ;;  %v8092_v12 = vld [vmem:[#allocation13 + $0x5fc] ss:$28 sps:$4 sm:$0xff]  }
 0x4fb   :  { %6098 = vmatpush1.bf16.msra.mxu0 %v8025_v14  ;;  %v8093_v14 = vld [vmem:[#allocation13 + $0xd00] ss:$28 sps:$4 sm:$0xff]  }
 0x4fc   :  { %7288 = vmatpush3.bf16.msra.mxu1 %v8029_v18  ;;  %6099 = vmatprep.subr.bf16.mxu0 %v8032_v19  ;;  %v8090_v18 = vld [vmem:[#allocation13 + $0x5f8] ss:$28 sps:$4 sm:$0xff]   ;;  %v8094_v19 = vld [vmem:[#allocation13 + $0xb40] ss:$28 sps:$4 sm:$0xff]  }
 0x4fd   :  { %7289 = vmatprep.subr.bf16.mxu1 %v8033_v20  ;;  %v8097_v20 = vld [vmem:[#allocation13 + $0x634] ss:$28 sps:$4 sm:$0xff]  }
 0x4ff   :  { %6100 = vmatpush1.bf16.msra.mxu0 %v8030_v21  ;;  %v8098_v21 = vld [vmem:[#allocation13 + $0xd38] ss:$28 sps:$4 sm:$0xff]  }
 0x500   :  { %7290 = vmatpush3.bf16.msra.mxu1 %v8034_v22  ;;  %6110 = vmatprep.subr.bf16.mxu0 %v8037_v30  ;;  %v8095_v22 = vld [vmem:[#allocation13 + $0x630] ss:$28 sps:$4 sm:$0xff]   ;;  %v8099_v30 = vld [vmem:[#allocation13 + $0xb78] ss:$28 sps:$4 sm:$0xff]  }
 0x501   :  { %7297 = vmatprep.subr.bf16.mxu1 %v8038_v23  ;;  %v8102_v23 = vld [vmem:[#allocation13 + $0x66c] ss:$28 sps:$4 sm:$0xff]  }
 0x502   :  { %6102 = vmatmul.mubr.bf16.vlgmr.msra.gmra.mrb[16].mxu0 %v8735_v51  ;;  %v8049_v51 = vld [vmem:[#allocation13 + $0x788] ss:$28 sps:$4 sm:$0xff]  }
 0x503   :  { %6306 = vmatmul.mubr.bf16.vlgmr.msra.gmra.mrb[28].mxu1 %v8748_v1  ;;  %6111 = vmatpush1.bf16.msra.mxu0 %v8035_v48  ;;  %v8103_v48 = vld [vmem:[#allocation13 + $0xd70] ss:$28 sps:$4 sm:$0xff]  }
 0x504   :  { %6142 = vmatprep.mubr.bf16.mxu0 %v8739_v39  ;;  %7298 = vmatpush3.bf16.msra.mxu1 %v8039_v24  ;;  %v8054_v39 = vld [vmem:[#allocation13 + $0x7c0] ss:$28 sps:$4 sm:$0xff]   ;;  %v8100_v24 = vld [vmem:[#allocation13 + $0x668] ss:$28 sps:$4 sm:$0xff]  }
 0x505   :  { %6345 = vmatprep.mubr.bf16.mxu1 %v8764_v37  ;;  %6112 = vmatprep.subr.bf16.mxu0 %v8042_v26  ;;  %v8104_v26 = vld [vmem:[#allocation13 + $0xbb0] ss:$28 sps:$4 sm:$0xff]  }
 0x506   :  { %7299 = vmatprep.subr.bf16.mxu1 %v8043_v8  ;;  %v8107_v8 = vld [vmem:[#allocation13 + $0x6a4] ss:$28 sps:$4 sm:$0xff]  }
 0x507   :  { %6113 = vmatpush1.bf16.msra.mxu0 %v8040_v9  ;;  %v8108_v9 = vld [vmem:[#allocation13 + $0xda8] ss:$28 sps:$4 sm:$0xff]  }
 0x508   :  { %7300 = vmatpush3.bf16.msra.mxu1 %v8044_v27  ;;  %6114 = vmatprep.subr.bf16.mxu0 %v8047_v29  ;;  %v8105_v27 = vld [vmem:[#allocation13 + $0x6a0] ss:$28 sps:$4 sm:$0xff]   ;;  %v8109_v29 = vld [vmem:[#allocation13 + $0xbe8] ss:$28 sps:$4 sm:$0xff]  }
 0x509   :  { %7301 = vmatprep.subr.bf16.mxu1 %v8048_v32  ;;  %v8112_v32 = vld [vmem:[#allocation13 + $0x6dc] ss:$28 sps:$4 sm:$0xff]  }
 0x50b   :  { %6115 = vmatpush1.bf16.msra.mxu0 %v8045_v57  ;;  %v8113_v57 = vld [vmem:[#allocation13 + $0xde0] ss:$28 sps:$4 sm:$0xff]  }
 0x50c   :  { %7302 = vmatpush3.bf16.msra.mxu1 %v8049_v51  ;;  %6116 = vmatprep.subr.bf16.mxu0 %v8052_v31  ;;  %v8110_v51 = vld [vmem:[#allocation13 + $0x6d8] ss:$28 sps:$4 sm:$0xff]   ;;  %v8114_v31 = vld [vmem:[#allocation13 + $0xc20] ss:$28 sps:$4 sm:$0xff]  }
 0x50d   :  { %7303 = vmatprep.subr.bf16.mxu1 %v8053_v33  ;;  %v8117_v33 = vld [vmem:[#allocation13 + $0x714] ss:$28 sps:$4 sm:$0xff]  }
 0x50f   :  { %6117 = vmatpush1.bf16.msra.mxu0 %v8050_v34  ;;  %v8115_v34 = vld [vmem:[#allocation13 + $0x710] ss:$28 sps:$4 sm:$0xff]  }
 0x510   :  { %7304 = vmatpush3.bf16.msra.mxu1 %v8054_v39  ;;  %6118 = vmatprep.subr.bf16.mxu0 %v8057_v36  ;;  %v8120_v39 = vld [vmem:[#allocation13 + $0x74c] ss:$28 sps:$4 sm:$0xff]  }
 0x511   :  { %7305 = vmatprep.subr.bf16.mxu1 %v8058_v38  ;;  %v8118_v36 = vld [vmem:[#allocation13 + $0x748] ss:$28 sps:$4 sm:$0xff]  }
 0x512   :  { %v8123_v38 = vld [vmem:[#allocation13 + $0x784] ss:$28 sps:$4 sm:$0xff]  }
 0x513   :  { %6119 = vmatpush1.bf16.msra.mxu0 %v8055_v55  ;;  %v8121_v55 = vld [vmem:[#allocation13 + $0x780] ss:$28 sps:$4 sm:$0xff]  }
 0x514   :  { %7306 = vmatpush3.bf16.msra.mxu1 %v8059_v44  ;;  %6120 = vmatprep.subr.bf16.mxu0 %v8062_v47  ;;  %v8126_v44 = vld [vmem:[#allocation13 + $0x7bc] ss:$28 sps:$4 sm:$0xff]  }
 0x515   :  { %7307 = vmatprep.subr.bf16.mxu1 %v8063_v49  ;;  %v8124_v47 = vld [vmem:[#allocation13 + $0x7b8] ss:$28 sps:$4 sm:$0xff]  }
 0x516   :  { %v8129_v49 = vld [vmem:[#allocation13 + $0x7f4] ss:$28 sps:$4 sm:$0xff]  }
 0x517   :  { %6121 = vmatpush1.bf16.msra.mxu0 %v8060_v50  ;;  %v8127_v50 = vld [vmem:[#allocation13 + $0x7f0] ss:$28 sps:$4 sm:$0xff]  }
 0x518   :  { %7308 = vmatpush3.bf16.msra.mxu1 %v8064_v52  ;;  %6122 = vmatprep.subr.bf16.mxu0 %v8067_v53  ;;  %v8130_v52 = vld [vmem:[#allocation13 + $0x828] ss:$28 sps:$4 sm:$0xff]  }
 0x519   :  { %7309 = vmatprep.subr.bf16.mxu1 %v8068_v40  ;;  %v8135_v53 = vld [vmem:[#allocation13 + $0x864] ss:$28 sps:$4 sm:$0xff]   ;;  %v8138_v40 = vld [vmem:[#allocation13 + $0x89c] ss:$28 sps:$4 sm:$0xff]  }
 0x51b   :  { %6123 = vmatpush1.bf16.msra.mxu0 %v8065_v41  ;;  %v8136_v41 = vld [vmem:[#allocation13 + $0x898] ss:$28 sps:$4 sm:$0xff]  }
 0x51c   :  { %7310 = vmatpush3.bf16.msra.mxu1 %v8069_v43  ;;  %6124 = vmatprep.subr.bf16.mxu0 %v8072_v45  ;;  %v8141_v43 = vld [vmem:[#allocation13 + $0x8d4] ss:$28 sps:$4 sm:$0xff]  }
 0x51d   :  { %7311 = vmatprep.subr.bf16.mxu1 %v8073_v46  ;;  %v8139_v45 = vld [vmem:[#allocation13 + $0x8d0] ss:$28 sps:$4 sm:$0xff]  }
 0x51e   :  { %v8144_v46 = vld [vmem:[#allocation13 + $0x90c] ss:$28 sps:$4 sm:$0xff]  }
 0x51f   :  { %6125 = vmatpush1.bf16.msra.mxu0 %v8070_v54  ;;  %v8142_v54 = vld [vmem:[#allocation13 + $0x908] ss:$28 sps:$4 sm:$0xff]  }
 0x520   :  { %7312 = vmatpush3.bf16.msra.mxu1 %v8074_v25  ;;  %6126 = vmatprep.subr.bf16.mxu0 %v8077_v56  ;;  %v8147_v25 = vld [vmem:[#allocation13 + $0x944] ss:$28 sps:$4 sm:$0xff]  }
 0x521   :  { %7319 = vmatprep.subr.bf16.mxu1 %v8078_v59  ;;  %v8145_v56 = vld [vmem:[#allocation13 + $0x940] ss:$28 sps:$4 sm:$0xff]  }
 0x522   :  { %v8150_v59 = vld [vmem:[#allocation13 + $0x97c] ss:$28 sps:$4 sm:$0xff]  }
 0x523   :  { %6346 = vmatmul.mubr.bf16.vlgmr.msra.gmra.mrb[32].mxu1 %v8766_v42  ;;  %6127 = vmatpush1.bf16.msra.mxu0 %v8075_v62  ;;  %v8148_v62 = vld [vmem:[#allocation13 + $0x978] ss:$28 sps:$4 sm:$0xff]  }
 0x524   :  { %7320 = vmatpush3.bf16.msra.mxu1 %v8079_v63  ;;  %6385 = vmatprep.mubr.bf16.mxu1 %v8770_v15  ;;  %v8153_v63 = vld [vmem:[#allocation13 + $0x9b4] ss:$28 sps:$4 sm:$0xff]  }
 0x525   :  { %6128 = vmatprep.subr.bf16.mxu0 %v8082_v17  ;;  %7321 = vmatprep.subr.bf16.mxu1 %v8083_v2  ;;  %v8151_v17 = vld [vmem:[#allocation13 + $0x9b0] ss:$28 sps:$4 sm:$0xff]  }
 0x526   :  { %v8156_v2 = vld [vmem:[#allocation13 + $0x9ec] ss:$28 sps:$4 sm:$0xff]  }
 0x527   :  { %6129 = vmatpush1.bf16.msra.mxu0 %v8080_v4  ;;  %v8154_v4 = vld [vmem:[#allocation13 + $0x9e8] ss:$28 sps:$4 sm:$0xff]  }
 0x528   :  { %7322 = vmatpush3.bf16.msra.mxu1 %v8084_v61  ;;  %6130 = vmatprep.subr.bf16.mxu0 %v8087_v6  ;;  %v8159_v61 = vld [vmem:[#allocation13 + $0xa24] ss:$28 sps:$4 sm:$0xff]  }
 0x529   :  { %7323 = vmatprep.subr.bf16.mxu1 %v8088_v7  ;;  %v8157_v6 = vld [vmem:[#allocation13 + $0xa20] ss:$28 sps:$4 sm:$0xff]  }
 0x52a   :  { %v8162_v7 = vld [vmem:[#allocation13 + $0xa5c] ss:$28 sps:$4 sm:$0xff]  }
 0x52b   :  { %6131 = vmatpush1.bf16.msra.mxu0 %v8085_v10  ;;  %v8160_v10 = vld [vmem:[#allocation13 + $0xa58] ss:$28 sps:$4 sm:$0xff]  }
 0x52c   :  { %7324 = vmatpush3.bf16.msra.mxu1 %v8089_v11  ;;  %6132 = vmatprep.subr.bf16.mxu0 %v8092_v12  ;;  %v8165_v11 = vld [vmem:[#allocation13 + $0xa94] ss:$28 sps:$4 sm:$0xff]  }
 0x52d   :  { %7325 = vmatprep.subr.bf16.mxu1 %v8093_v14  ;;  %v8163_v12 = vld [vmem:[#allocation13 + $0xa90] ss:$28 sps:$4 sm:$0xff]  }
 0x52e   :  { %v8168_v14 = vld [vmem:[#allocation13 + $0xacc] ss:$28 sps:$4 sm:$0xff]  }
 0x52f   :  { %6133 = vmatpush1.bf16.msra.mxu0 %v8090_v18  ;;  %v8166_v18 = vld [vmem:[#allocation13 + $0xac8] ss:$28 sps:$4 sm:$0xff]  }
 0x530   :  { %7326 = vmatpush3.bf16.msra.mxu1 %v8094_v19  ;;  %6134 = vmatprep.subr.bf16.mxu0 %v8097_v20  ;;  %v8171_v19 = vld [vmem:[#allocation13 + $0xb04] ss:$28 sps:$4 sm:$0xff]  }
 0x531   :  { %7327 = vmatprep.subr.bf16.mxu1 %v8098_v21  ;;  %v8169_v20 = vld [vmem:[#allocation13 + $0xb00] ss:$28 sps:$4 sm:$0xff]  }
 0x532   :  { %v8174_v21 = vld [vmem:[#allocation13 + $0xb3c] ss:$28 sps:$4 sm:$0xff]  }
 0x533   :  { %6135 = vmatpush1.bf16.msra.mxu0 %v8095_v22  ;;  %v8172_v22 = vld [vmem:[#allocation13 + $0xb38] ss:$28 sps:$4 sm:$0xff]  }
 0x534   :  { %7328 = vmatpush3.bf16.msra.mxu1 %v8099_v30  ;;  %6136 = vmatprep.subr.bf16.mxu0 %v8102_v23  ;;  %v8177_v30 = vld [vmem:[#allocation13 + $0xb74] ss:$28 sps:$4 sm:$0xff]  }
 0x535   :  { %7329 = vmatprep.subr.bf16.mxu1 %v8103_v48  ;;  %v8175_v23 = vld [vmem:[#allocation13 + $0xb70] ss:$28 sps:$4 sm:$0xff]   ;;  %v8800_v48 = vld [vmem:[#allocation15] sm:$0xff] }
 0x537   :  { %6137 = vmatpush1.bf16.msra.mxu0 %v8100_v24  ;;  %v3413_v24 = vrot.slane %v8800_v48, %v8698_v13 }
 0x538   :  { %7330 = vmatpush3.bf16.msra.mxu1 %v8104_v26  ;;  %6138 = vmatprep.subr.bf16.mxu0 %v8107_v8  ;;  %v3409_v26 = vrot.slane %v8800_v48, %v8651_v3  ;;  %v3417_v8 = vrot.slane %v8800_v48, %v8701_v16  ;;  %v8186_v16 = vld [vmem:[#allocation13 + $0xc1c] ss:$28 sps:$4 sm:$0xff]  }
 0x539   :  { %7331 = vmatprep.subr.bf16.mxu1 %v8108_v9  ;;  %v8178_v9 = vld [vmem:[#allocation13 + $0xba8] ss:$28 sps:$4 sm:$0xff]  }
 0x53b   :  { %6139 = vmatpush1.bf16.msra.mxu0 %v8105_v27  ;;  %v8183_v27 = vld [vmem:[#allocation13 + $0xbe4] ss:$28 sps:$4 sm:$0xff]  }
 0x53c   :  { %7332 = vmatpush3.bf16.msra.mxu1 %v8109_v29  ;;  %6140 = vmatprep.subr.bf16.mxu0 %v8112_v32 }
 0x53d   :  { %7333 = vmatprep.subr.bf16.mxu1 %v8113_v57 }
 0x53f   :  { %6141 = vmatpush1.bf16.msra.mxu0 %v8110_v51 }
 0x540   :  { %7334 = vmatpush3.bf16.msra.mxu1 %v8114_v31  ;;  %6151 = vmatprep.subr.bf16.mxu0 %v8117_v33 }
 0x542   :  { %6143 = vmatmul.mubr.bf16.vlgmr.msra.gmra.mrb[16].mxu0 %v8748_v1  ;;  %v8132_v1 = vld [vmem:[#allocation13 + $0x82c] ss:$28 sps:$4 sm:$0xff]  }
 0x543   :  { %6386 = vmatmul.mubr.bf16.vlgmr.msra.gmra.mrb[36].mxu1 %v8781_v5  ;;  %6152 = vmatpush1.bf16.msra.mxu0 %v8115_v34 }
 0x544   :  { %6183 = vmatprep.mubr.bf16.mxu0 %v8764_v37  ;;  %6153 = vmatprep.subr.bf16.mxu0 %v8120_v39  ;;  %v8133_v37 = vld [vmem:[#allocation13 + $0x860] ss:$28 sps:$4 sm:$0xff]  }
 0x547   :  { %6154 = vmatpush1.bf16.msra.mxu0 %v8118_v36  ;;  %v8181_v36 = vld [vmem:[#allocation13 + $0xbe0] ss:$28 sps:$4 sm:$0xff]  }
 0x548   :  { %6155 = vmatprep.subr.bf16.mxu0 %v8123_v38 }
 0x54b   :  { %6156 = vmatpush1.bf16.msra.mxu0 %v8121_v55  ;;  %v8184_v55 = vld [vmem:[#allocation13 + $0xc18] ss:$28 sps:$4 sm:$0xff]  }
 0x54c   :  { %6157 = vmatprep.subr.bf16.mxu0 %v8126_v44  ;;  %v8189_v44 = vld [vmem:[#allocation13 + $0xc54] ss:$28 sps:$4 sm:$0xff]  }
 0x54f   :  { %6158 = vmatpush1.bf16.msra.mxu0 %v8124_v47  ;;  %v8187_v47 = vld [vmem:[#allocation13 + $0xc50] ss:$28 sps:$4 sm:$0xff]  }
 0x550   :  { %6159 = vmatprep.subr.bf16.mxu0 %v8129_v49  ;;  %v8192_v49 = vld [vmem:[#allocation13 + $0xc8c] ss:$28 sps:$4 sm:$0xff]  }
 0x553   :  { %6160 = vmatpush1.bf16.msra.mxu0 %v8127_v50 }
 0x554   :  { %6161 = vmatprep.subr.bf16.mxu0 %v8132_v1 }
 0x557   :  { %6162 = vmatpush1.bf16.msra.mxu0 %v8130_v52  ;;  %v8190_v52 = vld [vmem:[#allocation13 + $0xc88] ss:$28 sps:$4 sm:$0xff]  }
 0x558   :  { %6163 = vmatprep.subr.bf16.mxu0 %v8135_v53 }
 0x55b   :  { %6164 = vmatpush1.bf16.msra.mxu0 %v8133_v37  ;;  %v8195_v37 = vld [vmem:[#allocation13 + $0xcc4] ss:$28 sps:$4 sm:$0xff]  }
 0x55c   :  { %6165 = vmatprep.subr.bf16.mxu0 %v8138_v40 }
 0x55f   :  { %6166 = vmatpush1.bf16.msra.mxu0 %v8136_v41 }
 0x560   :  { %6167 = vmatprep.subr.bf16.mxu0 %v8141_v43 }
 0x563   :  { %6168 = vmatpush1.bf16.msra.mxu0 %v8139_v45  ;;  %v8193_v45 = vld [vmem:[#allocation13 + $0xcc0] ss:$28 sps:$4 sm:$0xff]  }
 0x564   :  { %6169 = vmatprep.subr.bf16.mxu0 %v8144_v46  ;;  %v8198_v46 = vld [vmem:[#allocation13 + $0xcfc] ss:$28 sps:$4 sm:$0xff]  }
 0x567   :  { %6170 = vmatpush1.bf16.msra.mxu0 %v8142_v54  ;;  %v8196_v54 = vld [vmem:[#allocation13 + $0xcf8] ss:$28 sps:$4 sm:$0xff]  }
 0x568   :  { %6171 = vmatprep.subr.bf16.mxu0 %v8147_v25  ;;  %v8201_v25 = vld [vmem:[#allocation13 + $0xd34] ss:$28 sps:$4 sm:$0xff]  }
 0x56b   :  { %6172 = vmatpush1.bf16.msra.mxu0 %v8145_v56  ;;  %v8199_v56 = vld [vmem:[#allocation13 + $0xd30] ss:$28 sps:$4 sm:$0xff]  }
 0x56c   :  { %6173 = vmatprep.subr.bf16.mxu0 %v8150_v59  ;;  %v8204_v59 = vld [vmem:[#allocation13 + $0xd6c] ss:$28 sps:$4 sm:$0xff]  }
 0x56f   :  { %6174 = vmatpush1.bf16.msra.mxu0 %v8148_v62  ;;  %v8202_v62 = vld [vmem:[#allocation13 + $0xd68] ss:$28 sps:$4 sm:$0xff]  }
 0x570   :  { %6175 = vmatprep.subr.bf16.mxu0 %v8153_v63  ;;  %v8207_v63 = vld [vmem:[#allocation13 + $0xda4] ss:$28 sps:$4 sm:$0xff]  }
 0x573   :  { %6176 = vmatpush1.bf16.msra.mxu0 %v8151_v17 }
 0x574   :  { %6177 = vmatprep.subr.bf16.mxu0 %v8156_v2 }
 0x577   :  { %6178 = vmatpush1.bf16.msra.mxu0 %v8154_v4  ;;  %v8205_v4 = vld [vmem:[#allocation13 + $0xda0] ss:$28 sps:$4 sm:$0xff]  }
 0x578   :  { %6179 = vmatprep.subr.bf16.mxu0 %v8159_v61 }
 0x57b   :  { %6180 = vmatpush1.bf16.msra.mxu0 %v8157_v6 }
 0x57c   :  { %6181 = vmatprep.subr.bf16.mxu0 %v8162_v7  ;;  %v8210_v7 = vld [vmem:[#allocation13 + $0xddc] ss:$28 sps:$4 sm:$0xff]  }
 0x57f   :  { %6182 = vmatpush1.bf16.msra.mxu0 %v8160_v10 }
 0x580   :  { %6192 = vmatprep.subr.bf16.mxu0 %v8165_v11  ;;  %v8208_v11 = vld [vmem:[#allocation13 + $0xdd8] ss:$28 sps:$4 sm:$0xff]  }
 0x582   :  { %6184 = vmatmul.mubr.bf16.vlgmr.msra.gmra.mrb[16].mxu0 %v8766_v42  ;;  %v8180_v42 = vld [vmem:[#allocation13 + $0xbac] ss:$28 sps:$4 sm:$0xff]  }
 0x583   :  { %6193 = vmatpush1.bf16.msra.mxu0 %v8163_v12  ;;  %6224 = vmatprep.mubr.bf16.mxu0 %v8770_v15  ;;  %v3405_v15 = vrot.slane %v8800_v48, %v8648_v0  ;;  %v3429_v12 = vrot.slane %v8800_v48, %v1242_v35 }
 0x584   :  { %6194 = vmatprep.subr.bf16.mxu0 %v8168_v14 }
 0x587   :  { %6195 = vmatpush1.bf16.msra.mxu0 %v8166_v18 }
 0x588   :  { %6196 = vmatprep.subr.bf16.mxu0 %v8171_v19 }
 0x58b   :  { %6197 = vmatpush1.bf16.msra.mxu0 %v8169_v20 }
 0x58c   :  { %6198 = vmatprep.subr.bf16.mxu0 %v8174_v21 }
 0x58f   :  { %6199 = vmatpush1.bf16.msra.mxu0 %v8172_v22 }
 0x590   :  { %6200 = vmatprep.subr.bf16.mxu0 %v8177_v30 }
 0x593   :  { %6201 = vmatpush1.bf16.msra.mxu0 %v8175_v23 }
 0x594   :  { %6202 = vmatprep.subr.bf16.mxu0 %v8180_v42 }
 0x595   :  { %v5898_v29 = vpop.f32.mrb[12].mxu0  ;;  %v6062_v32 = vpop.f32.mrb[20].mxu1 }
 0x596   :  { %v7349_v57 = vadd.f32 %v5898_v29, %v3405_v15  ;;  %v7351_v51 = vadd.f32 %v6062_v32, %v3413_v24  ;;  %v5900_v31 = vpop.f32.mrb[13].mxu0  ;;  %v6064_v33 = vpop.f32.mrb[21].mxu1 }
 0x597   :  { %v7350_v0 = vadd.f32 %v5900_v31, %v3409_v26  ;;  %v7352_v34 = vadd.f32 %v6064_v33, %v3417_v8  ;;  %v5902_v39 = vpop.f32.mrb[14].mxu0  ;;  %v6066_v13 = vpop.f32.mrb[22].mxu1  ;;  %6203 = vmatpush1.bf16.msra.mxu0 %v8178_v9  ;;  %v3421_v31 = vrot.slane %v8800_v48, %v1234_v28  ;;  %v3425_v33 = vrot.slane %v8800_v48, %v1238_v60 }
 0x598   :  { %8211 = vtanh.f32 %v7349_v57  ;;  %v5903_v3 = vpop.f32.mrb[15].mxu0  ;;  %v6067_v38 = vpop.f32.mrb[23].mxu1  ;;  %6204 = vmatprep.subr.bf16.mxu0 %v8183_v27 }
 0x599   :  { %8213 = vtanh.f32 %v7351_v51 }
 0x59a   :  { %8215 = vtanh.f32 %v7350_v0 }
 0x59b   :  { %8217 = vtanh.f32 %v7352_v34  ;;  %6205 = vmatpush1.bf16.msra.mxu0 %v8181_v36 }
 0x59c   :  { %6206 = vmatprep.subr.bf16.mxu0 %v8186_v16 }
 0x59f   :  { %6207 = vmatpush1.bf16.msra.mxu0 %v8184_v55 }
 0x5a0   :  { %6208 = vmatprep.subr.bf16.mxu0 %v8189_v44 }
 0x5a2   :  { %v8212_v50 = vpop.eup %8211 }
 0x5a3   :  { %v8214_v1 = vpop.eup %8213  ;;  %6209 = vmatpush1.bf16.msra.mxu0 %v8187_v47 }
 0x5a4   :  { %v8216_v53 = vpop.eup %8215  ;;  %6210 = vmatprep.subr.bf16.mxu0 %v8192_v49 }
 0x5a5   :  { %v8218_v40 = vpop.eup %8217  ;;  %v7249_v41 = vpack.c.bf16 %v8216_v53, %v8212_v50 }
 0x5a6   :  { %v7250_v43 = vpack.c.bf16 %v8218_v40, %v8214_v1 }
 0x5a7   :  { %6429 = vst [vmem:[%s8843_s11] sm:$0xff] %v7249_v41  ;;  %6211 = vmatpush1.bf16.msra.mxu0 %v8190_v52 }
 0x5a8   :  { %6430 = vst [vmem:[%s8843_s11 + $0x8] sm:$0xff] %v7250_v43  ;;  %6212 = vmatprep.subr.bf16.mxu0 %v8195_v37 }
 0x5ab   :  { %6213 = vmatpush1.bf16.msra.mxu0 %v8193_v45 }
 0x5ac   :  { %6214 = vmatprep.subr.bf16.mxu0 %v8198_v46 }
 0x5af   :  { %6215 = vmatpush1.bf16.msra.mxu0 %v8196_v54 }
 0x5b0   :  { %6216 = vmatprep.subr.bf16.mxu0 %v8201_v25 }
 0x5b3   :  { %6217 = vmatpush1.bf16.msra.mxu0 %v8199_v56 }
 0x5b4   :  { %6218 = vmatprep.subr.bf16.mxu0 %v8204_v59 }
 0x5b6   :  { %v7269_v17 = vpop.f32.mrb[24].mxu1 }
 0x5b7   :  { %v7270_v2 = vpop.f32.mrb[25].mxu1  ;;  %6219 = vmatpush1.bf16.msra.mxu0 %v8202_v62 }
 0x5b8   :  { %v7271_v61 = vadd.f32 %v7270_v2, %v7269_v17  ;;  %v7272_v6 = vpop.f32.mrb[26].mxu1  ;;  %6220 = vmatprep.subr.bf16.mxu0 %v8207_v63 }
 0x5b9   :  { %v7273_v10 = vpop.f32.mrb[27].mxu1 }
 0x5ba   :  { %v6268_v19 = vadd.f32 %v7271_v61, %v3429_v12 }
 0x5bb   :  { %6221 = vmatpush1.bf16.msra.mxu0 %v8205_v4 }
 0x5bc   :  { %6222 = vmatprep.subr.bf16.mxu0 %v8210_v7 }
 0x5bf   :  { %6223 = vmatpush1.bf16.msra.mxu0 %v8208_v11 }
 0x5c2   :  { %6225 = vmatmul.mubr.bf16.vlgmr.msra.gmra.mrb[16].mxu0 %v8781_v5 }
 0x5d6   :  { %v7291_v14 = vpop.f32.mrb[28].mxu1 }
 0x5d7   :  { %v7292_v18 = vpop.f32.mrb[29].mxu1 }
 0x5d8   :  { %v7293_v20 = vadd.f32 %v7292_v18, %v7291_v14  ;;  %v7294_v21 = vpop.f32.mrb[30].mxu1 }
 0x5d9   :  { %v7295_v22 = vpop.f32.mrb[31].mxu1 }
 0x5da   :  { %v6308_v30 = vadd.f32 %v7293_v20, %v6268_v19 }
 0x5f6   :  { %v7313_v23 = vpop.f32.mrb[32].mxu1 }
 0x5f7   :  { %v7314_v42 = vpop.f32.mrb[33].mxu1 }
 0x5f8   :  { %v7315_v15 = vadd.f32 %v7314_v42, %v7313_v23  ;;  %v7316_v24 = vpop.f32.mrb[34].mxu1 }
 0x5f9   :  { %v7317_v26 = vpop.f32.mrb[35].mxu1 }
 0x5fa   :  { %v6348_v8 = vadd.f32 %v7315_v15, %v6308_v30 }
 0x616   :  { %v7335_v9 = vpop.f32.mrb[36].mxu1 }
 0x617   :  { %v7336_v27 = vpop.f32.mrb[37].mxu1 }
 0x618   :  { %v7337_v5 = vadd.f32 %v7336_v27, %v7335_v9  ;;  %v7338_v29 = vpop.f32.mrb[38].mxu1 }
 0x619   :  { %v7339_v32 = vpop.f32.mrb[39].mxu1 }
 0x61a   :  { %v6388_v57 = vadd.f32 %v7337_v5, %v6348_v8 }
 0x61c   :  { %8219 = vtanh.f32 %v6388_v57 }
 0x626   :  { %v8220_v35 = vpop.eup %8219 }
 0x627   :  { %v7252_v51 = vpack.c.bf16 %v8220_v35, %v8220_v35 }
 0x629   :  { %6432 = vst [vmem:[%s8843_s11 + $0x18] sm:$0xf] %v7252_v51 }
 0x695   :  { %v6226_v0 = vpop.f32.mrb[16].mxu0 }
 0x696   :  { %v7353_v34 = vadd.f32 %v6226_v0, %v3421_v31  ;;  %v6228_v39 = vpop.f32.mrb[17].mxu0 }
 0x697   :  { %v7354_v13 = vadd.f32 %v6228_v39, %v3425_v33  ;;  %v6230_v36 = vpop.f32.mrb[18].mxu0 }
 0x698   :  { %8221 = vtanh.f32 %v7353_v34  ;;  %v6231_v3 = vpop.f32.mrb[19].mxu0 }
 0x699   :  { %8223 = vtanh.f32 %v7354_v13 }
 0x6a2   :  { %v8222_v38 = vpop.eup %8221 }
 0x6a3   :  { %v8224_v16 = vpop.eup %8223 }
 0x6a4   :  { %v7251_v55 = vpack.c.bf16 %v8224_v16, %v8222_v38 }
 0x6a6   :  { %6431 = vst [vmem:[%s8843_s11 + $0x10] sm:$0xff] %v7251_v55 }
 0x6a7   :  { %6437 = vsyncpa [#allocation3], 1 }
 0x6a8   :  { %6438 = vsyncpa [#allocation5], 1 }
 0x6a9   :  { %6439 = vsyncpa [#allocation8], 1 }
 0x6aa   :  { %6440 = vsyncpa [#allocation11], 1 }
 0x6ab   :  { %6441 = vsyncpa [#allocation14], 1 }

</bundles_post_ra>
